<compile_context>
chip_gen: v7x
topology: tpu7x:2x2x1
jax: 0.10.0
libtpu: 0.0.40
codegen_flags: <defaults>
</compile_context>

<pallas_src>
import math
import functools

import jax
import jax.numpy as jnp
from jax.experimental import pallas as pl
from jax.experimental.pallas import tpu as pltpu

PAD_IDX = 0

# MXU input dtype: bf16 inputs / f32 accumulation (v6e/v7x MXUs are native
# bf16; f32 runs multi-pass).  Weights are pre-cast once in init_params;
# activations stay f32 in HBM and are cast in-kernel (VPU op on the resident
# tile -> no extra XLA cast pass over HBM).
MATMUL_DTYPE = jnp.bfloat16


def _vmem_limit_bytes():
    """Per-generation scoped-VMEM budget: ~3/4 of physical VMEM, capped at
    100 MiB (v5e/v6e 128 MiB -> ~96 MiB; v7x 64 MiB -> 48 MiB).  Falls back to
    a 64 MiB physical assumption, which is safe on every generation."""
    cap = 64 << 20
    try:
        info = pltpu.get_tpu_info()
        cap = int(getattr(info, "vmem_capacity_bytes", 0)) or cap
    except Exception:
        pass
    return int(min((cap // 4) * 3, 100 << 20))


VMEM_LIMIT = _vmem_limit_bytes()
# Bigger lane-dense vocab tiles when VMEM affords it (amortizes the ~0.35 us
# per-grid-step overhead on the HBM-bound vocab projection).
TV_DEFAULT = 1024 if VMEM_LIMIT >= (64 << 20) else 512


def _tile(dim, target, multiple, *, min_blocks=1):
    """Largest tile <= target that divides `dim` and is a multiple of
    `multiple`; with min_blocks=2 the tile is additionally capped so the axis
    yields >=2 grid blocks when possible (keeps both v7x TensorCores busy on
    skinny-M shapes).  Falls back to the full dim (always a legal block)."""
    if min_blocks > 1 and dim >= min_blocks * multiple:
        target = min(target, dim // min_blocks)
    if dim <= target:
        return dim
    t = (target // multiple) * multiple
    while t >= multiple:
        if dim % t == 0:
            return t
        t -= multiple
    return dim


# ----------------------------- Pallas kernels ------------------------------

def _matmul_bias_kernel(x_ref, w_ref, b_ref, o_ref, acc_ref, *, relu):
    @pl.when(pl.program_id(2) == 0)
    def _():
        acc_ref[...] = jnp.zeros_like(acc_ref)

    acc_ref[...] += jnp.dot(x_ref[...].astype(MATMUL_DTYPE), w_ref[...],
                            preferred_element_type=jnp.float32)

    @pl.when(pl.program_id(2) == pl.num_programs(2) - 1)
    def _():
        z = acc_ref[...] + b_ref[...]          # bias folded into the finalize
        if relu:
            z = jnp.maximum(z, 0.0)
        o_ref[...] = z.astype(o_ref.dtype)


def linear(x2d, w, b, *, relu=False, tm=256, tn=512, tk=512):
    """Tiled (M,K)x(K,N) matmul + bias (+ optional ReLU).  `w` is pre-cast to
    MATMUL_DTYPE; x is cast in-kernel; accumulation is f32."""
    M, K = x2d.shape
    N = w.shape[1]
    tm = _tile(M, tm, 8, min_blocks=2)     # >=2 parallel M blocks for v7x 2 TCs
    tn = _tile(N, tn, 128)
    tk = _tile(K, tk, 128)
    grid = (M // tm, N // tn, K // tk)
    # TODO(synk): on v6e (128 MiB VMEM), pipeline_mode=pl.Buffered(3) on the
    # weight stream can hide exposed weight DMA for skinny-M shapes.
    return pl.pallas_call(
        functools.partial(_matmul_bias_kernel, relu=relu),
        out_shape=jax.ShapeDtypeStruct((M, N), jnp.float32),
        grid_spec=pltpu.PrefetchScalarGridSpec(
            num_scalar_prefetch=0, grid=grid,
            in_specs=[pl.BlockSpec((tm, tk), lambda i, j, k: (i, k)),
                      pl.BlockSpec((tk, tn), lambda i, j, k: (k, j)),
                      pl.BlockSpec((1, tn), lambda i, j, k: (0, j))],
            out_specs=pl.BlockSpec((tm, tn), lambda i, j, k: (i, j)),
            scratch_shapes=[pltpu.VMEM((tm, tn), jnp.float32)]),
        compiler_params=pltpu.CompilerParams(
            dimension_semantics=("parallel", "parallel", "arbitrary"),
            vmem_limit_bytes=VMEM_LIMIT),
    )(x2d, w, b.reshape(1, N).astype(jnp.float32))


def _matmul_bias_add_ln_kernel(x_ref, w_ref, b_ref, res_ref, g_ref, bt_ref,
                               o_ref, acc_ref):
    @pl.when(pl.program_id(1) == 0)
    def _():
        acc_ref[...] = jnp.zeros_like(acc_ref)

    acc_ref[...] += jnp.dot(x_ref[...].astype(MATMUL_DTYPE), w_ref[...],
                            preferred_element_type=jnp.float32)

    @pl.when(pl.program_id(1) == pl.num_programs(1) - 1)
    def _():
        z = acc_ref[...] + b_ref[...] + res_ref[...]
        mu = jnp.mean(z, axis=-1, keepdims=True)
        var = jnp.mean((z - mu) ** 2, axis=-1, keepdims=True)   # biased, like torch
        y = (z - mu) * jax.lax.rsqrt(var + 1e-5)
        o_ref[...] = (y * g_ref[...] + bt_ref[...]).astype(o_ref.dtype)


def matmul_add_layernorm(x2d, w, b, residual, gamma, beta, *, tm=128, tk=512):
    """Fused: (x @ w + b + residual) -> LayerNorm.  N (=H) kept un-tiled so the
    per-row mean/var runs on the resident accumulator tile.  tm defaults to 128
    so the f32 residual/out/acc tiles stay within v7x's VMEM budget at large H."""
    M, K = x2d.shape
    H = w.shape[1]
    tm = _tile(M, tm, 8, min_blocks=2)
    tk = _tile(K, tk, 128)
    grid = (M // tm, K // tk)
    return pl.pallas_call(
        _matmul_bias_add_ln_kernel,
        out_shape=jax.ShapeDtypeStruct((M, H), jnp.float32),
        grid_spec=pltpu.PrefetchScalarGridSpec(
            num_scalar_prefetch=0, grid=grid,
            in_specs=[pl.BlockSpec((tm, tk), lambda i, k: (i, k)),
                      pl.BlockSpec((tk, H), lambda i, k: (k, 0)),
                      pl.BlockSpec((1, H), lambda i, k: (0, 0)),
                      pl.BlockSpec((tm, H), lambda i, k: (i, 0)),
                      pl.BlockSpec((1, H), lambda i, k: (0, 0)),
                      pl.BlockSpec((1, H), lambda i, k: (0, 0))],
            out_specs=pl.BlockSpec((tm, H), lambda i, k: (i, 0)),
            scratch_shapes=[pltpu.VMEM((tm, H), jnp.float32)]),
        compiler_params=pltpu.CompilerParams(
            dimension_semantics=("parallel", "arbitrary"),
            vmem_limit_bytes=VMEM_LIMIT),
    )(x2d, w, b.reshape(1, H).astype(jnp.float32),
      residual,
      gamma.reshape(1, H).astype(jnp.float32),
      beta.reshape(1, H).astype(jnp.float32))


def _attention_kernel(q_ref, kv_ref, *rest, heads, q_off, k_off, v_off,
                      use_mask, weights_mode):
    # q_ref: (tq, Cq) projection slab; kv_ref: (S, Ckv) slab; optional mask (1,S).
    if use_mask:
        mask_ref, rest = rest[0], rest[1:]
    o_ref = rest[0]
    w_ref = rest[1] if weights_mode != 'none' else None

    H = o_ref.shape[-1]
    hd = H // heads
    scale = float(hd) ** -0.5
    if use_mask:
        pad = mask_ref[...] > 0.5                          # (1, S), True = padded key
    w_sum = None
    for h in range(heads):                                 # static unroll; heads is small
        # heads are sliced on the lane dim of the fused projection slabs:
        # no JAX-side split / (B, heads, L, hd) transpose copies.
        q_h = q_ref[:, (q_off + h) * hd:(q_off + h + 1) * hd].astype(MATMUL_DTYPE)
        k_h = kv_ref[:, (k_off + h) * hd:(k_off + h + 1) * hd].astype(MATMUL_DTYPE)
        v_h = kv_ref[:, (v_off + h) * hd:(v_off + h + 1) * hd].astype(MATMUL_DTYPE)
        s = jax.lax.dot_general(q_h, k_h, (((1,), (1,)), ((), ())),
                                preferred_element_type=jnp.float32) * scale
        if use_mask:
            # finite mask value -> a fully-padded row gives uniform probs, not NaN
            s = jnp.where(pad, jnp.float32(-1e30), s)
        m = jnp.max(s, axis=-1, keepdims=True)
        p = jnp.exp(s - m)
        probs = p / jnp.sum(p, axis=-1, keepdims=True)     # exact normalization (returned diagnostics)
        o_h = jnp.dot(probs.astype(MATMUL_DTYPE), v_h,
                      preferred_element_type=jnp.float32)  # (tq, hd)
        # store each head's output as soon as it is produced (no concatenate,
        # no all-heads-live vreg pressure); the HBM writeback of o_ref stays a
        # lane-dense full-(tq, H) tile.
        o_ref[:, h * hd:(h + 1) * hd] = o_h.astype(o_ref.dtype)
        if weights_mode == 'per_head':
            w_ref[h] = probs.astype(w_ref.dtype)
        elif weights_mode == 'avg':
            w_sum = probs if w_sum is None else w_sum + probs
    if weights_mode == 'avg':
        w_ref[...] = (w_sum * (1.0 / heads)).astype(w_ref.dtype)


def attention(q_slab, kv_slab, key_pad_mask3, *, heads, out_dim, q_off, k_off,
              v_off, weights_mode, tq=256):
    """q_slab: (B, T, Cq); kv_slab: (B, S, Ckv) -- raw fused-projection outputs.
    Head h's Q/K/V live at lane offsets (q_off+h)*hd / (k_off+h)*hd /
    (v_off+h)*hd of the respective slab (hd = out_dim // heads), so attention
    consumes the projections with zero split/transpose copies.
    key_pad_mask3: (B, 1, S) float, 1.0 = padded key (or None).
    Returns (attn (B, T, out_dim), weights): (B,heads,T,S) for 'per_head',
    (B,T,S) for 'avg', None for 'none'."""
    B, T, Cq = q_slab.shape
    S, Ckv = kv_slab.shape[1], kv_slab.shape[2]
    H = out_dim
    tq = _tile(T, tq, 8)              # bounds per-block VMEM (probs / q / out) on v7x
    grid = (B, T // tq)

    in_specs = [pl.BlockSpec((pl.Squeezed(), tq, Cq), lambda b, t: (b, t, 0)),
                pl.BlockSpec((pl.Squeezed(), S, Ckv), lambda b, t: (b, 0, 0))]
    ins = [q_slab, kv_slab]
    if key_pad_mask3 is not None:
        in_specs.append(pl.BlockSpec((pl.Squeezed(), 1, S), lambda b, t: (b, 0, 0)))
        ins.append(key_pad_mask3)

    out_shape = [jax.ShapeDtypeStruct((B, T, H), jnp.float32)]
    out_specs = [pl.BlockSpec((pl.Squeezed(), tq, H), lambda b, t: (b, t, 0))]
    if weights_mode == 'per_head':
        # TODO(synk): emit probs in bf16 to halve this (the largest pure-store
        # stream); kept f32 for parity with the f32 reference diagnostics.
        out_shape.append(jax.ShapeDtypeStruct((B, heads, T, S), jnp.float32))
        out_specs.append(pl.BlockSpec((pl.Squeezed(), heads, tq, S),
                                      lambda b, t: (b, 0, t, 0)))
    elif weights_mode == 'avg':
        out_shape.append(jax.ShapeDtypeStruct((B, T, S), jnp.float32))
        out_specs.append(pl.BlockSpec((pl.Squeezed(), tq, S), lambda b, t: (b, t, 0)))

    # TODO(synk): flash-style S tiling with an online-softmax carry for very
    # long source lengths (keeps K/V blocks bounded on v7x's 64 MiB VMEM).
    outs = pl.pallas_call(
        functools.partial(_attention_kernel, heads=heads,
                          q_off=q_off, k_off=k_off, v_off=v_off,
                          use_mask=key_pad_mask3 is not None,
                          weights_mode=weights_mode),
        out_shape=tuple(out_shape),
        grid_spec=pltpu.PrefetchScalarGridSpec(
            num_scalar_prefetch=0, grid=grid,
            in_specs=in_specs, out_specs=out_specs),
        compiler_params=pltpu.CompilerParams(
            dimension_semantics=("parallel", "parallel"),
            vmem_limit_bytes=VMEM_LIMIT),
    )(*ins)
    if weights_mode == 'none':
        return outs[0], None
    return outs[0], outs[1]


def _logits_lse_kernel(x_ref, w_ref, b_ref, z_ref, lse_ref, acc_ref, m_ref, s_ref):
    j = pl.program_id(1)
    k = pl.program_id(2)

    @pl.when(jnp.logical_and(j == 0, k == 0))
    def _():
        m_ref[...] = jnp.full_like(m_ref, -jnp.inf)
        s_ref[...] = jnp.zeros_like(s_ref)

    @pl.when(k == 0)
    def _():
        acc_ref[...] = jnp.zeros_like(acc_ref)

    acc_ref[...] += jnp.dot(x_ref[...].astype(MATMUL_DTYPE), w_ref[...],
                            preferred_element_type=jnp.float32)

    @pl.when(k == pl.num_programs(2) - 1)
    def _():
        z = acc_ref[...] + b_ref[...]
        z_ref[...] = z.astype(z_ref.dtype)
        m_new = jnp.maximum(m_ref[...], jnp.max(z, axis=-1, keepdims=True))
        s_ref[...] = (s_ref[...] * jnp.exp(m_ref[...] - m_new)
                      + jnp.sum(jnp.exp(z - m_new), axis=-1, keepdims=True))
        m_ref[...] = m_new

    @pl.when(jnp.logical_and(j == pl.num_programs(1) - 1,
                             k == pl.num_programs(2) - 1))
    def _():
        lse_ref[...] = (m_ref[...] + jnp.log(s_ref[...])).astype(lse_ref.dtype)


def _sub_lse_kernel(z_ref, lse_ref, o_ref):
    o_ref[...] = (z_ref[...] - lse_ref[...]).astype(o_ref.dtype)


def out_logsoftmax(x2d, w, b, *, tm=256, tv=None, tk=512):
    """Vocab projection + LogSoftmax: fused tiled matmul + online logsumexp
    over vocab tiles, then a finalize pass writing z - lse in place (the logits
    buffer is aliased to the output -> no extra (M,V) allocation)."""
    M, K = x2d.shape
    V = w.shape[1]
    tv = TV_DEFAULT if tv is None else tv
    tm = _tile(M, tm, 8, min_blocks=2)
    tv = _tile(V, tv, 128)
    tk = _tile(K, tk, 128)

    logits, lse = pl.pallas_call(
        _logits_lse_kernel,
        out_shape=(jax.ShapeDtypeStruct((M, V), jnp.float32),
                   jax.ShapeDtypeStruct((M, 1), jnp.float32)),
        grid_spec=pltpu.PrefetchScalarGridSpec(
            num_scalar_prefetch=0, grid=(M // tm, V // tv, K // tk),
            in_specs=[pl.BlockSpec((tm, tk), lambda i, j, k: (i, k)),
                      pl.BlockSpec((tk, tv), lambda i, j, k: (k, j)),
                      pl.BlockSpec((1, tv), lambda i, j, k: (0, j))],
            out_specs=[pl.BlockSpec((tm, tv), lambda i, j, k: (i, j)),
                       pl.BlockSpec((tm, 1), lambda i, j, k: (i, 0))],
            scratch_shapes=[pltpu.VMEM((tm, tv), jnp.float32),
                            pltpu.VMEM((tm, 1), jnp.float32),
                            pltpu.VMEM((tm, 1), jnp.float32)]),
        compiler_params=pltpu.CompilerParams(
            dimension_semantics=("parallel", "arbitrary", "arbitrary"),
            vmem_limit_bytes=VMEM_LIMIT),
    )(x2d, w, b.reshape(1, V).astype(jnp.float32))

    return pl.pallas_call(
        _sub_lse_kernel,
        out_shape=jax.ShapeDtypeStruct((M, V), jnp.float32),
        grid_spec=pltpu.PrefetchScalarGridSpec(
            num_scalar_prefetch=0, grid=(M // tm, V // tv),
            in_specs=[pl.BlockSpec((tm, tv), lambda i, j: (i, j)),
                      pl.BlockSpec((tm, 1), lambda i, j: (i, 0))],
            out_specs=pl.BlockSpec((tm, tv), lambda i, j: (i, j))),
        compiler_params=pltpu.CompilerParams(
            dimension_semantics=("parallel", "parallel"),
            vmem_limit_bytes=VMEM_LIMIT),
        input_output_aliases={0: 0},          # reuse the logits buffer in place
    )(logits, lse)


# --------------------------- model building blocks -------------------------

def decoder_layer(x2d, mem2d, B, T, S, memory_mask3, lp, heads, want_cross_avg):
    H = x2d.shape[1]

    # ---- self attention (eval: no causal / tgt padding mask) ----
    residual = x2d
    qkv = linear(x2d, lp['self_qkv_w'], lp['self_qkv_b']).reshape(B, T, 3 * H)
    sa, sa_w = attention(qkv, qkv, None, heads=heads, out_dim=H,
                         q_off=0, k_off=heads, v_off=2 * heads,
                         weights_mode='per_head')
    x2d = matmul_add_layernorm(sa.reshape(B * T, H), lp['self_o_w'], lp['self_o_b'],
                               residual, lp['ln1_g'], lp['ln1_b'])

    # ---- cross attention ----
    residual = x2d
    qx = linear(x2d, lp['cross_q_w'], lp['cross_q_b']).reshape(B, T, H)
    kvm = linear(mem2d, lp['cross_kv_w'], lp['cross_kv_b']).reshape(B, S, 2 * H)
    mode = 'avg' if want_cross_avg else 'none'   # only the last layer's average is returned
    ca, ca_w = attention(qx, kvm, memory_mask3, heads=heads, out_dim=H,
                         q_off=0, k_off=0, v_off=heads, weights_mode=mode)
    x2d = matmul_add_layernorm(ca.reshape(B * T, H), lp['cross_o_w'], lp['cross_o_b'],
                               residual, lp['ln2_g'], lp['ln2_b'])

    # ---- feed forward (ffn_dim=None -> hidden_size), ReLU fused ----
    residual = x2d
    h1 = linear(x2d, lp['w1'], lp['b1'], relu=True)
    x2d = matmul_add_layernorm(h1, lp['w2'], lp['b2'],
                               residual, lp['ln3_g'], lp['ln3_b'])
    return x2d, sa_w, ca_w


def transformer_decoder_forward(params, input_ids, input_len, encoder_output, heads):
    """input_ids: (B,T) int32; input_len: (B,) int32; encoder_output: (B,S,H)."""
    B, T = input_ids.shape
    S = encoder_output.shape[1]
    H = params['emb'].shape[1]

    # TODO(synk): embedding gather stays in JAX (no clean tiled BlockSpec form).
    x = params['emb'][input_ids]                                   # (B, T, H)
    pe = params['pe'][:T, 0, :]                                    # (T, H)
    x = x + (x + pe[None, :, :])     # faithful to ref `x += embed_positions(x)` -> 2*x + pe

    memory_mask3 = (jnp.arange(S)[None, :] >= input_len[:, None]
                    ).astype(jnp.float32)[:, None, :]              # (B,1,S), 1 = pad
    x2d = x.reshape(B * T, H)
    mem2d = encoder_output.reshape(B * S, H)

    n_layers = len(params['layers'])
    self_attn_weights = []
    decoder_state = []
    cross_attn_avg = None
    for li, lp in enumerate(params['layers']):
        decoder_state.append(jnp.transpose(x2d.reshape(B, T, H), (1, 0, 2)))  # (T,B,H) like ref state
        last = (li == n_layers - 1)
        x2d, sa_w, ca_w = decoder_layer(x2d, mem2d, B, T, S, memory_mask3, lp,
                                        heads, want_cross_avg=last)
        self_attn_weights.append(sa_w)
        if last:
            cross_attn_avg = ca_w

    scores = out_logsoftmax(x2d, params['out_w'], params['out_b']).reshape(B, T, -1)
    return {'decoder_output': scores,
            'decoder_state': decoder_state,
            'attention_weights': cross_attn_avg,
            'self_attention_weights': self_attn_weights}


# ------------------------------- parameters --------------------------------

def positional_encoding(d_model, max_len=128):
    position = jnp.arange(max_len, dtype=jnp.float32)[:, None]
    div_term = jnp.exp(jnp.arange(0, d_model, 2, dtype=jnp.float32) *
                       (-math.log(10000.0) / d_model))
    pe = jnp.zeros((max_len, d_model), jnp.float32)
    pe = pe.at[:, 0::2].set(jnp.sin(position * div_term))
    pe = pe.at[:, 1::2].set(jnp.cos(position * div_term))
    return pe[:, None, :]                                 # (max_len, 1, d_model)


def init_params(key, vocab, H, heads, num_layers):
    keys = iter(jax.random.split(key, 8 + num_layers * 20))

    def nrm(shape, scale=0.08):
        return scale * jax.random.normal(next(keys), shape, jnp.float32)

    def wmat(shape):
        # MXU weights pre-cast ONCE (avoids a per-call cast pass, halves weight DMA)
        return nrm(shape).astype(MATMUL_DTYPE)

    emb = nrm((vocab, H)).at[PAD_IDX].set(0.0)            # padding_idx row = 0
    layers = []
    for _ in range(num_layers):
        layers.append({
            # fused QKV (self) and fused KV (cross) weights
            'self_qkv_w': wmat((H, 3 * H)), 'self_qkv_b': nrm((3 * H,), 0.02),
            'self_o_w': wmat((H, H)),       'self_o_b': nrm((H,), 0.02),
            'cross_q_w': wmat((H, H)),      'cross_q_b': nrm((H,), 0.02),
            'cross_kv_w': wmat((H, 2 * H)), 'cross_kv_b': nrm((2 * H,), 0.02),
            'cross_o_w': wmat((H, H)),      'cross_o_b': nrm((H,), 0.02),
            'w1': wmat((H, H)), 'b1': nrm((H,), 0.02),    # ffn_dim=None -> hidden
            'w2': wmat((H, H)), 'b2': nrm((H,), 0.02),
            'ln1_g': jnp.ones((H,), jnp.float32), 'ln1_b': jnp.zeros((H,), jnp.float32),
            'ln2_g': jnp.ones((H,), jnp.float32), 'ln2_b': jnp.zeros((H,), jnp.float32),
            'ln3_g': jnp.ones((H,), jnp.float32), 'ln3_b': jnp.zeros((H,), jnp.float32),
        })
    return {'emb': emb, 'pe': positional_encoding(H, 128), 'layers': layers,
            'out_w': wmat((H, vocab)), 'out_b': nrm((vocab,), 0.02)}


# ---------------------------------- main ------------------------------------

if __name__ == "__main__":
    B, T, S, H, HEADS, VOCAB, LAYERS = 2, 8, 10, 32, 4, 16, 2

    key = jax.random.PRNGKey(0)
    k_ids, k_enc, k_par = jax.random.split(key, 3)
    input_ids = jax.random.randint(k_ids, (B, T), 0, VOCAB, dtype=jnp.int32)
    input_len = jnp.array([10, 7], dtype=jnp.int32)
    encoder_output = 0.5 * jax.random.normal(k_enc, (B, S, H), jnp.float32)
    params = init_params(k_par, VOCAB, H, HEADS, LAYERS)

    fwd = jax.jit(functools.partial(transformer_decoder_forward, heads=HEADS))
    out = fwd(params, input_ids, input_len, encoder_output)
    scores = jax.block_until_ready(out['decoder_output'])

    assert scores.shape == (B, T, VOCAB)
    assert bool(jnp.all(jnp.isfinite(scores)))
    # log-softmax rows must sum to 1 in prob space (z and lse come from the
    # same f32 accumulator, so this holds regardless of the bf16 MXU inputs)
    assert bool(jnp.allclose(jnp.sum(jnp.exp(scores), axis=-1), 1.0, atol=1e-4))

    cross_w = out['attention_weights']
    assert cross_w.shape == (B, T, S)
    assert bool(jnp.all(jnp.isfinite(cross_w)))
    assert bool(jnp.allclose(jnp.sum(cross_w, axis=-1), 1.0, atol=1e-4))
    assert len(out['self_attention_weights']) == LAYERS
    for sw in out['self_attention_weights']:
        assert sw.shape == (B, HEADS, T, T)
        assert bool(jnp.all(jnp.isfinite(sw)))
        assert bool(jnp.allclose(jnp.sum(sw, axis=-1), 1.0, atol=1e-4))

    print("KERNEL_OK")
</pallas_src>

<mosaic_0001>
module attributes {stable_mosaic.version = 11 : i64} {
  func.func @_matmul_bias_kernel(%arg0: i32, %arg1: i32, %arg2: i32, %arg3: memref<8x32xf32, #tpu.memory_space<vmem>>, %arg4: memref<32x96xbf16, #tpu.memory_space<vmem>>, %arg5: memref<1x96xf32, #tpu.memory_space<vmem>>, %arg6: memref<8x96xf32, #tpu.memory_space<vmem>>, %arg7: memref<8x96xf32, #tpu.memory_space<vmem>>) attributes {dimension_semantics = [#tpu.dimension_semantics<parallel>, #tpu.dimension_semantics<parallel>, #tpu.dimension_semantics<arbitrary>], iteration_bounds = array<i64: 2, 1, 1>, scalar_prefetch = 0 : i64, scratch_operands = 1 : i64, tpu.core_type = #tpu.core_type<tc>, window_params = [{transform_indices = @transform_0, window_bounds = array<i64: 8, 32>}, {transform_indices = @transform_1, window_bounds = array<i64: 32, 96>}, {transform_indices = @transform_2, window_bounds = array<i64: 1, 96>}, {transform_indices = @transform_3, window_bounds = array<i64: 8, 96>}]} {
    %c0_i32 = arith.constant 0 : i32
    %0 = arith.cmpi eq, %arg2, %c0_i32 : i32
    %1 = arith.extui %0 : i1 to i32
    %c0_i32_0 = arith.constant 0 : i32
    %2 = arith.cmpi ne, %1, %c0_i32_0 : i32
    scf.if %2 {
      %cst_10 = arith.constant 0.000000e+00 : f32
      %13 = vector.broadcast %cst_10 : f32 to vector<8x96xf32>
      %c0_11 = arith.constant 0 : index
      %c0_12 = arith.constant 0 : index
      %14 = vector.load %arg7[%c0_11, %c0_12] : memref<8x96xf32, #tpu.memory_space<vmem>>, vector<8x96xf32>
      tpu.vector_store %arg7[%c0_11, %c0_12], %13 {strides = array<i32>} : memref<8x96xf32, #tpu.memory_space<vmem>>, vector<8x96xf32>,
    } else {
    }
    %c0 = arith.constant 0 : index
    %c0_1 = arith.constant 0 : index
    %3 = vector.load %arg7[%c0, %c0_1] : memref<8x96xf32, #tpu.memory_space<vmem>>, vector<8x96xf32>
    %c0_2 = arith.constant 0 : index
    %c0_3 = arith.constant 0 : index
    %4 = vector.load %arg3[%c0_2, %c0_3] : memref<8x32xf32, #tpu.memory_space<vmem>>, vector<8x32xf32>
    %5 = arith.truncf %4 : vector<8x32xf32> to vector<8x32xbf16>
    %c0_4 = arith.constant 0 : index
    %c0_5 = arith.constant 0 : index
    %6 = vector.load %arg4[%c0_4, %c0_5] : memref<32x96xbf16, #tpu.memory_space<vmem>>, vector<32x96xbf16>
    %cst = arith.constant dense<0.000000e+00> : vector<8x96xf32>
    %7 = tpu.matmul %5, %6, %cst {dimension_numbers = #tpu.dot_dimension_numbers<[1], [0], [0], [1], [0, 0, 1, 1], [], []>} : vector<8x32xbf16>, vector<32x96xbf16>, vector<8x96xf32> -> vector<8x96xf32>
    %8 = arith.addf %3, %7 : vector<8x96xf32>
    %c0_6 = arith.constant 0 : index
    %c0_7 = arith.constant 0 : index
    %9 = vector.load %arg7[%c0_6, %c0_7] : memref<8x96xf32, #tpu.memory_space<vmem>>, vector<8x96xf32>
    tpu.vector_store %arg7[%c0_6, %c0_7], %8 {strides = array<i32>} : memref<8x96xf32, #tpu.memory_space<vmem>>, vector<8x96xf32>,
    %c0_i32_8 = arith.constant 0 : i32
    %10 = arith.cmpi eq, %arg2, %c0_i32_8 : i32
    %11 = arith.extui %10 : i1 to i32
    %c0_i32_9 = arith.constant 0 : i32
    %12 = arith.cmpi ne, %11, %c0_i32_9 : i32
    scf.if %12 {
      %c0_10 = arith.constant 0 : index
      %c0_11 = arith.constant 0 : index
      %13 = vector.load %arg7[%c0_10, %c0_11] : memref<8x96xf32, #tpu.memory_space<vmem>>, vector<8x96xf32>
      %c0_12 = arith.constant 0 : index
      %c0_13 = arith.constant 0 : index
      %14 = vector.load %arg5[%c0_12, %c0_13] : memref<1x96xf32, #tpu.memory_space<vmem>>, vector<1x96xf32>
      %15 = vector.broadcast %14 : vector<1x96xf32> to vector<8x96xf32>
      %16 = arith.addf %13, %15 : vector<8x96xf32>
      %c0_14 = arith.constant 0 : index
      %c0_15 = arith.constant 0 : index
      %17 = vector.load %arg6[%c0_14, %c0_15] : memref<8x96xf32, #tpu.memory_space<vmem>>, vector<8x96xf32>
      tpu.vector_store %arg6[%c0_14, %c0_15], %16 {strides = array<i32>} : memref<8x96xf32, #tpu.memory_space<vmem>>, vector<8x96xf32>,
    } else {
    }
    return
  }
  func.func @transform_0(%arg0: i32, %arg1: i32, %arg2: i32) -> (i32, i32) {
    %c0_i32 = arith.constant 0 : i32
    return %arg0, %arg2 : i32, i32
  }
  func.func @transform_1(%arg0: i32, %arg1: i32, %arg2: i32) -> (i32, i32) {
    %c0_i32 = arith.constant 0 : i32
    return %arg2, %arg1 : i32, i32
  }
  func.func @transform_2(%arg0: i32, %arg1: i32, %arg2: i32) -> (i32, i32) {
    %c0_i32 = arith.constant 0 : i32
    %c0_i32_0 = arith.constant 0 : i32
    return %c0_i32, %arg1 : i32, i32
  }
  func.func @transform_3(%arg0: i32, %arg1: i32, %arg2: i32) -> (i32, i32) {
    %c0_i32 = arith.constant 0 : i32
    return %arg0, %arg1 : i32, i32
  }
}

module attributes {stable_mosaic.version = 11 : i64} {
  func.func @_matmul_bias_kernel(%arg0: i32, %arg1: i32, %arg2: i32, %arg3: memref<8x32xf32, #tpu.memory_space<vmem>>, %arg4: memref<32x32xbf16, #tpu.memory_space<vmem>>, %arg5: memref<1x32xf32, #tpu.memory_space<vmem>>, %arg6: memref<8x32xf32, #tpu.memory_space<vmem>>, %arg7: memref<8x32xf32, #tpu.memory_space<vmem>>) attributes {dimension_semantics = [#tpu.dimension_semantics<parallel>, #tpu.dimension_semantics<parallel>, #tpu.dimension_semantics<arbitrary>], iteration_bounds = array<i64: 2, 1, 1>, scalar_prefetch = 0 : i64, scratch_operands = 1 : i64, tpu.core_type = #tpu.core_type<tc>, window_params = [{transform_indices = @transform_0, window_bounds = array<i64: 8, 32>}, {transform_indices = @transform_1, window_bounds = array<i64: 32, 32>}, {transform_indices = @transform_2, window_bounds = array<i64: 1, 32>}, {transform_indices = @transform_3, window_bounds = array<i64: 8, 32>}]} {
    %c0_i32 = arith.constant 0 : i32
    %0 = arith.cmpi eq, %arg2, %c0_i32 : i32
    %1 = arith.extui %0 : i1 to i32
    %c0_i32_0 = arith.constant 0 : i32
    %2 = arith.cmpi ne, %1, %c0_i32_0 : i32
    scf.if %2 {
      %cst_10 = arith.constant 0.000000e+00 : f32
      %13 = vector.broadcast %cst_10 : f32 to vector<8x32xf32>
      %c0_11 = arith.constant 0 : index
      %c0_12 = arith.constant 0 : index
      %14 = vector.load %arg7[%c0_11, %c0_12] : memref<8x32xf32, #tpu.memory_space<vmem>>, vector<8x32xf32>
      tpu.vector_store %arg7[%c0_11, %c0_12], %13 {strides = array<i32>} : memref<8x32xf32, #tpu.memory_space<vmem>>, vector<8x32xf32>,
    } else {
    }
    %c0 = arith.constant 0 : index
    %c0_1 = arith.constant 0 : index
    %3 = vector.load %arg7[%c0, %c0_1] : memref<8x32xf32, #tpu.memory_space<vmem>>, vector<8x32xf32>
    %c0_2 = arith.constant 0 : index
    %c0_3 = arith.constant 0 : index
    %4 = vector.load %arg3[%c0_2, %c0_3] : memref<8x32xf32, #tpu.memory_space<vmem>>, vector<8x32xf32>
    %5 = arith.truncf %4 : vector<8x32xf32> to vector<8x32xbf16>
    %c0_4 = arith.constant 0 : index
    %c0_5 = arith.constant 0 : index
    %6 = vector.load %arg4[%c0_4, %c0_5] : memref<32x32xbf16, #tpu.memory_space<vmem>>, vector<32x32xbf16>
    %cst = arith.constant dense<0.000000e+00> : vector<8x32xf32>
    %7 = tpu.matmul %5, %6, %cst {dimension_numbers = #tpu.dot_dimension_numbers<[1], [0], [0], [1], [0, 0, 1, 1], [], []>} : vector<8x32xbf16>, vector<32x32xbf16>, vector<8x32xf32> -> vector<8x32xf32>
    %8 = arith.addf %3, %7 : vector<8x32xf32>
    %c0_6 = arith.constant 0 : index
    %c0_7 = arith.constant 0 : index
    %9 = vector.load %arg7[%c0_6, %c0_7] : memref<8x32xf32, #tpu.memory_space<vmem>>, vector<8x32xf32>
    tpu.vector_store %arg7[%c0_6, %c0_7], %8 {strides = array<i32>} : memref<8x32xf32, #tpu.memory_space<vmem>>, vector<8x32xf32>,
    %c0_i32_8 = arith.constant 0 : i32
    %10 = arith.cmpi eq, %arg2, %c0_i32_8 : i32
    %11 = arith.extui %10 : i1 to i32
    %c0_i32_9 = arith.constant 0 : i32
    %12 = arith.cmpi ne, %11, %c0_i32_9 : i32
    scf.if %12 {
      %c0_10 = arith.constant 0 : index
      %c0_11 = arith.constant 0 : index
      %13 = vector.load %arg7[%c0_10, %c0_11] : memref<8x32xf32, #tpu.memory_space<vmem>>, vector<8x32xf32>
      %c0_12 = arith.constant 0 : index
      %c0_13 = arith.constant 0 : index
      %14 = vector.load %arg5[%c0_12, %c0_13] : memref<1x32xf32, #tpu.memory_space<vmem>>, vector<1x32xf32>
      %15 = vector.broadcast %14 : vector<1x32xf32> to vector<8x32xf32>
      %16 = arith.addf %13, %15 : vector<8x32xf32>
      %c0_14 = arith.constant 0 : index
      %c0_15 = arith.constant 0 : index
      %17 = vector.load %arg6[%c0_14, %c0_15] : memref<8x32xf32, #tpu.memory_space<vmem>>, vector<8x32xf32>
      tpu.vector_store %arg6[%c0_14, %c0_15], %16 {strides = array<i32>} : memref<8x32xf32, #tpu.memory_space<vmem>>, vector<8x32xf32>,
    } else {
    }
    return
  }
  func.func @transform_0(%arg0: i32, %arg1: i32, %arg2: i32) -> (i32, i32) {
    %c0_i32 = arith.constant 0 : i32
    return %arg0, %arg2 : i32, i32
  }
  func.func @transform_1(%arg0: i32, %arg1: i32, %arg2: i32) -> (i32, i32) {
    %c0_i32 = arith.constant 0 : i32
    return %arg2, %arg1 : i32, i32
  }
  func.func @transform_2(%arg0: i32, %arg1: i32, %arg2: i32) -> (i32, i32) {
    %c0_i32 = arith.constant 0 : i32
    %c0_i32_0 = arith.constant 0 : i32
    return %c0_i32, %arg1 : i32, i32
  }
  func.func @transform_3(%arg0: i32, %arg1: i32, %arg2: i32) -> (i32, i32) {
    %c0_i32 = arith.constant 0 : i32
    return %arg0, %arg1 : i32, i32
  }
}

module attributes {stable_mosaic.version = 11 : i64} {
  func.func @_matmul_bias_add_ln_kernel(%arg0: i32, %arg1: i32, %arg2: memref<8x32xf32, #tpu.memory_space<vmem>>, %arg3: memref<32x32xbf16, #tpu.memory_space<vmem>>, %arg4: memref<1x32xf32, #tpu.memory_space<vmem>>, %arg5: memref<8x32xf32, #tpu.memory_space<vmem>>, %arg6: memref<1x32xf32, #tpu.memory_space<vmem>>, %arg7: memref<1x32xf32, #tpu.memory_space<vmem>>, %arg8: memref<8x32xf32, #tpu.memory_space<vmem>>, %arg9: memref<8x32xf32, #tpu.memory_space<vmem>>) attributes {dimension_semantics = [#tpu.dimension_semantics<parallel>, #tpu.dimension_semantics<arbitrary>], iteration_bounds = array<i64: 2, 1>, scalar_prefetch = 0 : i64, scratch_operands = 1 : i64, tpu.core_type = #tpu.core_type<tc>, window_params = [{transform_indices = @transform_0, window_bounds = array<i64: 8, 32>}, {transform_indices = @transform_1, window_bounds = array<i64: 32, 32>}, {pipeline_mode = #tpu.pipeline_mode<synchronous>, transform_indices = @transform_2, window_bounds = array<i64: 1, 32>}, {transform_indices = @transform_3, window_bounds = array<i64: 8, 32>}, {pipeline_mode = #tpu.pipeline_mode<synchronous>, transform_indices = @transform_4, window_bounds = array<i64: 1, 32>}, {pipeline_mode = #tpu.pipeline_mode<synchronous>, transform_indices = @transform_5, window_bounds = array<i64: 1, 32>}, {transform_indices = @transform_6, window_bounds = array<i64: 8, 32>}]} {
    %c0_i32 = arith.constant 0 : i32
    %0 = arith.cmpi eq, %arg1, %c0_i32 : i32
    %1 = arith.extui %0 : i1 to i32
    %c0_i32_0 = arith.constant 0 : i32
    %2 = arith.cmpi ne, %1, %c0_i32_0 : i32
    scf.if %2 {
      %cst_10 = arith.constant 0.000000e+00 : f32
      %13 = vector.broadcast %cst_10 : f32 to vector<8x32xf32>
      %c0_11 = arith.constant 0 : index
      %c0_12 = arith.constant 0 : index
      %14 = vector.load %arg9[%c0_11, %c0_12] : memref<8x32xf32, #tpu.memory_space<vmem>>, vector<8x32xf32>
      tpu.vector_store %arg9[%c0_11, %c0_12], %13 {strides = array<i32>} : memref<8x32xf32, #tpu.memory_space<vmem>>, vector<8x32xf32>,
    } else {
    }
    %c0 = arith.constant 0 : index
    %c0_1 = arith.constant 0 : index
    %3 = vector.load %arg9[%c0, %c0_1] : memref<8x32xf32, #tpu.memory_space<vmem>>, vector<8x32xf32>
    %c0_2 = arith.constant 0 : index
    %c0_3 = arith.constant 0 : index
    %4 = vector.load %arg2[%c0_2, %c0_3] : memref<8x32xf32, #tpu.memory_space<vmem>>, vector<8x32xf32>
    %5 = arith.truncf %4 : vector<8x32xf32> to vector<8x32xbf16>
    %c0_4 = arith.constant 0 : index
    %c0_5 = arith.constant 0 : index
    %6 = vector.load %arg3[%c0_4, %c0_5] : memref<32x32xbf16, #tpu.memory_space<vmem>>, vector<32x32xbf16>
    %cst = arith.constant dense<0.000000e+00> : vector<8x32xf32>
    %7 = tpu.matmul %5, %6, %cst {dimension_numbers = #tpu.dot_dimension_numbers<[1], [0], [0], [1], [0, 0, 1, 1], [], []>} : vector<8x32xbf16>, vector<32x32xbf16>, vector<8x32xf32> -> vector<8x32xf32>
    %8 = arith.addf %3, %7 : vector<8x32xf32>
    %c0_6 = arith.constant 0 : index
    %c0_7 = arith.constant 0 : index
    %9 = vector.load %arg9[%c0_6, %c0_7] : memref<8x32xf32, #tpu.memory_space<vmem>>, vector<8x32xf32>
    tpu.vector_store %arg9[%c0_6, %c0_7], %8 {strides = array<i32>} : memref<8x32xf32, #tpu.memory_space<vmem>>, vector<8x32xf32>,
    %c0_i32_8 = arith.constant 0 : i32
    %10 = arith.cmpi eq, %arg1, %c0_i32_8 : i32
    %11 = arith.extui %10 : i1 to i32
    %c0_i32_9 = arith.constant 0 : i32
    %12 = arith.cmpi ne, %11, %c0_i32_9 : i32
    scf.if %12 {
      %c0_10 = arith.constant 0 : index
      %c0_11 = arith.constant 0 : index
      %13 = vector.load %arg9[%c0_10, %c0_11] : memref<8x32xf32, #tpu.memory_space<vmem>>, vector<8x32xf32>
      %c0_12 = arith.constant 0 : index
      %c0_13 = arith.constant 0 : index
      %14 = vector.load %arg4[%c0_12, %c0_13] : memref<1x32xf32, #tpu.memory_space<vmem>>, vector<1x32xf32>
      %15 = vector.broadcast %14 : vector<1x32xf32> to vector<8x32xf32>
      %16 = arith.addf %13, %15 : vector<8x32xf32>
      %c0_14 = arith.constant 0 : index
      %c0_15 = arith.constant 0 : index
      %17 = vector.load %arg5[%c0_14, %c0_15] : memref<8x32xf32, #tpu.memory_space<vmem>>, vector<8x32xf32>
      %18 = arith.addf %16, %17 : vector<8x32xf32>
      %cst_16 = arith.constant dense<0.000000e+00> : vector<8xf32>
      %19 = vector.multi_reduction <add>, %18, %cst_16 [1] : vector<8x32xf32> to vector<8xf32>
      %20 = vector.shape_cast %19 : vector<8xf32> to vector<8x1xf32>
      %cst_17 = arith.constant 3.200000e+01 : f32
      %21 = vector.broadcast %cst_17 : f32 to vector<8x1xf32>
      %22 = arith.divf %20, %21 : vector<8x1xf32>
      %23 = vector.broadcast %22 : vector<8x1xf32> to vector<8x32xf32>
      %24 = arith.subf %18, %23 : vector<8x32xf32>
      %25 = arith.mulf %24, %24 : vector<8x32xf32>
      %cst_18 = arith.constant dense<0.000000e+00> : vector<8xf32>
      %26 = vector.multi_reduction <add>, %25, %cst_18 [1] : vector<8x32xf32> to vector<8xf32>
      %27 = vector.shape_cast %26 : vector<8xf32> to vector<8x1xf32>
      %cst_19 = arith.constant 3.200000e+01 : f32
      %28 = vector.broadcast %cst_19 : f32 to vector<8x1xf32>
      %29 = arith.divf %27, %28 : vector<8x1xf32>
      %30 = vector.broadcast %22 : vector<8x1xf32> to vector<8x32xf32>
      %31 = arith.subf %18, %30 : vector<8x32xf32>
      %cst_20 = arith.constant 9.99999974E-6 : f32
      %32 = vector.broadcast %cst_20 : f32 to vector<8x1xf32>
      %33 = arith.addf %29, %32 : vector<8x1xf32>
      %34 = math.rsqrt %33 : vector<8x1xf32>
      %35 = vector.broadcast %34 : vector<8x1xf32> to vector<8x32xf32>
      %36 = arith.mulf %31, %35 : vector<8x32xf32>
      %c0_21 = arith.constant 0 : index
      %c0_22 = arith.constant 0 : index
      %37 = vector.load %arg6[%c0_21, %c0_22] : memref<1x32xf32, #tpu.memory_space<vmem>>, vector<1x32xf32>
      %38 = vector.broadcast %37 : vector<1x32xf32> to vector<8x32xf32>
      %39 = arith.mulf %36, %38 : vector<8x32xf32>
      %c0_23 = arith.constant 0 : index
      %c0_24 = arith.constant 0 : index
      %40 = vector.load %arg7[%c0_23, %c0_24] : memref<1x32xf32, #tpu.memory_space<vmem>>, vector<1x32xf32>
      %41 = vector.broadcast %40 : vector<1x32xf32> to vector<8x32xf32>
      %42 = arith.addf %39, %41 : vector<8x32xf32>
      %c0_25 = arith.constant 0 : index
      %c0_26 = arith.constant 0 : index
      %43 = vector.load %arg8[%c0_25, %c0_26] : memref<8x32xf32, #tpu.memory_space<vmem>>, vector<8x32xf32>
      tpu.vector_store %arg8[%c0_25, %c0_26], %42 {strides = array<i32>} : memref<8x32xf32, #tpu.memory_space<vmem>>, vector<8x32xf32>,
    } else {
    }
    return
  }
  func.func @transform_0(%arg0: i32, %arg1: i32) -> (i32, i32) {
    %c0_i32 = arith.constant 0 : i32
    return %arg0, %arg1 : i32, i32
  }
  func.func @transform_1(%arg0: i32, %arg1: i32) -> (i32, i32) {
    %c0_i32 = arith.constant 0 : i32
    %c0_i32_0 = arith.constant 0 : i32
    return %arg1, %c0_i32 : i32, i32
  }
  func.func @transform_2(%arg0: i32, %arg1: i32) -> (i32, i32) {
    %c0_i32 = arith.constant 0 : i32
    %c0_i32_0 = arith.constant 0 : i32
    %c0_i32_1 = arith.constant 0 : i32
    return %c0_i32, %c0_i32_0 : i32, i32
  }
  func.func @transform_3(%arg0: i32, %arg1: i32) -> (i32, i32) {
    %c0_i32 = arith.constant 0 : i32
    %c0_i32_0 = arith.constant 0 : i32
    return %arg0, %c0_i32 : i32, i32
  }
  func.func @transform_4(%arg0: i32, %arg1: i32) -> (i32, i32) {
    %c0_i32 = arith.constant 0 : i32
    %c0_i32_0 = arith.constant 0 : i32
    %c0_i32_1 = arith.constant 0 : i32
    return %c0_i32, %c0_i32_0 : i32, i32
  }
  func.func @transform_5(%arg0: i32, %arg1: i32) -> (i32, i32) {
    %c0_i32 = arith.constant 0 : i32
    %c0_i32_0 = arith.constant 0 : i32
    %c0_i32_1 = arith.constant 0 : i32
    return %c0_i32, %c0_i32_0 : i32, i32
  }
  func.func @transform_6(%arg0: i32, %arg1: i32) -> (i32, i32) {
    %c0_i32 = arith.constant 0 : i32
    %c0_i32_0 = arith.constant 0 : i32
    return %arg0, %c0_i32 : i32, i32
  }
}

module attributes {stable_mosaic.version = 11 : i64} {
  func.func @_attention_kernel(%arg0: i32, %arg1: i32, %arg2: memref<1x8x96xf32, #tpu.memory_space<vmem>>, %arg3: memref<1x8x96xf32, #tpu.memory_space<vmem>>, %arg4: memref<1x8x32xf32, #tpu.memory_space<vmem>>, %arg5: memref<1x4x8x8xf32, #tpu.memory_space<vmem>>) attributes {dimension_semantics = [#tpu.dimension_semantics<parallel>, #tpu.dimension_semantics<parallel>], iteration_bounds = array<i64: 2, 1>, scalar_prefetch = 0 : i64, scratch_operands = 0 : i64, tpu.core_type = #tpu.core_type<tc>, window_params = [{transform_indices = @transform_0, window_bounds = array<i64: 1, 8, 96>}, {transform_indices = @transform_1, window_bounds = array<i64: 1, 8, 96>}, {transform_indices = @transform_2, window_bounds = array<i64: 1, 8, 32>}, {transform_indices = @transform_3, window_bounds = array<i64: 1, 4, 8, 8>}]} {
    %c0 = arith.constant 0 : index
    %c0_0 = arith.constant 0 : index
    %c0_1 = arith.constant 0 : index
    %0 = vector.load %arg2[%c0, %c0_0, %c0_1] : memref<1x8x96xf32, #tpu.memory_space<vmem>>, vector<1x8x8xf32>
    %1 = vector.shape_cast %0 : vector<1x8x8xf32> to vector<8x8xf32>
    %2 = arith.truncf %1 : vector<8x8xf32> to vector<8x8xbf16>
    %c0_2 = arith.constant 0 : index
    %c0_3 = arith.constant 0 : index
    %c32 = arith.constant 32 : index
    %3 = vector.load %arg3[%c0_2, %c0_3, %c32] : memref<1x8x96xf32, #tpu.memory_space<vmem>>, vector<1x8x8xf32>
    %4 = vector.shape_cast %3 : vector<1x8x8xf32> to vector<8x8xf32>
    %5 = arith.truncf %4 : vector<8x8xf32> to vector<8x8xbf16>
    %c0_4 = arith.constant 0 : index
    %c0_5 = arith.constant 0 : index
    %c64 = arith.constant 64 : index
    %6 = vector.load %arg3[%c0_4, %c0_5, %c64] : memref<1x8x96xf32, #tpu.memory_space<vmem>>, vector<1x8x8xf32>
    %7 = vector.shape_cast %6 : vector<1x8x8xf32> to vector<8x8xf32>
    %8 = arith.truncf %7 : vector<8x8xf32> to vector<8x8xbf16>
    %cst = arith.constant dense<0.000000e+00> : vector<8x8xf32>
    %9 = tpu.matmul %2, %5, %cst {dimension_numbers = #tpu.dot_dimension_numbers<[1], [1], [0], [0], [0, 0, 1, 0], [], []>} : vector<8x8xbf16>, vector<8x8xbf16>, vector<8x8xf32> -> vector<8x8xf32>
    %cst_6 = arith.constant 0.353553385 : f32
    %10 = vector.broadcast %cst_6 : f32 to vector<8x8xf32>
    %11 = arith.mulf %9, %10 : vector<8x8xf32>
    %cst_7 = arith.constant dense<0xFF800000> : vector<8xf32>
    %12 = vector.multi_reduction <maximumf>, %11, %cst_7 [1] : vector<8x8xf32> to vector<8xf32>
    %13 = vector.shape_cast %12 : vector<8xf32> to vector<8x1xf32>
    %14 = vector.broadcast %13 : vector<8x1xf32> to vector<8x8xf32>
    %15 = arith.subf %11, %14 : vector<8x8xf32>
    %16 = math.exp %15 : vector<8x8xf32>
    %cst_8 = arith.constant dense<0.000000e+00> : vector<8xf32>
    %17 = vector.multi_reduction <add>, %16, %cst_8 [1] : vector<8x8xf32> to vector<8xf32>
    %18 = vector.shape_cast %17 : vector<8xf32> to vector<8x1xf32>
    %19 = vector.broadcast %18 : vector<8x1xf32> to vector<8x8xf32>
    %20 = arith.divf %16, %19 : vector<8x8xf32>
    %21 = arith.truncf %20 : vector<8x8xf32> to vector<8x8xbf16>
    %cst_9 = arith.constant dense<0.000000e+00> : vector<8x8xf32>
    %22 = tpu.matmul %21, %8, %cst_9 {dimension_numbers = #tpu.dot_dimension_numbers<[1], [0], [0], [1], [0, 0, 1, 1], [], []>} : vector<8x8xbf16>, vector<8x8xbf16>, vector<8x8xf32> -> vector<8x8xf32>
    %c0_10 = arith.constant 0 : index
    %c0_11 = arith.constant 0 : index
    %c0_12 = arith.constant 0 : index
    %23 = vector.load %arg4[%c0_10, %c0_11, %c0_12] : memref<1x8x32xf32, #tpu.memory_space<vmem>>, vector<1x8x8xf32>
    %24 = vector.shape_cast %23 : vector<1x8x8xf32> to vector<8x8xf32>
    %25 = vector.shape_cast %22 : vector<8x8xf32> to vector<1x8x8xf32>
    tpu.vector_store %arg4[%c0_10, %c0_11, %c0_12], %25 {strides = array<i32>} : memref<1x8x32xf32, #tpu.memory_space<vmem>>, vector<1x8x8xf32>,
    %c0_13 = arith.constant 0 : index
    %c0_14 = arith.constant 0 : index
    %c0_15 = arith.constant 0 : index
    %c0_16 = arith.constant 0 : index
    %26 = vector.load %arg5[%c0_13, %c0_14, %c0_15, %c0_16] : memref<1x4x8x8xf32, #tpu.memory_space<vmem>>, vector<1x1x8x8xf32>
    %27 = vector.shape_cast %26 : vector<1x1x8x8xf32> to vector<8x8xf32>
    %28 = vector.shape_cast %20 : vector<8x8xf32> to vector<1x1x8x8xf32>
    tpu.vector_store %arg5[%c0_13, %c0_14, %c0_15, %c0_16], %28 {strides = array<i32>} : memref<1x4x8x8xf32, #tpu.memory_space<vmem>>, vector<1x1x8x8xf32>,
    %c0_17 = arith.constant 0 : index
    %c0_18 = arith.constant 0 : index
    %c8 = arith.constant 8 : index
    %29 = vector.load %arg2[%c0_17, %c0_18, %c8] : memref<1x8x96xf32, #tpu.memory_space<vmem>>, vector<1x8x8xf32>
    %30 = vector.shape_cast %29 : vector<1x8x8xf32> to vector<8x8xf32>
    %31 = arith.truncf %30 : vector<8x8xf32> to vector<8x8xbf16>
    %c0_19 = arith.constant 0 : index
    %c0_20 = arith.constant 0 : index
    %c40 = arith.constant 40 : index
    %32 = vector.load %arg3[%c0_19, %c0_20, %c40] : memref<1x8x96xf32, #tpu.memory_space<vmem>>, vector<1x8x8xf32>
    %33 = vector.shape_cast %32 : vector<1x8x8xf32> to vector<8x8xf32>
    %34 = arith.truncf %33 : vector<8x8xf32> to vector<8x8xbf16>
    %c0_21 = arith.constant 0 : index
    %c0_22 = arith.constant 0 : index
    %c72 = arith.constant 72 : index
    %35 = vector.load %arg3[%c0_21, %c0_22, %c72] : memref<1x8x96xf32, #tpu.memory_space<vmem>>, vector<1x8x8xf32>
    %36 = vector.shape_cast %35 : vector<1x8x8xf32> to vector<8x8xf32>
    %37 = arith.truncf %36 : vector<8x8xf32> to vector<8x8xbf16>
    %cst_23 = arith.constant dense<0.000000e+00> : vector<8x8xf32>
    %38 = tpu.matmul %31, %34, %cst_23 {dimension_numbers = #tpu.dot_dimension_numbers<[1], [1], [0], [0], [0, 0, 1, 0], [], []>} : vector<8x8xbf16>, vector<8x8xbf16>, vector<8x8xf32> -> vector<8x8xf32>
    %cst_24 = arith.constant 0.353553385 : f32
    %39 = vector.broadcast %cst_24 : f32 to vector<8x8xf32>
    %40 = arith.mulf %38, %39 : vector<8x8xf32>
    %cst_25 = arith.constant dense<0xFF800000> : vector<8xf32>
    %41 = vector.multi_reduction <maximumf>, %40, %cst_25 [1] : vector<8x8xf32> to vector<8xf32>
    %42 = vector.shape_cast %41 : vector<8xf32> to vector<8x1xf32>
    %43 = vector.broadcast %42 : vector<8x1xf32> to vector<8x8xf32>
    %44 = arith.subf %40, %43 : vector<8x8xf32>
    %45 = math.exp %44 : vector<8x8xf32>
    %cst_26 = arith.constant dense<0.000000e+00> : vector<8xf32>
    %46 = vector.multi_reduction <add>, %45, %cst_26 [1] : vector<8x8xf32> to vector<8xf32>
    %47 = vector.shape_cast %46 : vector<8xf32> to vector<8x1xf32>
    %48 = vector.broadcast %47 : vector<8x1xf32> to vector<8x8xf32>
    %49 = arith.divf %45, %48 : vector<8x8xf32>
    %50 = arith.truncf %49 : vector<8x8xf32> to vector<8x8xbf16>
    %cst_27 = arith.constant dense<0.000000e+00> : vector<8x8xf32>
    %51 = tpu.matmul %50, %37, %cst_27 {dimension_numbers = #tpu.dot_dimension_numbers<[1], [0], [0], [1], [0, 0, 1, 1], [], []>} : vector<8x8xbf16>, vector<8x8xbf16>, vector<8x8xf32> -> vector<8x8xf32>
    %c0_28 = arith.constant 0 : index
    %c0_29 = arith.constant 0 : index
    %c8_30 = arith.constant 8 : index
    %52 = vector.load %arg4[%c0_28, %c0_29, %c8_30] : memref<1x8x32xf32, #tpu.memory_space<vmem>>, vector<1x8x8xf32>
    %53 = vector.shape_cast %52 : vector<1x8x8xf32> to vector<8x8xf32>
    %54 = vector.shape_cast %51 : vector<8x8xf32> to vector<1x8x8xf32>
    tpu.vector_store %arg4[%c0_28, %c0_29, %c8_30], %54 {strides = array<i32>} : memref<1x8x32xf32, #tpu.memory_space<vmem>>, vector<1x8x8xf32>,
    %c0_31 = arith.constant 0 : index
    %c1 = arith.constant 1 : index
    %c0_32 = arith.constant 0 : index
    %c0_33 = arith.constant 0 : index
    %55 = vector.load %arg5[%c0_31, %c1, %c0_32, %c0_33] : memref<1x4x8x8xf32, #tpu.memory_space<vmem>>, vector<1x1x8x8xf32>
    %56 = vector.shape_cast %55 : vector<1x1x8x8xf32> to vector<8x8xf32>
    %57 = vector.shape_cast %49 : vector<8x8xf32> to vector<1x1x8x8xf32>
    tpu.vector_store %arg5[%c0_31, %c1, %c0_32, %c0_33], %57 {strides = array<i32>} : memref<1x4x8x8xf32, #tpu.memory_space<vmem>>, vector<1x1x8x8xf32>,
    %c0_34 = arith.constant 0 : index
    %c0_35 = arith.constant 0 : index
    %c16 = arith.constant 16 : index
    %58 = vector.load %arg2[%c0_34, %c0_35, %c16] : memref<1x8x96xf32, #tpu.memory_space<vmem>>, vector<1x8x8xf32>
    %59 = vector.shape_cast %58 : vector<1x8x8xf32> to vector<8x8xf32>
    %60 = arith.truncf %59 : vector<8x8xf32> to vector<8x8xbf16>
    %c0_36 = arith.constant 0 : index
    %c0_37 = arith.constant 0 : index
    %c48 = arith.constant 48 : index
    %61 = vector.load %arg3[%c0_36, %c0_37, %c48] : memref<1x8x96xf32, #tpu.memory_space<vmem>>, vector<1x8x8xf32>
    %62 = vector.shape_cast %61 : vector<1x8x8xf32> to vector<8x8xf32>
    %63 = arith.truncf %62 : vector<8x8xf32> to vector<8x8xbf16>
    %c0_38 = arith.constant 0 : index
    %c0_39 = arith.constant 0 : index
    %c80 = arith.constant 80 : index
    %64 = vector.load %arg3[%c0_38, %c0_39, %c80] : memref<1x8x96xf32, #tpu.memory_space<vmem>>, vector<1x8x8xf32>
    %65 = vector.shape_cast %64 : vector<1x8x8xf32> to vector<8x8xf32>
    %66 = arith.truncf %65 : vector<8x8xf32> to vector<8x8xbf16>
    %cst_40 = arith.constant dense<0.000000e+00> : vector<8x8xf32>
    %67 = tpu.matmul %60, %63, %cst_40 {dimension_numbers = #tpu.dot_dimension_numbers<[1], [1], [0], [0], [0, 0, 1, 0], [], []>} : vector<8x8xbf16>, vector<8x8xbf16>, vector<8x8xf32> -> vector<8x8xf32>
    %cst_41 = arith.constant 0.353553385 : f32
    %68 = vector.broadcast %cst_41 : f32 to vector<8x8xf32>
    %69 = arith.mulf %67, %68 : vector<8x8xf32>
    %cst_42 = arith.constant dense<0xFF800000> : vector<8xf32>
    %70 = vector.multi_reduction <maximumf>, %69, %cst_42 [1] : vector<8x8xf32> to vector<8xf32>
    %71 = vector.shape_cast %70 : vector<8xf32> to vector<8x1xf32>
    %72 = vector.broadcast %71 : vector<8x1xf32> to vector<8x8xf32>
    %73 = arith.subf %69, %72 : vector<8x8xf32>
    %74 = math.exp %73 : vector<8x8xf32>
    %cst_43 = arith.constant dense<0.000000e+00> : vector<8xf32>
    %75 = vector.multi_reduction <add>, %74, %cst_43 [1] : vector<8x8xf32> to vector<8xf32>
    %76 = vector.shape_cast %75 : vector<8xf32> to vector<8x1xf32>
    %77 = vector.broadcast %76 : vector<8x1xf32> to vector<8x8xf32>
    %78 = arith.divf %74, %77 : vector<8x8xf32>
    %79 = arith.truncf %78 : vector<8x8xf32> to vector<8x8xbf16>
    %cst_44 = arith.constant dense<0.000000e+00> : vector<8x8xf32>
    %80 = tpu.matmul %79, %66, %cst_44 {dimension_numbers = #tpu.dot_dimension_numbers<[1], [0], [0], [1], [0, 0, 1, 1], [], []>} : vector<8x8xbf16>, vector<8x8xbf16>, vector<8x8xf32> -> vector<8x8xf32>
    %c0_45 = arith.constant 0 : index
    %c0_46 = arith.constant 0 : index
    %c16_47 = arith.constant 16 : index
    %81 = vector.load %arg4[%c0_45, %c0_46, %c16_47] : memref<1x8x32xf32, #tpu.memory_space<vmem>>, vector<1x8x8xf32>
    %82 = vector.shape_cast %81 : vector<1x8x8xf32> to vector<8x8xf32>
    %83 = vector.shape_cast %80 : vector<8x8xf32> to vector<1x8x8xf32>
    tpu.vector_store %arg4[%c0_45, %c0_46, %c16_47], %83 {strides = array<i32>} : memref<1x8x32xf32, #tpu.memory_space<vmem>>, vector<1x8x8xf32>,
    %c0_48 = arith.constant 0 : index
    %c2 = arith.constant 2 : index
    %c0_49 = arith.constant 0 : index
    %c0_50 = arith.constant 0 : index
    %84 = vector.load %arg5[%c0_48, %c2, %c0_49, %c0_50] : memref<1x4x8x8xf32, #tpu.memory_space<vmem>>, vector<1x1x8x8xf32>
    %85 = vector.shape_cast %84 : vector<1x1x8x8xf32> to vector<8x8xf32>
    %86 = vector.shape_cast %78 : vector<8x8xf32> to vector<1x1x8x8xf32>
    tpu.vector_store %arg5[%c0_48, %c2, %c0_49, %c0_50], %86 {strides = array<i32>} : memref<1x4x8x8xf32, #tpu.memory_space<vmem>>, vector<1x1x8x8xf32>,
    %c0_51 = arith.constant 0 : index
    %c0_52 = arith.constant 0 : index
    %c24 = arith.constant 24 : index
    %87 = vector.load %arg2[%c0_51, %c0_52, %c24] : memref<1x8x96xf32, #tpu.memory_space<vmem>>, vector<1x8x8xf32>
    %88 = vector.shape_cast %87 : vector<1x8x8xf32> to vector<8x8xf32>
    %89 = arith.truncf %88 : vector<8x8xf32> to vector<8x8xbf16>
    %c0_53 = arith.constant 0 : index
    %c0_54 = arith.constant 0 : index
    %c56 = arith.constant 56 : index
    %90 = vector.load %arg3[%c0_53, %c0_54, %c56] : memref<1x8x96xf32, #tpu.memory_space<vmem>>, vector<1x8x8xf32>
    %91 = vector.shape_cast %90 : vector<1x8x8xf32> to vector<8x8xf32>
    %92 = arith.truncf %91 : vector<8x8xf32> to vector<8x8xbf16>
    %c0_55 = arith.constant 0 : index
    %c0_56 = arith.constant 0 : index
    %c88 = arith.constant 88 : index
    %93 = vector.load %arg3[%c0_55, %c0_56, %c88] : memref<1x8x96xf32, #tpu.memory_space<vmem>>, vector<1x8x8xf32>
    %94 = vector.shape_cast %93 : vector<1x8x8xf32> to vector<8x8xf32>
    %95 = arith.truncf %94 : vector<8x8xf32> to vector<8x8xbf16>
    %cst_57 = arith.constant dense<0.000000e+00> : vector<8x8xf32>
    %96 = tpu.matmul %89, %92, %cst_57 {dimension_numbers = #tpu.dot_dimension_numbers<[1], [1], [0], [0], [0, 0, 1, 0], [], []>} : vector<8x8xbf16>, vector<8x8xbf16>, vector<8x8xf32> -> vector<8x8xf32>
    %cst_58 = arith.constant 0.353553385 : f32
    %97 = vector.broadcast %cst_58 : f32 to vector<8x8xf32>
    %98 = arith.mulf %96, %97 : vector<8x8xf32>
    %cst_59 = arith.constant dense<0xFF800000> : vector<8xf32>
    %99 = vector.multi_reduction <maximumf>, %98, %cst_59 [1] : vector<8x8xf32> to vector<8xf32>
    %100 = vector.shape_cast %99 : vector<8xf32> to vector<8x1xf32>
    %101 = vector.broadcast %100 : vector<8x1xf32> to vector<8x8xf32>
    %102 = arith.subf %98, %101 : vector<8x8xf32>
    %103 = math.exp %102 : vector<8x8xf32>
    %cst_60 = arith.constant dense<0.000000e+00> : vector<8xf32>
    %104 = vector.multi_reduction <add>, %103, %cst_60 [1] : vector<8x8xf32> to vector<8xf32>
    %105 = vector.shape_cast %104 : vector<8xf32> to vector<8x1xf32>
    %106 = vector.broadcast %105 : vector<8x1xf32> to vector<8x8xf32>
    %107 = arith.divf %103, %106 : vector<8x8xf32>
    %108 = arith.truncf %107 : vector<8x8xf32> to vector<8x8xbf16>
    %cst_61 = arith.constant dense<0.000000e+00> : vector<8x8xf32>
    %109 = tpu.matmul %108, %95, %cst_61 {dimension_numbers = #tpu.dot_dimension_numbers<[1], [0], [0], [1], [0, 0, 1, 1], [], []>} : vector<8x8xbf16>, vector<8x8xbf16>, vector<8x8xf32> -> vector<8x8xf32>
    %c0_62 = arith.constant 0 : index
    %c0_63 = arith.constant 0 : index
    %c24_64 = arith.constant 24 : index
    %110 = vector.load %arg4[%c0_62, %c0_63, %c24_64] : memref<1x8x32xf32, #tpu.memory_space<vmem>>, vector<1x8x8xf32>
    %111 = vector.shape_cast %110 : vector<1x8x8xf32> to vector<8x8xf32>
    %112 = vector.shape_cast %109 : vector<8x8xf32> to vector<1x8x8xf32>
    tpu.vector_store %arg4[%c0_62, %c0_63, %c24_64], %112 {strides = array<i32>} : memref<1x8x32xf32, #tpu.memory_space<vmem>>, vector<1x8x8xf32>,
    %c0_65 = arith.constant 0 : index
    %c3 = arith.constant 3 : index
    %c0_66 = arith.constant 0 : index
    %c0_67 = arith.constant 0 : index
    %113 = vector.load %arg5[%c0_65, %c3, %c0_66, %c0_67] : memref<1x4x8x8xf32, #tpu.memory_space<vmem>>, vector<1x1x8x8xf32>
    %114 = vector.shape_cast %113 : vector<1x1x8x8xf32> to vector<8x8xf32>
    %115 = vector.shape_cast %107 : vector<8x8xf32> to vector<1x1x8x8xf32>
    tpu.vector_store %arg5[%c0_65, %c3, %c0_66, %c0_67], %115 {strides = array<i32>} : memref<1x4x8x8xf32, #tpu.memory_space<vmem>>, vector<1x1x8x8xf32>,
    return
  }
  func.func @transform_0(%arg0: i32, %arg1: i32) -> (i32, i32, i32) {
    %c0_i32 = arith.constant 0 : i32
    %c0_i32_0 = arith.constant 0 : i32
    return %arg0, %arg1, %c0_i32 : i32, i32, i32
  }
  func.func @transform_1(%arg0: i32, %arg1: i32) -> (i32, i32, i32) {
    %c0_i32 = arith.constant 0 : i32
    %c0_i32_0 = arith.constant 0 : i32
    %c0_i32_1 = arith.constant 0 : i32
    return %arg0, %c0_i32, %c0_i32_0 : i32, i32, i32
  }
  func.func @transform_2(%arg0: i32, %arg1: i32) -> (i32, i32, i32) {
    %c0_i32 = arith.constant 0 : i32
    %c0_i32_0 = arith.constant 0 : i32
    return %arg0, %arg1, %c0_i32 : i32, i32, i32
  }
  func.func @transform_3(%arg0: i32, %arg1: i32) -> (i32, i32, i32, i32) {
    %c0_i32 = arith.constant 0 : i32
    %c0_i32_0 = arith.constant 0 : i32
    %c0_i32_1 = arith.constant 0 : i32
    return %arg0, %c0_i32, %arg1, %c0_i32_0 : i32, i32, i32, i32
  }
}

module attributes {stable_mosaic.version = 11 : i64} {
  func.func @_matmul_bias_kernel(%arg0: i32, %arg1: i32, %arg2: i32, %arg3: memref<20x32xf32, #tpu.memory_space<vmem>>, %arg4: memref<32x64xbf16, #tpu.memory_space<vmem>>, %arg5: memref<1x64xf32, #tpu.memory_space<vmem>>, %arg6: memref<20x64xf32, #tpu.memory_space<vmem>>, %arg7: memref<20x64xf32, #tpu.memory_space<vmem>>) attributes {dimension_semantics = [#tpu.dimension_semantics<parallel>, #tpu.dimension_semantics<parallel>, #tpu.dimension_semantics<arbitrary>], iteration_bounds = array<i64: 1, 1, 1>, scalar_prefetch = 0 : i64, scratch_operands = 1 : i64, tpu.core_type = #tpu.core_type<tc>, window_params = [{transform_indices = @transform_0, window_bounds = array<i64: 20, 32>}, {transform_indices = @transform_1, window_bounds = array<i64: 32, 64>}, {transform_indices = @transform_2, window_bounds = array<i64: 1, 64>}, {transform_indices = @transform_3, window_bounds = array<i64: 20, 64>}]} {
    %c0_i32 = arith.constant 0 : i32
    %0 = arith.cmpi eq, %arg2, %c0_i32 : i32
    %1 = arith.extui %0 : i1 to i32
    %c0_i32_0 = arith.constant 0 : i32
    %2 = arith.cmpi ne, %1, %c0_i32_0 : i32
    scf.if %2 {
      %cst_10 = arith.constant 0.000000e+00 : f32
      %13 = vector.broadcast %cst_10 : f32 to vector<20x64xf32>
      %c0_11 = arith.constant 0 : index
      %c0_12 = arith.constant 0 : index
      %14 = vector.load %arg7[%c0_11, %c0_12] : memref<20x64xf32, #tpu.memory_space<vmem>>, vector<20x64xf32>
      tpu.vector_store %arg7[%c0_11, %c0_12], %13 {strides = array<i32>} : memref<20x64xf32, #tpu.memory_space<vmem>>, vector<20x64xf32>,
    } else {
    }
    %c0 = arith.constant 0 : index
    %c0_1 = arith.constant 0 : index
    %3 = vector.load %arg7[%c0, %c0_1] : memref<20x64xf32, #tpu.memory_space<vmem>>, vector<20x64xf32>
    %c0_2 = arith.constant 0 : index
    %c0_3 = arith.constant 0 : index
    %4 = vector.load %arg3[%c0_2, %c0_3] : memref<20x32xf32, #tpu.memory_space<vmem>>, vector<20x32xf32>
    %5 = arith.truncf %4 : vector<20x32xf32> to vector<20x32xbf16>
    %c0_4 = arith.constant 0 : index
    %c0_5 = arith.constant 0 : index
    %6 = vector.load %arg4[%c0_4, %c0_5] : memref<32x64xbf16, #tpu.memory_space<vmem>>, vector<32x64xbf16>
    %cst = arith.constant dense<0.000000e+00> : vector<20x64xf32>
    %7 = tpu.matmul %5, %6, %cst {dimension_numbers = #tpu.dot_dimension_numbers<[1], [0], [0], [1], [0, 0, 1, 1], [], []>} : vector<20x32xbf16>, vector<32x64xbf16>, vector<20x64xf32> -> vector<20x64xf32>
    %8 = arith.addf %3, %7 : vector<20x64xf32>
    %c0_6 = arith.constant 0 : index
    %c0_7 = arith.constant 0 : index
    %9 = vector.load %arg7[%c0_6, %c0_7] : memref<20x64xf32, #tpu.memory_space<vmem>>, vector<20x64xf32>
    tpu.vector_store %arg7[%c0_6, %c0_7], %8 {strides = array<i32>} : memref<20x64xf32, #tpu.memory_space<vmem>>, vector<20x64xf32>,
    %c0_i32_8 = arith.constant 0 : i32
    %10 = arith.cmpi eq, %arg2, %c0_i32_8 : i32
    %11 = arith.extui %10 : i1 to i32
    %c0_i32_9 = arith.constant 0 : i32
    %12 = arith.cmpi ne, %11, %c0_i32_9 : i32
    scf.if %12 {
      %c0_10 = arith.constant 0 : index
      %c0_11 = arith.constant 0 : index
      %13 = vector.load %arg7[%c0_10, %c0_11] : memref<20x64xf32, #tpu.memory_space<vmem>>, vector<20x64xf32>
      %c0_12 = arith.constant 0 : index
      %c0_13 = arith.constant 0 : index
      %14 = vector.load %arg5[%c0_12, %c0_13] : memref<1x64xf32, #tpu.memory_space<vmem>>, vector<1x64xf32>
      %15 = vector.broadcast %14 : vector<1x64xf32> to vector<20x64xf32>
      %16 = arith.addf %13, %15 : vector<20x64xf32>
      %c0_14 = arith.constant 0 : index
      %c0_15 = arith.constant 0 : index
      %17 = vector.load %arg6[%c0_14, %c0_15] : memref<20x64xf32, #tpu.memory_space<vmem>>, vector<20x64xf32>
      tpu.vector_store %arg6[%c0_14, %c0_15], %16 {strides = array<i32>} : memref<20x64xf32, #tpu.memory_space<vmem>>, vector<20x64xf32>,
    } else {
    }
    return
  }
  func.func @transform_0(%arg0: i32, %arg1: i32, %arg2: i32) -> (i32, i32) {
    %c0_i32 = arith.constant 0 : i32
    return %arg0, %arg2 : i32, i32
  }
  func.func @transform_1(%arg0: i32, %arg1: i32, %arg2: i32) -> (i32, i32) {
    %c0_i32 = arith.constant 0 : i32
    return %arg2, %arg1 : i32, i32
  }
  func.func @transform_2(%arg0: i32, %arg1: i32, %arg2: i32) -> (i32, i32) {
    %c0_i32 = arith.constant 0 : i32
    %c0_i32_0 = arith.constant 0 : i32
    return %c0_i32, %arg1 : i32, i32
  }
  func.func @transform_3(%arg0: i32, %arg1: i32, %arg2: i32) -> (i32, i32) {
    %c0_i32 = arith.constant 0 : i32
    return %arg0, %arg1 : i32, i32
  }
}

module attributes {stable_mosaic.version = 11 : i64} {
  func.func @_matmul_bias_kernel(%arg0: i32, %arg1: i32, %arg2: i32, %arg3: memref<8x32xf32, #tpu.memory_space<vmem>>, %arg4: memref<32x32xbf16, #tpu.memory_space<vmem>>, %arg5: memref<1x32xf32, #tpu.memory_space<vmem>>, %arg6: memref<8x32xf32, #tpu.memory_space<vmem>>, %arg7: memref<8x32xf32, #tpu.memory_space<vmem>>) attributes {dimension_semantics = [#tpu.dimension_semantics<parallel>, #tpu.dimension_semantics<parallel>, #tpu.dimension_semantics<arbitrary>], iteration_bounds = array<i64: 2, 1, 1>, scalar_prefetch = 0 : i64, scratch_operands = 1 : i64, tpu.core_type = #tpu.core_type<tc>, window_params = [{transform_indices = @transform_0, window_bounds = array<i64: 8, 32>}, {transform_indices = @transform_1, window_bounds = array<i64: 32, 32>}, {transform_indices = @transform_2, window_bounds = array<i64: 1, 32>}, {transform_indices = @transform_3, window_bounds = array<i64: 8, 32>}]} {
    %c0_i32 = arith.constant 0 : i32
    %0 = arith.cmpi eq, %arg2, %c0_i32 : i32
    %1 = arith.extui %0 : i1 to i32
    %c0_i32_0 = arith.constant 0 : i32
    %2 = arith.cmpi ne, %1, %c0_i32_0 : i32
    scf.if %2 {
      %cst_10 = arith.constant 0.000000e+00 : f32
      %13 = vector.broadcast %cst_10 : f32 to vector<8x32xf32>
      %c0_11 = arith.constant 0 : index
      %c0_12 = arith.constant 0 : index
      %14 = vector.load %arg7[%c0_11, %c0_12] : memref<8x32xf32, #tpu.memory_space<vmem>>, vector<8x32xf32>
      tpu.vector_store %arg7[%c0_11, %c0_12], %13 {strides = array<i32>} : memref<8x32xf32, #tpu.memory_space<vmem>>, vector<8x32xf32>,
    } else {
    }
    %c0 = arith.constant 0 : index
    %c0_1 = arith.constant 0 : index
    %3 = vector.load %arg7[%c0, %c0_1] : memref<8x32xf32, #tpu.memory_space<vmem>>, vector<8x32xf32>
    %c0_2 = arith.constant 0 : index
    %c0_3 = arith.constant 0 : index
    %4 = vector.load %arg3[%c0_2, %c0_3] : memref<8x32xf32, #tpu.memory_space<vmem>>, vector<8x32xf32>
    %5 = arith.truncf %4 : vector<8x32xf32> to vector<8x32xbf16>
    %c0_4 = arith.constant 0 : index
    %c0_5 = arith.constant 0 : index
    %6 = vector.load %arg4[%c0_4, %c0_5] : memref<32x32xbf16, #tpu.memory_space<vmem>>, vector<32x32xbf16>
    %cst = arith.constant dense<0.000000e+00> : vector<8x32xf32>
    %7 = tpu.matmul %5, %6, %cst {dimension_numbers = #tpu.dot_dimension_numbers<[1], [0], [0], [1], [0, 0, 1, 1], [], []>} : vector<8x32xbf16>, vector<32x32xbf16>, vector<8x32xf32> -> vector<8x32xf32>
    %8 = arith.addf %3, %7 : vector<8x32xf32>
    %c0_6 = arith.constant 0 : index
    %c0_7 = arith.constant 0 : index
    %9 = vector.load %arg7[%c0_6, %c0_7] : memref<8x32xf32, #tpu.memory_space<vmem>>, vector<8x32xf32>
    tpu.vector_store %arg7[%c0_6, %c0_7], %8 {strides = array<i32>} : memref<8x32xf32, #tpu.memory_space<vmem>>, vector<8x32xf32>,
    %c0_i32_8 = arith.constant 0 : i32
    %10 = arith.cmpi eq, %arg2, %c0_i32_8 : i32
    %11 = arith.extui %10 : i1 to i32
    %c0_i32_9 = arith.constant 0 : i32
    %12 = arith.cmpi ne, %11, %c0_i32_9 : i32
    scf.if %12 {
      %c0_10 = arith.constant 0 : index
      %c0_11 = arith.constant 0 : index
      %13 = vector.load %arg7[%c0_10, %c0_11] : memref<8x32xf32, #tpu.memory_space<vmem>>, vector<8x32xf32>
      %c0_12 = arith.constant 0 : index
      %c0_13 = arith.constant 0 : index
      %14 = vector.load %arg5[%c0_12, %c0_13] : memref<1x32xf32, #tpu.memory_space<vmem>>, vector<1x32xf32>
      %15 = vector.broadcast %14 : vector<1x32xf32> to vector<8x32xf32>
      %16 = arith.addf %13, %15 : vector<8x32xf32>
      %cst_14 = arith.constant 0.000000e+00 : f32
      %17 = vector.broadcast %cst_14 : f32 to vector<8x32xf32>
      %18 = arith.maximumf %16, %17 : vector<8x32xf32>
      %c0_15 = arith.constant 0 : index
      %c0_16 = arith.constant 0 : index
      %19 = vector.load %arg6[%c0_15, %c0_16] : memref<8x32xf32, #tpu.memory_space<vmem>>, vector<8x32xf32>
      tpu.vector_store %arg6[%c0_15, %c0_16], %18 {strides = array<i32>} : memref<8x32xf32, #tpu.memory_space<vmem>>, vector<8x32xf32>,
    } else {
    }
    return
  }
  func.func @transform_0(%arg0: i32, %arg1: i32, %arg2: i32) -> (i32, i32) {
    %c0_i32 = arith.constant 0 : i32
    return %arg0, %arg2 : i32, i32
  }
  func.func @transform_1(%arg0: i32, %arg1: i32, %arg2: i32) -> (i32, i32) {
    %c0_i32 = arith.constant 0 : i32
    return %arg2, %arg1 : i32, i32
  }
  func.func @transform_2(%arg0: i32, %arg1: i32, %arg2: i32) -> (i32, i32) {
    %c0_i32 = arith.constant 0 : i32
    %c0_i32_0 = arith.constant 0 : i32
    return %c0_i32, %arg1 : i32, i32
  }
  func.func @transform_3(%arg0: i32, %arg1: i32, %arg2: i32) -> (i32, i32) {
    %c0_i32 = arith.constant 0 : i32
    return %arg0, %arg1 : i32, i32
  }
}

module attributes {stable_mosaic.version = 11 : i64} {
  func.func @_attention_kernel(%arg0: i32, %arg1: i32, %arg2: memref<1x8x32xf32, #tpu.memory_space<vmem>>, %arg3: memref<1x10x64xf32, #tpu.memory_space<vmem>>, %arg4: memref<1x1x10xf32, #tpu.memory_space<vmem>>, %arg5: memref<1x8x32xf32, #tpu.memory_space<vmem>>) attributes {dimension_semantics = [#tpu.dimension_semantics<parallel>, #tpu.dimension_semantics<parallel>], iteration_bounds = array<i64: 2, 1>, scalar_prefetch = 0 : i64, scratch_operands = 0 : i64, tpu.core_type = #tpu.core_type<tc>, window_params = [{transform_indices = @transform_0, window_bounds = array<i64: 1, 8, 32>}, {transform_indices = @transform_1, window_bounds = array<i64: 1, 10, 64>}, {transform_indices = @transform_2, window_bounds = array<i64: 1, 1, 10>}, {transform_indices = @transform_3, window_bounds = array<i64: 1, 8, 32>}]} {
    %c0 = arith.constant 0 : index
    %c0_0 = arith.constant 0 : index
    %c0_1 = arith.constant 0 : index
    %0 = vector.load %arg4[%c0, %c0_0, %c0_1] : memref<1x1x10xf32, #tpu.memory_space<vmem>>, vector<1x1x10xf32>
    %1 = vector.shape_cast %0 : vector<1x1x10xf32> to vector<1x10xf32>
    %cst = arith.constant 5.000000e-01 : f32
    %2 = vector.broadcast %cst : f32 to vector<1x10xf32>
    %3 = arith.cmpf ogt, %1, %2 : vector<1x10xf32>
    %c0_2 = arith.constant 0 : index
    %c0_3 = arith.constant 0 : index
    %c0_4 = arith.constant 0 : index
    %4 = vector.load %arg2[%c0_2, %c0_3, %c0_4] : memref<1x8x32xf32, #tpu.memory_space<vmem>>, vector<1x8x8xf32>
    %5 = vector.shape_cast %4 : vector<1x8x8xf32> to vector<8x8xf32>
    %6 = arith.truncf %5 : vector<8x8xf32> to vector<8x8xbf16>
    %c0_5 = arith.constant 0 : index
    %c0_6 = arith.constant 0 : index
    %c0_7 = arith.constant 0 : index
    %7 = vector.load %arg3[%c0_5, %c0_6, %c0_7] : memref<1x10x64xf32, #tpu.memory_space<vmem>>, vector<1x10x8xf32>
    %8 = vector.shape_cast %7 : vector<1x10x8xf32> to vector<10x8xf32>
    %9 = arith.truncf %8 : vector<10x8xf32> to vector<10x8xbf16>
    %c0_8 = arith.constant 0 : index
    %c0_9 = arith.constant 0 : index
    %c32 = arith.constant 32 : index
    %10 = vector.load %arg3[%c0_8, %c0_9, %c32] : memref<1x10x64xf32, #tpu.memory_space<vmem>>, vector<1x10x8xf32>
    %11 = vector.shape_cast %10 : vector<1x10x8xf32> to vector<10x8xf32>
    %12 = arith.truncf %11 : vector<10x8xf32> to vector<10x8xbf16>
    %cst_10 = arith.constant dense<0.000000e+00> : vector<8x10xf32>
    %13 = tpu.matmul %6, %9, %cst_10 {dimension_numbers = #tpu.dot_dimension_numbers<[1], [1], [0], [0], [0, 0, 1, 0], [], []>} : vector<8x8xbf16>, vector<10x8xbf16>, vector<8x10xf32> -> vector<8x10xf32>
    %cst_11 = arith.constant 0.353553385 : f32
    %14 = vector.broadcast %cst_11 : f32 to vector<8x10xf32>
    %15 = arith.mulf %13, %14 : vector<8x10xf32>
    %cst_12 = arith.constant -1.000000e+30 : f32
    %16 = vector.shape_cast %3 : vector<1x10xi1> to vector<1x10xi1>
    %17 = vector.broadcast %16 : vector<1x10xi1> to vector<8x10xi1>
    %18 = vector.broadcast %cst_12 : f32 to vector<8x10xf32>
    %19 = arith.select %17, %18, %15 : vector<8x10xi1>, vector<8x10xf32>
    %cst_13 = arith.constant dense<0xFF800000> : vector<8xf32>
    %20 = vector.multi_reduction <maximumf>, %19, %cst_13 [1] : vector<8x10xf32> to vector<8xf32>
    %21 = vector.shape_cast %20 : vector<8xf32> to vector<8x1xf32>
    %22 = vector.broadcast %21 : vector<8x1xf32> to vector<8x10xf32>
    %23 = arith.subf %19, %22 : vector<8x10xf32>
    %24 = math.exp %23 : vector<8x10xf32>
    %cst_14 = arith.constant dense<0.000000e+00> : vector<8xf32>
    %25 = vector.multi_reduction <add>, %24, %cst_14 [1] : vector<8x10xf32> to vector<8xf32>
    %26 = vector.shape_cast %25 : vector<8xf32> to vector<8x1xf32>
    %27 = vector.broadcast %26 : vector<8x1xf32> to vector<8x10xf32>
    %28 = arith.divf %24, %27 : vector<8x10xf32>
    %29 = arith.truncf %28 : vector<8x10xf32> to vector<8x10xbf16>
    %cst_15 = arith.constant dense<0.000000e+00> : vector<8x8xf32>
    %30 = tpu.matmul %29, %12, %cst_15 {dimension_numbers = #tpu.dot_dimension_numbers<[1], [0], [0], [1], [0, 0, 1, 1], [], []>} : vector<8x10xbf16>, vector<10x8xbf16>, vector<8x8xf32> -> vector<8x8xf32>
    %c0_16 = arith.constant 0 : index
    %c0_17 = arith.constant 0 : index
    %c0_18 = arith.constant 0 : index
    %31 = vector.load %arg5[%c0_16, %c0_17, %c0_18] : memref<1x8x32xf32, #tpu.memory_space<vmem>>, vector<1x8x8xf32>
    %32 = vector.shape_cast %31 : vector<1x8x8xf32> to vector<8x8xf32>
    %33 = vector.shape_cast %30 : vector<8x8xf32> to vector<1x8x8xf32>
    tpu.vector_store %arg5[%c0_16, %c0_17, %c0_18], %33 {strides = array<i32>} : memref<1x8x32xf32, #tpu.memory_space<vmem>>, vector<1x8x8xf32>,
    %c0_19 = arith.constant 0 : index
    %c0_20 = arith.constant 0 : index
    %c8 = arith.constant 8 : index
    %34 = vector.load %arg2[%c0_19, %c0_20, %c8] : memref<1x8x32xf32, #tpu.memory_space<vmem>>, vector<1x8x8xf32>
    %35 = vector.shape_cast %34 : vector<1x8x8xf32> to vector<8x8xf32>
    %36 = arith.truncf %35 : vector<8x8xf32> to vector<8x8xbf16>
    %c0_21 = arith.constant 0 : index
    %c0_22 = arith.constant 0 : index
    %c8_23 = arith.constant 8 : index
    %37 = vector.load %arg3[%c0_21, %c0_22, %c8_23] : memref<1x10x64xf32, #tpu.memory_space<vmem>>, vector<1x10x8xf32>
    %38 = vector.shape_cast %37 : vector<1x10x8xf32> to vector<10x8xf32>
    %39 = arith.truncf %38 : vector<10x8xf32> to vector<10x8xbf16>
    %c0_24 = arith.constant 0 : index
    %c0_25 = arith.constant 0 : index
    %c40 = arith.constant 40 : index
    %40 = vector.load %arg3[%c0_24, %c0_25, %c40] : memref<1x10x64xf32, #tpu.memory_space<vmem>>, vector<1x10x8xf32>
    %41 = vector.shape_cast %40 : vector<1x10x8xf32> to vector<10x8xf32>
    %42 = arith.truncf %41 : vector<10x8xf32> to vector<10x8xbf16>
    %cst_26 = arith.constant dense<0.000000e+00> : vector<8x10xf32>
    %43 = tpu.matmul %36, %39, %cst_26 {dimension_numbers = #tpu.dot_dimension_numbers<[1], [1], [0], [0], [0, 0, 1, 0], [], []>} : vector<8x8xbf16>, vector<10x8xbf16>, vector<8x10xf32> -> vector<8x10xf32>
    %cst_27 = arith.constant 0.353553385 : f32
    %44 = vector.broadcast %cst_27 : f32 to vector<8x10xf32>
    %45 = arith.mulf %43, %44 : vector<8x10xf32>
    %cst_28 = arith.constant -1.000000e+30 : f32
    %46 = vector.shape_cast %3 : vector<1x10xi1> to vector<1x10xi1>
    %47 = vector.broadcast %46 : vector<1x10xi1> to vector<8x10xi1>
    %48 = vector.broadcast %cst_28 : f32 to vector<8x10xf32>
    %49 = arith.select %47, %48, %45 : vector<8x10xi1>, vector<8x10xf32>
    %cst_29 = arith.constant dense<0xFF800000> : vector<8xf32>
    %50 = vector.multi_reduction <maximumf>, %49, %cst_29 [1] : vector<8x10xf32> to vector<8xf32>
    %51 = vector.shape_cast %50 : vector<8xf32> to vector<8x1xf32>
    %52 = vector.broadcast %51 : vector<8x1xf32> to vector<8x10xf32>
    %53 = arith.subf %49, %52 : vector<8x10xf32>
    %54 = math.exp %53 : vector<8x10xf32>
    %cst_30 = arith.constant dense<0.000000e+00> : vector<8xf32>
    %55 = vector.multi_reduction <add>, %54, %cst_30 [1] : vector<8x10xf32> to vector<8xf32>
    %56 = vector.shape_cast %55 : vector<8xf32> to vector<8x1xf32>
    %57 = vector.broadcast %56 : vector<8x1xf32> to vector<8x10xf32>
    %58 = arith.divf %54, %57 : vector<8x10xf32>
    %59 = arith.truncf %58 : vector<8x10xf32> to vector<8x10xbf16>
    %cst_31 = arith.constant dense<0.000000e+00> : vector<8x8xf32>
    %60 = tpu.matmul %59, %42, %cst_31 {dimension_numbers = #tpu.dot_dimension_numbers<[1], [0], [0], [1], [0, 0, 1, 1], [], []>} : vector<8x10xbf16>, vector<10x8xbf16>, vector<8x8xf32> -> vector<8x8xf32>
    %c0_32 = arith.constant 0 : index
    %c0_33 = arith.constant 0 : index
    %c8_34 = arith.constant 8 : index
    %61 = vector.load %arg5[%c0_32, %c0_33, %c8_34] : memref<1x8x32xf32, #tpu.memory_space<vmem>>, vector<1x8x8xf32>
    %62 = vector.shape_cast %61 : vector<1x8x8xf32> to vector<8x8xf32>
    %63 = vector.shape_cast %60 : vector<8x8xf32> to vector<1x8x8xf32>
    tpu.vector_store %arg5[%c0_32, %c0_33, %c8_34], %63 {strides = array<i32>} : memref<1x8x32xf32, #tpu.memory_space<vmem>>, vector<1x8x8xf32>,
    %c0_35 = arith.constant 0 : index
    %c0_36 = arith.constant 0 : index
    %c16 = arith.constant 16 : index
    %64 = vector.load %arg2[%c0_35, %c0_36, %c16] : memref<1x8x32xf32, #tpu.memory_space<vmem>>, vector<1x8x8xf32>
    %65 = vector.shape_cast %64 : vector<1x8x8xf32> to vector<8x8xf32>
    %66 = arith.truncf %65 : vector<8x8xf32> to vector<8x8xbf16>
    %c0_37 = arith.constant 0 : index
    %c0_38 = arith.constant 0 : index
    %c16_39 = arith.constant 16 : index
    %67 = vector.load %arg3[%c0_37, %c0_38, %c16_39] : memref<1x10x64xf32, #tpu.memory_space<vmem>>, vector<1x10x8xf32>
    %68 = vector.shape_cast %67 : vector<1x10x8xf32> to vector<10x8xf32>
    %69 = arith.truncf %68 : vector<10x8xf32> to vector<10x8xbf16>
    %c0_40 = arith.constant 0 : index
    %c0_41 = arith.constant 0 : index
    %c48 = arith.constant 48 : index
    %70 = vector.load %arg3[%c0_40, %c0_41, %c48] : memref<1x10x64xf32, #tpu.memory_space<vmem>>, vector<1x10x8xf32>
    %71 = vector.shape_cast %70 : vector<1x10x8xf32> to vector<10x8xf32>
    %72 = arith.truncf %71 : vector<10x8xf32> to vector<10x8xbf16>
    %cst_42 = arith.constant dense<0.000000e+00> : vector<8x10xf32>
    %73 = tpu.matmul %66, %69, %cst_42 {dimension_numbers = #tpu.dot_dimension_numbers<[1], [1], [0], [0], [0, 0, 1, 0], [], []>} : vector<8x8xbf16>, vector<10x8xbf16>, vector<8x10xf32> -> vector<8x10xf32>
    %cst_43 = arith.constant 0.353553385 : f32
    %74 = vector.broadcast %cst_43 : f32 to vector<8x10xf32>
    %75 = arith.mulf %73, %74 : vector<8x10xf32>
    %cst_44 = arith.constant -1.000000e+30 : f32
    %76 = vector.shape_cast %3 : vector<1x10xi1> to vector<1x10xi1>
    %77 = vector.broadcast %76 : vector<1x10xi1> to vector<8x10xi1>
    %78 = vector.broadcast %cst_44 : f32 to vector<8x10xf32>
    %79 = arith.select %77, %78, %75 : vector<8x10xi1>, vector<8x10xf32>
    %cst_45 = arith.constant dense<0xFF800000> : vector<8xf32>
    %80 = vector.multi_reduction <maximumf>, %79, %cst_45 [1] : vector<8x10xf32> to vector<8xf32>
    %81 = vector.shape_cast %80 : vector<8xf32> to vector<8x1xf32>
    %82 = vector.broadcast %81 : vector<8x1xf32> to vector<8x10xf32>
    %83 = arith.subf %79, %82 : vector<8x10xf32>
    %84 = math.exp %83 : vector<8x10xf32>
    %cst_46 = arith.constant dense<0.000000e+00> : vector<8xf32>
    %85 = vector.multi_reduction <add>, %84, %cst_46 [1] : vector<8x10xf32> to vector<8xf32>
    %86 = vector.shape_cast %85 : vector<8xf32> to vector<8x1xf32>
    %87 = vector.broadcast %86 : vector<8x1xf32> to vector<8x10xf32>
    %88 = arith.divf %84, %87 : vector<8x10xf32>
    %89 = arith.truncf %88 : vector<8x10xf32> to vector<8x10xbf16>
    %cst_47 = arith.constant dense<0.000000e+00> : vector<8x8xf32>
    %90 = tpu.matmul %89, %72, %cst_47 {dimension_numbers = #tpu.dot_dimension_numbers<[1], [0], [0], [1], [0, 0, 1, 1], [], []>} : vector<8x10xbf16>, vector<10x8xbf16>, vector<8x8xf32> -> vector<8x8xf32>
    %c0_48 = arith.constant 0 : index
    %c0_49 = arith.constant 0 : index
    %c16_50 = arith.constant 16 : index
    %91 = vector.load %arg5[%c0_48, %c0_49, %c16_50] : memref<1x8x32xf32, #tpu.memory_space<vmem>>, vector<1x8x8xf32>
    %92 = vector.shape_cast %91 : vector<1x8x8xf32> to vector<8x8xf32>
    %93 = vector.shape_cast %90 : vector<8x8xf32> to vector<1x8x8xf32>
    tpu.vector_store %arg5[%c0_48, %c0_49, %c16_50], %93 {strides = array<i32>} : memref<1x8x32xf32, #tpu.memory_space<vmem>>, vector<1x8x8xf32>,
    %c0_51 = arith.constant 0 : index
    %c0_52 = arith.constant 0 : index
    %c24 = arith.constant 24 : index
    %94 = vector.load %arg2[%c0_51, %c0_52, %c24] : memref<1x8x32xf32, #tpu.memory_space<vmem>>, vector<1x8x8xf32>
    %95 = vector.shape_cast %94 : vector<1x8x8xf32> to vector<8x8xf32>
    %96 = arith.truncf %95 : vector<8x8xf32> to vector<8x8xbf16>
    %c0_53 = arith.constant 0 : index
    %c0_54 = arith.constant 0 : index
    %c24_55 = arith.constant 24 : index
    %97 = vector.load %arg3[%c0_53, %c0_54, %c24_55] : memref<1x10x64xf32, #tpu.memory_space<vmem>>, vector<1x10x8xf32>
    %98 = vector.shape_cast %97 : vector<1x10x8xf32> to vector<10x8xf32>
    %99 = arith.truncf %98 : vector<10x8xf32> to vector<10x8xbf16>
    %c0_56 = arith.constant 0 : index
    %c0_57 = arith.constant 0 : index
    %c56 = arith.constant 56 : index
    %100 = vector.load %arg3[%c0_56, %c0_57, %c56] : memref<1x10x64xf32, #tpu.memory_space<vmem>>, vector<1x10x8xf32>
    %101 = vector.shape_cast %100 : vector<1x10x8xf32> to vector<10x8xf32>
    %102 = arith.truncf %101 : vector<10x8xf32> to vector<10x8xbf16>
    %cst_58 = arith.constant dense<0.000000e+00> : vector<8x10xf32>
    %103 = tpu.matmul %96, %99, %cst_58 {dimension_numbers = #tpu.dot_dimension_numbers<[1], [1], [0], [0], [0, 0, 1, 0], [], []>} : vector<8x8xbf16>, vector<10x8xbf16>, vector<8x10xf32> -> vector<8x10xf32>
    %cst_59 = arith.constant 0.353553385 : f32
    %104 = vector.broadcast %cst_59 : f32 to vector<8x10xf32>
    %105 = arith.mulf %103, %104 : vector<8x10xf32>
    %cst_60 = arith.constant -1.000000e+30 : f32
    %106 = vector.shape_cast %3 : vector<1x10xi1> to vector<1x10xi1>
    %107 = vector.broadcast %106 : vector<1x10xi1> to vector<8x10xi1>
    %108 = vector.broadcast %cst_60 : f32 to vector<8x10xf32>
    %109 = arith.select %107, %108, %105 : vector<8x10xi1>, vector<8x10xf32>
    %cst_61 = arith.constant dense<0xFF800000> : vector<8xf32>
    %110 = vector.multi_reduction <maximumf>, %109, %cst_61 [1] : vector<8x10xf32> to vector<8xf32>
    %111 = vector.shape_cast %110 : vector<8xf32> to vector<8x1xf32>
    %112 = vector.broadcast %111 : vector<8x1xf32> to vector<8x10xf32>
    %113 = arith.subf %109, %112 : vector<8x10xf32>
    %114 = math.exp %113 : vector<8x10xf32>
    %cst_62 = arith.constant dense<0.000000e+00> : vector<8xf32>
    %115 = vector.multi_reduction <add>, %114, %cst_62 [1] : vector<8x10xf32> to vector<8xf32>
    %116 = vector.shape_cast %115 : vector<8xf32> to vector<8x1xf32>
    %117 = vector.broadcast %116 : vector<8x1xf32> to vector<8x10xf32>
    %118 = arith.divf %114, %117 : vector<8x10xf32>
    %119 = arith.truncf %118 : vector<8x10xf32> to vector<8x10xbf16>
    %cst_63 = arith.constant dense<0.000000e+00> : vector<8x8xf32>
    %120 = tpu.matmul %119, %102, %cst_63 {dimension_numbers = #tpu.dot_dimension_numbers<[1], [0], [0], [1], [0, 0, 1, 1], [], []>} : vector<8x10xbf16>, vector<10x8xbf16>, vector<8x8xf32> -> vector<8x8xf32>
    %c0_64 = arith.constant 0 : index
    %c0_65 = arith.constant 0 : index
    %c24_66 = arith.constant 24 : index
    %121 = vector.load %arg5[%c0_64, %c0_65, %c24_66] : memref<1x8x32xf32, #tpu.memory_space<vmem>>, vector<1x8x8xf32>
    %122 = vector.shape_cast %121 : vector<1x8x8xf32> to vector<8x8xf32>
    %123 = vector.shape_cast %120 : vector<8x8xf32> to vector<1x8x8xf32>
    tpu.vector_store %arg5[%c0_64, %c0_65, %c24_66], %123 {strides = array<i32>} : memref<1x8x32xf32, #tpu.memory_space<vmem>>, vector<1x8x8xf32>,
    return
  }
  func.func @transform_0(%arg0: i32, %arg1: i32) -> (i32, i32, i32) {
    %c0_i32 = arith.constant 0 : i32
    %c0_i32_0 = arith.constant 0 : i32
    return %arg0, %arg1, %c0_i32 : i32, i32, i32
  }
  func.func @transform_1(%arg0: i32, %arg1: i32) -> (i32, i32, i32) {
    %c0_i32 = arith.constant 0 : i32
    %c0_i32_0 = arith.constant 0 : i32
    %c0_i32_1 = arith.constant 0 : i32
    return %arg0, %c0_i32, %c0_i32_0 : i32, i32, i32
  }
  func.func @transform_2(%arg0: i32, %arg1: i32) -> (i32, i32, i32) {
    %c0_i32 = arith.constant 0 : i32
    %c0_i32_0 = arith.constant 0 : i32
    %c0_i32_1 = arith.constant 0 : i32
    return %arg0, %c0_i32, %c0_i32_0 : i32, i32, i32
  }
  func.func @transform_3(%arg0: i32, %arg1: i32) -> (i32, i32, i32) {
    %c0_i32 = arith.constant 0 : i32
    %c0_i32_0 = arith.constant 0 : i32
    return %arg0, %arg1, %c0_i32 : i32, i32, i32
  }
}

module attributes {stable_mosaic.version = 11 : i64} {
  func.func @_attention_kernel(%arg0: i32, %arg1: i32, %arg2: memref<1x8x32xf32, #tpu.memory_space<vmem>>, %arg3: memref<1x10x64xf32, #tpu.memory_space<vmem>>, %arg4: memref<1x1x10xf32, #tpu.memory_space<vmem>>, %arg5: memref<1x8x32xf32, #tpu.memory_space<vmem>>, %arg6: memref<1x8x10xf32, #tpu.memory_space<vmem>>) attributes {dimension_semantics = [#tpu.dimension_semantics<parallel>, #tpu.dimension_semantics<parallel>], iteration_bounds = array<i64: 2, 1>, scalar_prefetch = 0 : i64, scratch_operands = 0 : i64, tpu.core_type = #tpu.core_type<tc>, window_params = [{transform_indices = @transform_0, window_bounds = array<i64: 1, 8, 32>}, {transform_indices = @transform_1, window_bounds = array<i64: 1, 10, 64>}, {transform_indices = @transform_2, window_bounds = array<i64: 1, 1, 10>}, {transform_indices = @transform_3, window_bounds = array<i64: 1, 8, 32>}, {transform_indices = @transform_4, window_bounds = array<i64: 1, 8, 10>}]} {
    %c0 = arith.constant 0 : index
    %c0_0 = arith.constant 0 : index
    %c0_1 = arith.constant 0 : index
    %0 = vector.load %arg4[%c0, %c0_0, %c0_1] : memref<1x1x10xf32, #tpu.memory_space<vmem>>, vector<1x1x10xf32>
    %1 = vector.shape_cast %0 : vector<1x1x10xf32> to vector<1x10xf32>
    %cst = arith.constant 5.000000e-01 : f32
    %2 = vector.broadcast %cst : f32 to vector<1x10xf32>
    %3 = arith.cmpf ogt, %1, %2 : vector<1x10xf32>
    %c0_2 = arith.constant 0 : index
    %c0_3 = arith.constant 0 : index
    %c0_4 = arith.constant 0 : index
    %4 = vector.load %arg2[%c0_2, %c0_3, %c0_4] : memref<1x8x32xf32, #tpu.memory_space<vmem>>, vector<1x8x8xf32>
    %5 = vector.shape_cast %4 : vector<1x8x8xf32> to vector<8x8xf32>
    %6 = arith.truncf %5 : vector<8x8xf32> to vector<8x8xbf16>
    %c0_5 = arith.constant 0 : index
    %c0_6 = arith.constant 0 : index
    %c0_7 = arith.constant 0 : index
    %7 = vector.load %arg3[%c0_5, %c0_6, %c0_7] : memref<1x10x64xf32, #tpu.memory_space<vmem>>, vector<1x10x8xf32>
    %8 = vector.shape_cast %7 : vector<1x10x8xf32> to vector<10x8xf32>
    %9 = arith.truncf %8 : vector<10x8xf32> to vector<10x8xbf16>
    %c0_8 = arith.constant 0 : index
    %c0_9 = arith.constant 0 : index
    %c32 = arith.constant 32 : index
    %10 = vector.load %arg3[%c0_8, %c0_9, %c32] : memref<1x10x64xf32, #tpu.memory_space<vmem>>, vector<1x10x8xf32>
    %11 = vector.shape_cast %10 : vector<1x10x8xf32> to vector<10x8xf32>
    %12 = arith.truncf %11 : vector<10x8xf32> to vector<10x8xbf16>
    %cst_10 = arith.constant dense<0.000000e+00> : vector<8x10xf32>
    %13 = tpu.matmul %6, %9, %cst_10 {dimension_numbers = #tpu.dot_dimension_numbers<[1], [1], [0], [0], [0, 0, 1, 0], [], []>} : vector<8x8xbf16>, vector<10x8xbf16>, vector<8x10xf32> -> vector<8x10xf32>
    %cst_11 = arith.constant 0.353553385 : f32
    %14 = vector.broadcast %cst_11 : f32 to vector<8x10xf32>
    %15 = arith.mulf %13, %14 : vector<8x10xf32>
    %cst_12 = arith.constant -1.000000e+30 : f32
    %16 = vector.shape_cast %3 : vector<1x10xi1> to vector<1x10xi1>
    %17 = vector.broadcast %16 : vector<1x10xi1> to vector<8x10xi1>
    %18 = vector.broadcast %cst_12 : f32 to vector<8x10xf32>
    %19 = arith.select %17, %18, %15 : vector<8x10xi1>, vector<8x10xf32>
    %cst_13 = arith.constant dense<0xFF800000> : vector<8xf32>
    %20 = vector.multi_reduction <maximumf>, %19, %cst_13 [1] : vector<8x10xf32> to vector<8xf32>
    %21 = vector.shape_cast %20 : vector<8xf32> to vector<8x1xf32>
    %22 = vector.broadcast %21 : vector<8x1xf32> to vector<8x10xf32>
    %23 = arith.subf %19, %22 : vector<8x10xf32>
    %24 = math.exp %23 : vector<8x10xf32>
    %cst_14 = arith.constant dense<0.000000e+00> : vector<8xf32>
    %25 = vector.multi_reduction <add>, %24, %cst_14 [1] : vector<8x10xf32> to vector<8xf32>
    %26 = vector.shape_cast %25 : vector<8xf32> to vector<8x1xf32>
    %27 = vector.broadcast %26 : vector<8x1xf32> to vector<8x10xf32>
    %28 = arith.divf %24, %27 : vector<8x10xf32>
    %29 = arith.truncf %28 : vector<8x10xf32> to vector<8x10xbf16>
    %cst_15 = arith.constant dense<0.000000e+00> : vector<8x8xf32>
    %30 = tpu.matmul %29, %12, %cst_15 {dimension_numbers = #tpu.dot_dimension_numbers<[1], [0], [0], [1], [0, 0, 1, 1], [], []>} : vector<8x10xbf16>, vector<10x8xbf16>, vector<8x8xf32> -> vector<8x8xf32>
    %c0_16 = arith.constant 0 : index
    %c0_17 = arith.constant 0 : index
    %c0_18 = arith.constant 0 : index
    %31 = vector.load %arg5[%c0_16, %c0_17, %c0_18] : memref<1x8x32xf32, #tpu.memory_space<vmem>>, vector<1x8x8xf32>
    %32 = vector.shape_cast %31 : vector<1x8x8xf32> to vector<8x8xf32>
    %33 = vector.shape_cast %30 : vector<8x8xf32> to vector<1x8x8xf32>
    tpu.vector_store %arg5[%c0_16, %c0_17, %c0_18], %33 {strides = array<i32>} : memref<1x8x32xf32, #tpu.memory_space<vmem>>, vector<1x8x8xf32>,
    %c0_19 = arith.constant 0 : index
    %c0_20 = arith.constant 0 : index
    %c8 = arith.constant 8 : index
    %34 = vector.load %arg2[%c0_19, %c0_20, %c8] : memref<1x8x32xf32, #tpu.memory_space<vmem>>, vector<1x8x8xf32>
    %35 = vector.shape_cast %34 : vector<1x8x8xf32> to vector<8x8xf32>
    %36 = arith.truncf %35 : vector<8x8xf32> to vector<8x8xbf16>
    %c0_21 = arith.constant 0 : index
    %c0_22 = arith.constant 0 : index
    %c8_23 = arith.constant 8 : index
    %37 = vector.load %arg3[%c0_21, %c0_22, %c8_23] : memref<1x10x64xf32, #tpu.memory_space<vmem>>, vector<1x10x8xf32>
    %38 = vector.shape_cast %37 : vector<1x10x8xf32> to vector<10x8xf32>
    %39 = arith.truncf %38 : vector<10x8xf32> to vector<10x8xbf16>
    %c0_24 = arith.constant 0 : index
    %c0_25 = arith.constant 0 : index
    %c40 = arith.constant 40 : index
    %40 = vector.load %arg3[%c0_24, %c0_25, %c40] : memref<1x10x64xf32, #tpu.memory_space<vmem>>, vector<1x10x8xf32>
    %41 = vector.shape_cast %40 : vector<1x10x8xf32> to vector<10x8xf32>
    %42 = arith.truncf %41 : vector<10x8xf32> to vector<10x8xbf16>
    %cst_26 = arith.constant dense<0.000000e+00> : vector<8x10xf32>
    %43 = tpu.matmul %36, %39, %cst_26 {dimension_numbers = #tpu.dot_dimension_numbers<[1], [1], [0], [0], [0, 0, 1, 0], [], []>} : vector<8x8xbf16>, vector<10x8xbf16>, vector<8x10xf32> -> vector<8x10xf32>
    %cst_27 = arith.constant 0.353553385 : f32
    %44 = vector.broadcast %cst_27 : f32 to vector<8x10xf32>
    %45 = arith.mulf %43, %44 : vector<8x10xf32>
    %cst_28 = arith.constant -1.000000e+30 : f32
    %46 = vector.shape_cast %3 : vector<1x10xi1> to vector<1x10xi1>
    %47 = vector.broadcast %46 : vector<1x10xi1> to vector<8x10xi1>
    %48 = vector.broadcast %cst_28 : f32 to vector<8x10xf32>
    %49 = arith.select %47, %48, %45 : vector<8x10xi1>, vector<8x10xf32>
    %cst_29 = arith.constant dense<0xFF800000> : vector<8xf32>
    %50 = vector.multi_reduction <maximumf>, %49, %cst_29 [1] : vector<8x10xf32> to vector<8xf32>
    %51 = vector.shape_cast %50 : vector<8xf32> to vector<8x1xf32>
    %52 = vector.broadcast %51 : vector<8x1xf32> to vector<8x10xf32>
    %53 = arith.subf %49, %52 : vector<8x10xf32>
    %54 = math.exp %53 : vector<8x10xf32>
    %cst_30 = arith.constant dense<0.000000e+00> : vector<8xf32>
    %55 = vector.multi_reduction <add>, %54, %cst_30 [1] : vector<8x10xf32> to vector<8xf32>
    %56 = vector.shape_cast %55 : vector<8xf32> to vector<8x1xf32>
    %57 = vector.broadcast %56 : vector<8x1xf32> to vector<8x10xf32>
    %58 = arith.divf %54, %57 : vector<8x10xf32>
    %59 = arith.truncf %58 : vector<8x10xf32> to vector<8x10xbf16>
    %cst_31 = arith.constant dense<0.000000e+00> : vector<8x8xf32>
    %60 = tpu.matmul %59, %42, %cst_31 {dimension_numbers = #tpu.dot_dimension_numbers<[1], [0], [0], [1], [0, 0, 1, 1], [], []>} : vector<8x10xbf16>, vector<10x8xbf16>, vector<8x8xf32> -> vector<8x8xf32>
    %c0_32 = arith.constant 0 : index
    %c0_33 = arith.constant 0 : index
    %c8_34 = arith.constant 8 : index
    %61 = vector.load %arg5[%c0_32, %c0_33, %c8_34] : memref<1x8x32xf32, #tpu.memory_space<vmem>>, vector<1x8x8xf32>
    %62 = vector.shape_cast %61 : vector<1x8x8xf32> to vector<8x8xf32>
    %63 = vector.shape_cast %60 : vector<8x8xf32> to vector<1x8x8xf32>
    tpu.vector_store %arg5[%c0_32, %c0_33, %c8_34], %63 {strides = array<i32>} : memref<1x8x32xf32, #tpu.memory_space<vmem>>, vector<1x8x8xf32>,
    %64 = arith.addf %28, %58 : vector<8x10xf32>
    %c0_35 = arith.constant 0 : index
    %c0_36 = arith.constant 0 : index
    %c16 = arith.constant 16 : index
    %65 = vector.load %arg2[%c0_35, %c0_36, %c16] : memref<1x8x32xf32, #tpu.memory_space<vmem>>, vector<1x8x8xf32>
    %66 = vector.shape_cast %65 : vector<1x8x8xf32> to vector<8x8xf32>
    %67 = arith.truncf %66 : vector<8x8xf32> to vector<8x8xbf16>
    %c0_37 = arith.constant 0 : index
    %c0_38 = arith.constant 0 : index
    %c16_39 = arith.constant 16 : index
    %68 = vector.load %arg3[%c0_37, %c0_38, %c16_39] : memref<1x10x64xf32, #tpu.memory_space<vmem>>, vector<1x10x8xf32>
    %69 = vector.shape_cast %68 : vector<1x10x8xf32> to vector<10x8xf32>
    %70 = arith.truncf %69 : vector<10x8xf32> to vector<10x8xbf16>
    %c0_40 = arith.constant 0 : index
    %c0_41 = arith.constant 0 : index
    %c48 = arith.constant 48 : index
    %71 = vector.load %arg3[%c0_40, %c0_41, %c48] : memref<1x10x64xf32, #tpu.memory_space<vmem>>, vector<1x10x8xf32>
    %72 = vector.shape_cast %71 : vector<1x10x8xf32> to vector<10x8xf32>
    %73 = arith.truncf %72 : vector<10x8xf32> to vector<10x8xbf16>
    %cst_42 = arith.constant dense<0.000000e+00> : vector<8x10xf32>
    %74 = tpu.matmul %67, %70, %cst_42 {dimension_numbers = #tpu.dot_dimension_numbers<[1], [1], [0], [0], [0, 0, 1, 0], [], []>} : vector<8x8xbf16>, vector<10x8xbf16>, vector<8x10xf32> -> vector<8x10xf32>
    %cst_43 = arith.constant 0.353553385 : f32
    %75 = vector.broadcast %cst_43 : f32 to vector<8x10xf32>
    %76 = arith.mulf %74, %75 : vector<8x10xf32>
    %cst_44 = arith.constant -1.000000e+30 : f32
    %77 = vector.shape_cast %3 : vector<1x10xi1> to vector<1x10xi1>
    %78 = vector.broadcast %77 : vector<1x10xi1> to vector<8x10xi1>
    %79 = vector.broadcast %cst_44 : f32 to vector<8x10xf32>
    %80 = arith.select %78, %79, %76 : vector<8x10xi1>, vector<8x10xf32>
    %cst_45 = arith.constant dense<0xFF800000> : vector<8xf32>
    %81 = vector.multi_reduction <maximumf>, %80, %cst_45 [1] : vector<8x10xf32> to vector<8xf32>
    %82 = vector.shape_cast %81 : vector<8xf32> to vector<8x1xf32>
    %83 = vector.broadcast %82 : vector<8x1xf32> to vector<8x10xf32>
    %84 = arith.subf %80, %83 : vector<8x10xf32>
    %85 = math.exp %84 : vector<8x10xf32>
    %cst_46 = arith.constant dense<0.000000e+00> : vector<8xf32>
    %86 = vector.multi_reduction <add>, %85, %cst_46 [1] : vector<8x10xf32> to vector<8xf32>
    %87 = vector.shape_cast %86 : vector<8xf32> to vector<8x1xf32>
    %88 = vector.broadcast %87 : vector<8x1xf32> to vector<8x10xf32>
    %89 = arith.divf %85, %88 : vector<8x10xf32>
    %90 = arith.truncf %89 : vector<8x10xf32> to vector<8x10xbf16>
    %cst_47 = arith.constant dense<0.000000e+00> : vector<8x8xf32>
    %91 = tpu.matmul %90, %73, %cst_47 {dimension_numbers = #tpu.dot_dimension_numbers<[1], [0], [0], [1], [0, 0, 1, 1], [], []>} : vector<8x10xbf16>, vector<10x8xbf16>, vector<8x8xf32> -> vector<8x8xf32>
    %c0_48 = arith.constant 0 : index
    %c0_49 = arith.constant 0 : index
    %c16_50 = arith.constant 16 : index
    %92 = vector.load %arg5[%c0_48, %c0_49, %c16_50] : memref<1x8x32xf32, #tpu.memory_space<vmem>>, vector<1x8x8xf32>
    %93 = vector.shape_cast %92 : vector<1x8x8xf32> to vector<8x8xf32>
    %94 = vector.shape_cast %91 : vector<8x8xf32> to vector<1x8x8xf32>
    tpu.vector_store %arg5[%c0_48, %c0_49, %c16_50], %94 {strides = array<i32>} : memref<1x8x32xf32, #tpu.memory_space<vmem>>, vector<1x8x8xf32>,
    %95 = arith.addf %64, %89 : vector<8x10xf32>
    %c0_51 = arith.constant 0 : index
    %c0_52 = arith.constant 0 : index
    %c24 = arith.constant 24 : index
    %96 = vector.load %arg2[%c0_51, %c0_52, %c24] : memref<1x8x32xf32, #tpu.memory_space<vmem>>, vector<1x8x8xf32>
    %97 = vector.shape_cast %96 : vector<1x8x8xf32> to vector<8x8xf32>
    %98 = arith.truncf %97 : vector<8x8xf32> to vector<8x8xbf16>
    %c0_53 = arith.constant 0 : index
    %c0_54 = arith.constant 0 : index
    %c24_55 = arith.constant 24 : index
    %99 = vector.load %arg3[%c0_53, %c0_54, %c24_55] : memref<1x10x64xf32, #tpu.memory_space<vmem>>, vector<1x10x8xf32>
    %100 = vector.shape_cast %99 : vector<1x10x8xf32> to vector<10x8xf32>
    %101 = arith.truncf %100 : vector<10x8xf32> to vector<10x8xbf16>
    %c0_56 = arith.constant 0 : index
    %c0_57 = arith.constant 0 : index
    %c56 = arith.constant 56 : index
    %102 = vector.load %arg3[%c0_56, %c0_57, %c56] : memref<1x10x64xf32, #tpu.memory_space<vmem>>, vector<1x10x8xf32>
    %103 = vector.shape_cast %102 : vector<1x10x8xf32> to vector<10x8xf32>
    %104 = arith.truncf %103 : vector<10x8xf32> to vector<10x8xbf16>
    %cst_58 = arith.constant dense<0.000000e+00> : vector<8x10xf32>
    %105 = tpu.matmul %98, %101, %cst_58 {dimension_numbers = #tpu.dot_dimension_numbers<[1], [1], [0], [0], [0, 0, 1, 0], [], []>} : vector<8x8xbf16>, vector<10x8xbf16>, vector<8x10xf32> -> vector<8x10xf32>
    %cst_59 = arith.constant 0.353553385 : f32
    %106 = vector.broadcast %cst_59 : f32 to vector<8x10xf32>
    %107 = arith.mulf %105, %106 : vector<8x10xf32>
    %cst_60 = arith.constant -1.000000e+30 : f32
    %108 = vector.shape_cast %3 : vector<1x10xi1> to vector<1x10xi1>
    %109 = vector.broadcast %108 : vector<1x10xi1> to vector<8x10xi1>
    %110 = vector.broadcast %cst_60 : f32 to vector<8x10xf32>
    %111 = arith.select %109, %110, %107 : vector<8x10xi1>, vector<8x10xf32>
    %cst_61 = arith.constant dense<0xFF800000> : vector<8xf32>
    %112 = vector.multi_reduction <maximumf>, %111, %cst_61 [1] : vector<8x10xf32> to vector<8xf32>
    %113 = vector.shape_cast %112 : vector<8xf32> to vector<8x1xf32>
    %114 = vector.broadcast %113 : vector<8x1xf32> to vector<8x10xf32>
    %115 = arith.subf %111, %114 : vector<8x10xf32>
    %116 = math.exp %115 : vector<8x10xf32>
    %cst_62 = arith.constant dense<0.000000e+00> : vector<8xf32>
    %117 = vector.multi_reduction <add>, %116, %cst_62 [1] : vector<8x10xf32> to vector<8xf32>
    %118 = vector.shape_cast %117 : vector<8xf32> to vector<8x1xf32>
    %119 = vector.broadcast %118 : vector<8x1xf32> to vector<8x10xf32>
    %120 = arith.divf %116, %119 : vector<8x10xf32>
    %121 = arith.truncf %120 : vector<8x10xf32> to vector<8x10xbf16>
    %cst_63 = arith.constant dense<0.000000e+00> : vector<8x8xf32>
    %122 = tpu.matmul %121, %104, %cst_63 {dimension_numbers = #tpu.dot_dimension_numbers<[1], [0], [0], [1], [0, 0, 1, 1], [], []>} : vector<8x10xbf16>, vector<10x8xbf16>, vector<8x8xf32> -> vector<8x8xf32>
    %c0_64 = arith.constant 0 : index
    %c0_65 = arith.constant 0 : index
    %c24_66 = arith.constant 24 : index
    %123 = vector.load %arg5[%c0_64, %c0_65, %c24_66] : memref<1x8x32xf32, #tpu.memory_space<vmem>>, vector<1x8x8xf32>
    %124 = vector.shape_cast %123 : vector<1x8x8xf32> to vector<8x8xf32>
    %125 = vector.shape_cast %122 : vector<8x8xf32> to vector<1x8x8xf32>
    tpu.vector_store %arg5[%c0_64, %c0_65, %c24_66], %125 {strides = array<i32>} : memref<1x8x32xf32, #tpu.memory_space<vmem>>, vector<1x8x8xf32>,
    %126 = arith.addf %95, %120 : vector<8x10xf32>
    %cst_67 = arith.constant 2.500000e-01 : f32
    %127 = vector.broadcast %cst_67 : f32 to vector<8x10xf32>
    %128 = arith.mulf %126, %127 : vector<8x10xf32>
    %c0_68 = arith.constant 0 : index
    %c0_69 = arith.constant 0 : index
    %c0_70 = arith.constant 0 : index
    %129 = vector.load %arg6[%c0_68, %c0_69, %c0_70] : memref<1x8x10xf32, #tpu.memory_space<vmem>>, vector<1x8x10xf32>
    %130 = vector.shape_cast %129 : vector<1x8x10xf32> to vector<8x10xf32>
    %131 = vector.shape_cast %128 : vector<8x10xf32> to vector<1x8x10xf32>
    tpu.vector_store %arg6[%c0_68, %c0_69, %c0_70], %131 {strides = array<i32>} : memref<1x8x10xf32, #tpu.memory_space<vmem>>, vector<1x8x10xf32>,
    return
  }
  func.func @transform_0(%arg0: i32, %arg1: i32) -> (i32, i32, i32) {
    %c0_i32 = arith.constant 0 : i32
    %c0_i32_0 = arith.constant 0 : i32
    return %arg0, %arg1, %c0_i32 : i32, i32, i32
  }
  func.func @transform_1(%arg0: i32, %arg1: i32) -> (i32, i32, i32) {
    %c0_i32 = arith.constant 0 : i32
    %c0_i32_0 = arith.constant 0 : i32
    %c0_i32_1 = arith.constant 0 : i32
    return %arg0, %c0_i32, %c0_i32_0 : i32, i32, i32
  }
  func.func @transform_2(%arg0: i32, %arg1: i32) -> (i32, i32, i32) {
    %c0_i32 = arith.constant 0 : i32
    %c0_i32_0 = arith.constant 0 : i32
    %c0_i32_1 = arith.constant 0 : i32
    return %arg0, %c0_i32, %c0_i32_0 : i32, i32, i32
  }
  func.func @transform_3(%arg0: i32, %arg1: i32) -> (i32, i32, i32) {
    %c0_i32 = arith.constant 0 : i32
    %c0_i32_0 = arith.constant 0 : i32
    return %arg0, %arg1, %c0_i32 : i32, i32, i32
  }
  func.func @transform_4(%arg0: i32, %arg1: i32) -> (i32, i32, i32) {
    %c0_i32 = arith.constant 0 : i32
    %c0_i32_0 = arith.constant 0 : i32
    return %arg0, %arg1, %c0_i32 : i32, i32, i32
  }
}

module attributes {stable_mosaic.version = 11 : i64} {
  func.func @_sub_lse_kernel(%arg0: i32, %arg1: i32, %arg2: memref<8x16xf32, #tpu.memory_space<vmem>>, %arg3: memref<8x1xf32, #tpu.memory_space<vmem>>, %arg4: memref<8x16xf32, #tpu.memory_space<vmem>>) attributes {dimension_semantics = [#tpu.dimension_semantics<parallel>, #tpu.dimension_semantics<parallel>], iteration_bounds = array<i64: 2, 1>, scalar_prefetch = 0 : i64, scratch_operands = 0 : i64, tpu.core_type = #tpu.core_type<tc>, window_params = [{transform_indices = @transform_0, window_bounds = array<i64: 8, 16>}, {transform_indices = @transform_1, window_bounds = array<i64: 8, 1>}, {transform_indices = @transform_2, window_bounds = array<i64: 8, 16>}]} {
    %c0 = arith.constant 0 : index
    %c0_0 = arith.constant 0 : index
    %0 = vector.load %arg2[%c0, %c0_0] : memref<8x16xf32, #tpu.memory_space<vmem>>, vector<8x16xf32>
    %c0_1 = arith.constant 0 : index
    %c0_2 = arith.constant 0 : index
    %1 = vector.load %arg3[%c0_1, %c0_2] : memref<8x1xf32, #tpu.memory_space<vmem>>, vector<8x1xf32>
    %2 = vector.broadcast %1 : vector<8x1xf32> to vector<8x16xf32>
    %3 = arith.subf %0, %2 : vector<8x16xf32>
    %c0_3 = arith.constant 0 : index
    %c0_4 = arith.constant 0 : index
    %4 = vector.load %arg4[%c0_3, %c0_4] : memref<8x16xf32, #tpu.memory_space<vmem>>, vector<8x16xf32>
    tpu.vector_store %arg4[%c0_3, %c0_4], %3 {strides = array<i32>} : memref<8x16xf32, #tpu.memory_space<vmem>>, vector<8x16xf32>,
    return
  }
  func.func @transform_0(%arg0: i32, %arg1: i32) -> (i32, i32) {
    %c0_i32 = arith.constant 0 : i32
    return %arg0, %arg1 : i32, i32
  }
  func.func @transform_1(%arg0: i32, %arg1: i32) -> (i32, i32) {
    %c0_i32 = arith.constant 0 : i32
    %c0_i32_0 = arith.constant 0 : i32
    return %arg0, %c0_i32 : i32, i32
  }
  func.func @transform_2(%arg0: i32, %arg1: i32) -> (i32, i32) {
    %c0_i32 = arith.constant 0 : i32
    return %arg0, %arg1 : i32, i32
  }
}

module attributes {stable_mosaic.version = 11 : i64} {
  func.func @_logits_lse_kernel(%arg0: i32, %arg1: i32, %arg2: i32, %arg3: memref<8x32xf32, #tpu.memory_space<vmem>>, %arg4: memref<32x16xbf16, #tpu.memory_space<vmem>>, %arg5: memref<1x16xf32, #tpu.memory_space<vmem>>, %arg6: memref<8x16xf32, #tpu.memory_space<vmem>>, %arg7: memref<8x1xf32, #tpu.memory_space<vmem>>, %arg8: memref<8x16xf32, #tpu.memory_space<vmem>>, %arg9: memref<8x1xf32, #tpu.memory_space<vmem>>, %arg10: memref<8x1xf32, #tpu.memory_space<vmem>>) attributes {dimension_semantics = [#tpu.dimension_semantics<parallel>, #tpu.dimension_semantics<arbitrary>, #tpu.dimension_semantics<arbitrary>], iteration_bounds = array<i64: 2, 1, 1>, scalar_prefetch = 0 : i64, scratch_operands = 3 : i64, tpu.core_type = #tpu.core_type<tc>, window_params = [{transform_indices = @transform_0, window_bounds = array<i64: 8, 32>}, {transform_indices = @transform_1, window_bounds = array<i64: 32, 16>}, {transform_indices = @transform_2, window_bounds = array<i64: 1, 16>}, {transform_indices = @transform_3, window_bounds = array<i64: 8, 16>}, {transform_indices = @transform_4, window_bounds = array<i64: 8, 1>}]} {
    %c0_i32 = arith.constant 0 : i32
    %0 = arith.cmpi eq, %arg1, %c0_i32 : i32
    %c0_i32_0 = arith.constant 0 : i32
    %1 = arith.cmpi eq, %arg2, %c0_i32_0 : i32
    %2 = arith.andi %0, %1 : i1
    %3 = arith.extui %2 : i1 to i32
    %c0_i32_1 = arith.constant 0 : i32
    %4 = arith.cmpi ne, %3, %c0_i32_1 : i32
    scf.if %4 {
      %cst_16 = arith.constant 0xFF800000 : f32
      %23 = vector.broadcast %cst_16 : f32 to vector<8x1xf32>
      %c0_17 = arith.constant 0 : index
      %c0_18 = arith.constant 0 : index
      %24 = vector.load %arg9[%c0_17, %c0_18] : memref<8x1xf32, #tpu.memory_space<vmem>>, vector<8x1xf32>
      tpu.vector_store %arg9[%c0_17, %c0_18], %23 {strides = array<i32>} : memref<8x1xf32, #tpu.memory_space<vmem>>, vector<8x1xf32>,
      %cst_19 = arith.constant 0.000000e+00 : f32
      %25 = vector.broadcast %cst_19 : f32 to vector<8x1xf32>
      %c0_20 = arith.constant 0 : index
      %c0_21 = arith.constant 0 : index
      %26 = vector.load %arg10[%c0_20, %c0_21] : memref<8x1xf32, #tpu.memory_space<vmem>>, vector<8x1xf32>
      tpu.vector_store %arg10[%c0_20, %c0_21], %25 {strides = array<i32>} : memref<8x1xf32, #tpu.memory_space<vmem>>, vector<8x1xf32>,
    } else {
    }
    %c0_i32_2 = arith.constant 0 : i32
    %5 = arith.cmpi eq, %arg2, %c0_i32_2 : i32
    %6 = arith.extui %5 : i1 to i32
    %c0_i32_3 = arith.constant 0 : i32
    %7 = arith.cmpi ne, %6, %c0_i32_3 : i32
    scf.if %7 {
      %cst_16 = arith.constant 0.000000e+00 : f32
      %23 = vector.broadcast %cst_16 : f32 to vector<8x16xf32>
      %c0_17 = arith.constant 0 : index
      %c0_18 = arith.constant 0 : index
      %24 = vector.load %arg8[%c0_17, %c0_18] : memref<8x16xf32, #tpu.memory_space<vmem>>, vector<8x16xf32>
      tpu.vector_store %arg8[%c0_17, %c0_18], %23 {strides = array<i32>} : memref<8x16xf32, #tpu.memory_space<vmem>>, vector<8x16xf32>,
    } else {
    }
    %c0 = arith.constant 0 : index
    %c0_4 = arith.constant 0 : index
    %8 = vector.load %arg8[%c0, %c0_4] : memref<8x16xf32, #tpu.memory_space<vmem>>, vector<8x16xf32>
    %c0_5 = arith.constant 0 : index
    %c0_6 = arith.constant 0 : index
    %9 = vector.load %arg3[%c0_5, %c0_6] : memref<8x32xf32, #tpu.memory_space<vmem>>, vector<8x32xf32>
    %10 = arith.truncf %9 : vector<8x32xf32> to vector<8x32xbf16>
    %c0_7 = arith.constant 0 : index
    %c0_8 = arith.constant 0 : index
    %11 = vector.load %arg4[%c0_7, %c0_8] : memref<32x16xbf16, #tpu.memory_space<vmem>>, vector<32x16xbf16>
    %cst = arith.constant dense<0.000000e+00> : vector<8x16xf32>
    %12 = tpu.matmul %10, %11, %cst {dimension_numbers = #tpu.dot_dimension_numbers<[1], [0], [0], [1], [0, 0, 1, 1], [], []>} : vector<8x32xbf16>, vector<32x16xbf16>, vector<8x16xf32> -> vector<8x16xf32>
    %13 = arith.addf %8, %12 : vector<8x16xf32>
    %c0_9 = arith.constant 0 : index
    %c0_10 = arith.constant 0 : index
    %14 = vector.load %arg8[%c0_9, %c0_10] : memref<8x16xf32, #tpu.memory_space<vmem>>, vector<8x16xf32>
    tpu.vector_store %arg8[%c0_9, %c0_10], %13 {strides = array<i32>} : memref<8x16xf32, #tpu.memory_space<vmem>>, vector<8x16xf32>,
    %c0_i32_11 = arith.constant 0 : i32
    %15 = arith.cmpi eq, %arg2, %c0_i32_11 : i32
    %16 = arith.extui %15 : i1 to i32
    %c0_i32_12 = arith.constant 0 : i32
    %17 = arith.cmpi ne, %16, %c0_i32_12 : i32
    scf.if %17 {
      %c0_16 = arith.constant 0 : index
      %c0_17 = arith.constant 0 : index
      %23 = vector.load %arg8[%c0_16, %c0_17] : memref<8x16xf32, #tpu.memory_space<vmem>>, vector<8x16xf32>
      %c0_18 = arith.constant 0 : index
      %c0_19 = arith.constant 0 : index
      %24 = vector.load %arg5[%c0_18, %c0_19] : memref<1x16xf32, #tpu.memory_space<vmem>>, vector<1x16xf32>
      %25 = vector.broadcast %24 : vector<1x16xf32> to vector<8x16xf32>
      %26 = arith.addf %23, %25 : vector<8x16xf32>
      %c0_20 = arith.constant 0 : index
      %c0_21 = arith.constant 0 : index
      %27 = vector.load %arg6[%c0_20, %c0_21] : memref<8x16xf32, #tpu.memory_space<vmem>>, vector<8x16xf32>
      tpu.vector_store %arg6[%c0_20, %c0_21], %26 {strides = array<i32>} : memref<8x16xf32, #tpu.memory_space<vmem>>, vector<8x16xf32>,
      %c0_22 = arith.constant 0 : index
      %c0_23 = arith.constant 0 : index
      %28 = vector.load %arg9[%c0_22, %c0_23] : memref<8x1xf32, #tpu.memory_space<vmem>>, vector<8x1xf32>
      %cst_24 = arith.constant dense<0xFF800000> : vector<8xf32>
      %29 = vector.multi_reduction <maximumf>, %26, %cst_24 [1] : vector<8x16xf32> to vector<8xf32>
      %30 = vector.shape_cast %29 : vector<8xf32> to vector<8x1xf32>
      %31 = arith.maximumf %28, %30 : vector<8x1xf32>
      %c0_25 = arith.constant 0 : index
      %c0_26 = arith.constant 0 : index
      %32 = vector.load %arg10[%c0_25, %c0_26] : memref<8x1xf32, #tpu.memory_space<vmem>>, vector<8x1xf32>
      %c0_27 = arith.constant 0 : index
      %c0_28 = arith.constant 0 : index
      %33 = vector.load %arg9[%c0_27, %c0_28] : memref<8x1xf32, #tpu.memory_space<vmem>>, vector<8x1xf32>
      %34 = arith.subf %33, %31 : vector<8x1xf32>
      %35 = math.exp %34 : vector<8x1xf32>
      %36 = arith.mulf %32, %35 : vector<8x1xf32>
      %37 = vector.broadcast %31 : vector<8x1xf32> to vector<8x16xf32>
      %38 = arith.subf %26, %37 : vector<8x16xf32>
      %39 = math.exp %38 : vector<8x16xf32>
      %cst_29 = arith.constant dense<0.000000e+00> : vector<8xf32>
      %40 = vector.multi_reduction <add>, %39, %cst_29 [1] : vector<8x16xf32> to vector<8xf32>
      %41 = vector.shape_cast %40 : vector<8xf32> to vector<8x1xf32>
      %42 = arith.addf %36, %41 : vector<8x1xf32>
      %c0_30 = arith.constant 0 : index
      %c0_31 = arith.constant 0 : index
      %43 = vector.load %arg10[%c0_30, %c0_31] : memref<8x1xf32, #tpu.memory_space<vmem>>, vector<8x1xf32>
      tpu.vector_store %arg10[%c0_30, %c0_31], %42 {strides = array<i32>} : memref<8x1xf32, #tpu.memory_space<vmem>>, vector<8x1xf32>,
      %c0_32 = arith.constant 0 : index
      %c0_33 = arith.constant 0 : index
      %44 = vector.load %arg9[%c0_32, %c0_33] : memref<8x1xf32, #tpu.memory_space<vmem>>, vector<8x1xf32>
      tpu.vector_store %arg9[%c0_32, %c0_33], %31 {strides = array<i32>} : memref<8x1xf32, #tpu.memory_space<vmem>>, vector<8x1xf32>,
    } else {
    }
    %c0_i32_13 = arith.constant 0 : i32
    %18 = arith.cmpi eq, %arg1, %c0_i32_13 : i32
    %c0_i32_14 = arith.constant 0 : i32
    %19 = arith.cmpi eq, %arg2, %c0_i32_14 : i32
    %20 = arith.andi %18, %19 : i1
    %21 = arith.extui %20 : i1 to i32
    %c0_i32_15 = arith.constant 0 : i32
    %22 = arith.cmpi ne, %21, %c0_i32_15 : i32
    scf.if %22 {
      %c0_16 = arith.constant 0 : index
      %c0_17 = arith.constant 0 : index
      %23 = vector.load %arg9[%c0_16, %c0_17] : memref<8x1xf32, #tpu.memory_space<vmem>>, vector<8x1xf32>
      %c0_18 = arith.constant 0 : index
      %c0_19 = arith.constant 0 : index
      %24 = vector.load %arg10[%c0_18, %c0_19] : memref<8x1xf32, #tpu.memory_space<vmem>>, vector<8x1xf32>
      %25 = math.log %24 : vector<8x1xf32>
      %26 = arith.addf %23, %25 : vector<8x1xf32>
      %c0_20 = arith.constant 0 : index
      %c0_21 = arith.constant 0 : index
      %27 = vector.load %arg7[%c0_20, %c0_21] : memref<8x1xf32, #tpu.memory_space<vmem>>, vector<8x1xf32>
      tpu.vector_store %arg7[%c0_20, %c0_21], %26 {strides = array<i32>} : memref<8x1xf32, #tpu.memory_space<vmem>>, vector<8x1xf32>,
    } else {
    }
    return
  }
  func.func @transform_0(%arg0: i32, %arg1: i32, %arg2: i32) -> (i32, i32) {
    %c0_i32 = arith.constant 0 : i32
    return %arg0, %arg2 : i32, i32
  }
  func.func @transform_1(%arg0: i32, %arg1: i32, %arg2: i32) -> (i32, i32) {
    %c0_i32 = arith.constant 0 : i32
    return %arg2, %arg1 : i32, i32
  }
  func.func @transform_2(%arg0: i32, %arg1: i32, %arg2: i32) -> (i32, i32) {
    %c0_i32 = arith.constant 0 : i32
    %c0_i32_0 = arith.constant 0 : i32
    return %c0_i32, %arg1 : i32, i32
  }
  func.func @transform_3(%arg0: i32, %arg1: i32, %arg2: i32) -> (i32, i32) {
    %c0_i32 = arith.constant 0 : i32
    return %arg0, %arg1 : i32, i32
  }
  func.func @transform_4(%arg0: i32, %arg1: i32, %arg2: i32) -> (i32, i32) {
    %c0_i32 = arith.constant 0 : i32
    %c0_i32_0 = arith.constant 0 : i32
    return %arg0, %c0_i32 : i32, i32
  }
}

</mosaic_0001>

<bundles_post_ra>
// kernel: transformer_decoder_forward.22
= control target key start
LH: loop header
LB: loop body
LE: loop exit
PB: predicated region body
PF: predicated region fallthrough
CT: control target
= control target key end

     0   :  { %s637_s21 = smov 0   ;;  %s639_s22 = smov 0   ;;  %s699_s0 = inlined_call_operand.vmem [shape: f32[16,32], index: 0, kind: input, shape index: {}]   ;;  %s700_s1 = inlined_call_operand.vmem [shape: bf16[32,32], index: 1, kind: input, shape index: {}]   ;;  %s701_s2 = inlined_call_operand.vmem [shape: f32[1,32], index: 2, kind: input, shape index: {}]   ;;  %s702_s3 = inlined_call_operand.vmem [shape: f32[16,32], index: 3, kind: input, shape index: {}]   ;;  %s703_s4 = inlined_call_operand.vmem [shape: f32[1,32], index: 4, kind: input, shape index: {}]   ;;  %s704_s5 = inlined_call_operand.vmem [shape: f32[1,32], index: 5, kind: input, shape index: {}]   ;;  %s705_s6 = inlined_call_operand.vmem [shape: f32[16,32], index: 6, kind: output, shape index: {}]  }
   0x1   :  { %s641_s23 = smov 0  }
   0x2 LB: > { %s28_s24 = sadd.s32 1, %s594_s22  ;;  %p523_p0 = scmp.ge.s32.totalorder %s598_s23, 1  ;;  %s598_s23 = sphi %s641_s23, %s16_s23   ;;  %s594_s22 = sphi %s639_s22, %s707_s22   ;;  %s590_s21 = sphi %s637_s21, %s706_s21  }
   0x3   : > { %p30_p1 = scmp.ge.s32.totalorder %s28_s24, 2  ;;  %p248_p2 = scmp.lt.s32.totalorder %s598_s23, 3 }
   0x5   : > { %s709_s24 = smov (%p30_p1, %s28_s24), 0  ;;  %p249_p3 = pnand %p523_p0, %p248_p2 }
   0x6   : > { %vm314_vm0 = vcmask (!%p249_p3), 261120   ;;  %v600_v0 = vmov (!%p249_p3), 0.0   ;;  %v572_v1 = vld [vmem:[%s700_s1] sm:$0xff] (!%p249_p3)   ;;  %vm601_vm1 = vmmov (!%p249_p3), 0   ;;  %p288_p4 = scmp.lt.s32.totalorder (!%p249_p3), %s590_s21, 1  ;;  %v573_v2 = vld [vmem:[%s700_s1 + $0x8] sm:$0xff] (!%p249_p3)  }
   0x7   : > { %252 = sbr.rel (%p249_p3) target bundleno = 560 (0x230), region = 44  ;;  %315 = vst.msk [vmem:[#allocation2] sm:$0xff] (!%p249_p3), %vm314_vm0, %v600_v0  ;;  %538 = vmatprep.subr.bf16.mxu0 (!%p249_p3), %v600_v0  ;;  %542 = vmatprep.mubr.msk.bf16.mxu0 (!%p249_p3), %vm601_vm1, %v600_v0  ;;  %v530_v11 = vld [vmem:[%s701_s2] ss:$0 sm:$0xff] (!%p249_p3) }
   0x8   : > { %539 = vmatpush3.bf16.msra.mxu0 (!%p249_p3), %v572_v1  ;;  %v531_v26 = vld [vmem:[%s703_s4] ss:$0 sm:$0xff] (!%p249_p3) }
   0x9   : > { %540 = vmatprep.subr.bf16.mxu0 (!%p249_p3), %v600_v0  ;;  %v532_v28 = vld [vmem:[%s704_s5] ss:$0 sm:$0xff] (!%p249_p3) }
   0xc   : > { %541 = vmatpush3.bf16.msra.mxu0 (!%p249_p3), %v573_v2 }
   0xe   : > { %s711_s21 = smov (!%p288_p4, %s590_s21), 1  ;;  %v316_v5 = vld [vmem:[#allocation2] sm:$0xff] }
   0xf   : > { %s662_s29 = sshll.u32 %s711_s21, 3 }
  0x10   : > { %s294_s8 = scalar_lea.vmem %s699_s0, %s662_s29  ;;  %s304_s11 = scalar_lea.vmem %s702_s3, %s662_s29 }
  0x11   : > { %v317_v3 = vld [vmem:[%s294_s8] sm:$0xff]  ;;  %s308_s20 = scalar_lea.vmem %s705_s6, %s662_s29 }
  0x12   : > { %v318_v4 = vpack.c.bf16 %v317_v3, %v317_v3  ;;  %v393_v13 = vld [vmem:[%s304_s11] sm:$0xff] }
  0x14   : > { %543 = vmatmul.mubr.msk.bf16.vlgmr.msra.gmra.mrb[0].mxu0 %vm314_vm0, %v318_v4 }
  0xe7   : > { %v373_v6 = vpop.f32.mrb[0].mxu0 }
  0xe8   : > { %v379_v7 = vadd.f32 %v373_v6, %v316_v5  ;;  %v544_v8 = vpop.f32.mrb[1].mxu0 }
  0xe9   : > { %v376_v9 = vpop.f32.mrb[2].mxu0 }
  0xea   : > { %380 = vst.msk [vmem:[#allocation2] sm:$0xff] %vm314_vm0, %v379_v7  ;;  %v545_v10 = vpop.f32.mrb[3].mxu0 }
  0xf1   : > { %v384_v12 = vld [vmem:[#allocation2] sm:$0xff] }
  0xf2   : > { %v392_v14 = vadd.f32 %v530_v11, %v384_v12 }
  0xf4   : > { %v394_v15 = vadd.f32 %v393_v13, %v392_v14 }
  0xf6   : > { %v395_v16 = vsel %vm314_vm0, %v394_v15, 0.0 }
  0xf7   : > { %396 = vadd.xlane.f32.xlu0 %v395_v16 }
 0x184   : > { %v397_v17 = vpop.xlane.xlu0 %396 }
 0x185   : > { %v399_v18 = vmul.f32 0.03125, %v397_v17 }
 0x187   : > { %v400_v19 = vsub.f32 %v394_v15, %v399_v18 }
 0x189   : > { %v401_v20 = vmul.f32 %v400_v19, %v400_v19 }
 0x18b   : > { %v402_v21 = vsel %vm314_vm0, %v401_v20, 0.0 }
 0x18c   : > { %403 = vadd.xlane.f32.xlu0 %v402_v21 }
 0x219   : > { %v404_v22 = vpop.xlane.xlu0 %403 }
 0x21a   : > { %v405_v23 = vmul.f32 0.03125, %v404_v22 }
 0x21c   : > { %v406_v24 = vadd.f32 1e-05, %v405_v23 }
 0x21e   : > { %574 = vrsqrt.f32 %v406_v24 }
 0x228   : > { %v575_v25 = vpop.eup %574 }
 0x229   : > { %v408_v27 = vmul.f32 %v575_v25, %v400_v19 }
 0x22b   : > { %v416_v29 = vmul.f32 %v531_v26, %v408_v27 }
 0x22d   : > { %v424_v30 = vadd.f32 %v532_v28, %v416_v29 }
 0x22f   : > { %425 = vst.msk [vmem:[%s308_s20] sm:$0xff] %vm314_vm0, %v424_v30 }
 0x230 PF: > { %s16_s23 = sadd.s32 1, %s598_s23   ;;  %s706_s21 = smov %s594_s22 }
 0x231   : > { %p13_p5 = scmp.ge.s32.totalorder %s16_s23, 4   ;;  %s707_s22 = smov %s709_s24 }
 0x233   :  { %15 = sbr.rel (!%p13_p5) target bundleno = 2 (0x2), region = 88 }

// kernel: transformer_decoder_forward.20
= control target key start
LH: loop header
LB: loop body
LE: loop exit
PB: predicated region body
PF: predicated region fallthrough
CT: control target
= control target key end

     0   :  { %s545_s12 = smov 0   ;;  %s547_s13 = smov 0   ;;  %s590_s0 = inlined_call_operand.vmem [shape: f32[16,32], index: 0, kind: input, shape index: {}]   ;;  %s591_s1 = inlined_call_operand.vmem [shape: bf16[32,96], index: 1, kind: input, shape index: {}]   ;;  %s592_s2 = inlined_call_operand.vmem [shape: f32[1,96], index: 2, kind: input, shape index: {}]   ;;  %s593_s3 = inlined_call_operand.vmem [shape: f32[16,96], index: 3, kind: output, shape index: {}]  }
   0x1   :  { %s549_s14 = smov 0  }
   0x2 LB: > { %s32_s15 = sadd.s32 1, %s517_s13  ;;  %p451_p0 = scmp.ge.s32.totalorder %s521_s14, 1  ;;  %s521_s14 = sphi %s549_s14, %s13_s14   ;;  %s517_s13 = sphi %s547_s13, %s595_s13   ;;  %s513_s12 = sphi %s545_s12, %s594_s12  }
   0x3   : > { %p34_p1 = scmp.ge.s32.totalorder %s32_s15, 2  ;;  %p186_p2 = scmp.lt.s32.totalorder %s521_s14, 3 }
   0x5   : > { %s597_s15 = smov (%p34_p1, %s32_s15), 0  ;;  %p187_p3 = pnand %p451_p0, %p186_p2 }
   0x6   : > { %vm256_vm0 = vcmask (!%p187_p3), 785408   ;;  %v523_v0 = vmov (!%p187_p3), 0.0   ;;  %v497_v1 = vld [vmem:[%s591_s1] sm:$0xff] (!%p187_p3)   ;;  %vm524_vm1 = vmmov (!%p187_p3), 0   ;;  %p225_p4 = scmp.lt.s32.totalorder (!%p187_p3), %s513_s12, 1  ;;  %v498_v2 = vld [vmem:[%s591_s1 + $0x8] sm:$0xff] (!%p187_p3)  }
   0x7   : > { %190 = sbr.rel (%p187_p3) target bundleno = 245 (0xf5), region = 32  ;;  %257 = vst.msk [vmem:[#allocation2] sm:$0xff] (!%p187_p3), %vm256_vm0, %v523_v0  ;;  %463 = vmatprep.subr.bf16.mxu0 (!%p187_p3), %v523_v0  ;;  %467 = vmatprep.mubr.msk.bf16.mxu0 (!%p187_p3), %vm524_vm1, %v523_v0  ;;  %vm277_vm2 = vcmask (!%p187_p3), 261120   ;;  %v457_v11 = vld [vmem:[%s592_s2] ss:$0 sm:$0xff] (!%p187_p3) }
   0x8   : > { %464 = vmatpush3.bf16.msra.mxu0 (!%p187_p3), %v497_v1 }
   0x9   : > { %465 = vmatprep.subr.bf16.mxu0 (!%p187_p3), %v523_v0 }
   0xc   : > { %466 = vmatpush3.bf16.msra.mxu0 (!%p187_p3), %v498_v2 }
   0xe   : > { %s599_s12 = smov (!%p225_p4, %s513_s12), 1  ;;  %v258_v5 = vld [vmem:[#allocation2] sm:$0xff] }
   0xf   : > { %s452_s20 = sshll.u32 %s599_s12, 3 }
  0x10   : > { %s231_s23 = scalar_lea.vmem %s590_s0, %s452_s20  ;;  %s250_s28 = scalar_lea.vmem %s593_s3, %s452_s20 }
  0x11   : > { %v259_v3 = vld [vmem:[%s231_s23] sm:$0xff] }
  0x12   : > { %v260_v4 = vpack.c.bf16 %v259_v3, %v259_v3 }
  0x14   : > { %468 = vmatmul.mubr.msk.bf16.vlgmr.msra.gmra.mrb[0].mxu0 %vm277_vm2, %v260_v4 }
  0xe7   : > { %v315_v6 = vpop.f32.mrb[0].mxu0 }
  0xe8   : > { %v321_v7 = vadd.f32 %v315_v6, %v258_v5  ;;  %v469_v8 = vpop.f32.mrb[1].mxu0 }
  0xe9   : > { %v318_v9 = vpop.f32.mrb[2].mxu0 }
  0xea   : > { %323 = vst.msk [vmem:[#allocation2] sm:$0xff] %vm256_vm0, %v321_v7  ;;  %v470_v10 = vpop.f32.mrb[3].mxu0 }
  0xf1   : > { %v327_v12 = vld [vmem:[#allocation2] sm:$0xff] }
  0xf2   : > { %v335_v13 = vadd.f32 %v457_v11, %v327_v12 }
  0xf4   : > { %336 = vst.msk [vmem:[%s250_s28] sm:$0xff] %vm256_vm0, %v335_v13 }
  0xf5 PF: > { %s13_s14 = sadd.s32 1, %s521_s14   ;;  %s594_s12 = smov %s517_s13 }
  0xf6   : > { %p10_p5 = scmp.ge.s32.totalorder %s13_s14, 4   ;;  %s595_s13 = smov %s597_s15 }
  0xf8   :  { %12 = sbr.rel (!%p10_p5) target bundleno = 2 (0x2), region = 76 }

// kernel: transformer_decoder_forward.23
= control target key start
LH: loop header
LB: loop body
LE: loop exit
PB: predicated region body
PF: predicated region fallthrough
CT: control target
= control target key end

     0   :  { %s544_s12 = smov 0   ;;  %s546_s13 = smov 0   ;;  %s590_s0 = inlined_call_operand.vmem [shape: f32[16,32], index: 0, kind: input, shape index: {}]   ;;  %s591_s1 = inlined_call_operand.vmem [shape: bf16[32,32], index: 1, kind: input, shape index: {}]   ;;  %s592_s2 = inlined_call_operand.vmem [shape: f32[1,32], index: 2, kind: input, shape index: {}]   ;;  %s593_s3 = inlined_call_operand.vmem [shape: f32[16,32], index: 3, kind: output, shape index: {}]  }
   0x1   :  { %s548_s14 = smov 0  }
   0x2 LB: > { %s32_s15 = sadd.s32 1, %s516_s13  ;;  %p450_p0 = scmp.ge.s32.totalorder %s520_s14, 1  ;;  %s520_s14 = sphi %s548_s14, %s13_s14   ;;  %s516_s13 = sphi %s546_s13, %s595_s13   ;;  %s512_s12 = sphi %s544_s12, %s594_s12  }
   0x3   : > { %p34_p1 = scmp.ge.s32.totalorder %s32_s15, 2  ;;  %p186_p2 = scmp.lt.s32.totalorder %s520_s14, 3 }
   0x5   : > { %s597_s15 = smov (%p34_p1, %s32_s15), 0  ;;  %p187_p3 = pnand %p450_p0, %p186_p2 }
   0x6   : > { %v496_v0 = vld [vmem:[%s591_s1] sm:$0xff] (!%p187_p3)   ;;  %v522_v1 = vmov (!%p187_p3), 0.0   ;;  %v497_v2 = vld [vmem:[%s591_s1 + $0x8] sm:$0xff] (!%p187_p3)   ;;  %vm523_vm0 = vmmov (!%p187_p3), 0   ;;  %p225_p4 = scmp.lt.s32.totalorder (!%p187_p3), %s512_s12, 1  ;;  %vm256_vm1 = vcmask (!%p187_p3), 261120  }
   0x7   : > { %190 = sbr.rel (%p187_p3) target bundleno = 245 (0xf5), region = 32  ;;  %462 = vmatprep.subr.bf16.mxu0 (!%p187_p3), %v522_v1  ;;  %466 = vmatprep.mubr.msk.bf16.mxu0 (!%p187_p3), %vm523_vm0, %v522_v1  ;;  %257 = vst.msk [vmem:[#allocation2] sm:$0xff] (!%p187_p3), %vm256_vm1, %v522_v1  ;;  %v456_v11 = vld [vmem:[%s592_s2] ss:$0 sm:$0xff] (!%p187_p3) }
   0x8   : > { %463 = vmatpush3.bf16.msra.mxu0 (!%p187_p3), %v496_v0 }
   0x9   : > { %464 = vmatprep.subr.bf16.mxu0 (!%p187_p3), %v522_v1 }
   0xc   : > { %465 = vmatpush3.bf16.msra.mxu0 (!%p187_p3), %v497_v2 }
   0xe   : > { %s599_s12 = smov (!%p225_p4, %s512_s12), 1  ;;  %v258_v5 = vld [vmem:[#allocation2] sm:$0xff] }
   0xf   : > { %s451_s20 = sshll.u32 %s599_s12, 3 }
  0x10   : > { %s231_s23 = scalar_lea.vmem %s590_s0, %s451_s20  ;;  %s250_s28 = scalar_lea.vmem %s593_s3, %s451_s20 }
  0x11   : > { %v259_v3 = vld [vmem:[%s231_s23] sm:$0xff] }
  0x12   : > { %v260_v4 = vpack.c.bf16 %v259_v3, %v259_v3 }
  0x14   : > { %467 = vmatmul.mubr.msk.bf16.vlgmr.msra.gmra.mrb[0].mxu0 %vm256_vm1, %v260_v4 }
  0xe7   : > { %v315_v6 = vpop.f32.mrb[0].mxu0 }
  0xe8   : > { %v321_v7 = vadd.f32 %v315_v6, %v258_v5  ;;  %v468_v8 = vpop.f32.mrb[1].mxu0 }
  0xe9   : > { %v318_v9 = vpop.f32.mrb[2].mxu0 }
  0xea   : > { %322 = vst.msk [vmem:[#allocation2] sm:$0xff] %vm256_vm1, %v321_v7  ;;  %v469_v10 = vpop.f32.mrb[3].mxu0 }
  0xf1   : > { %v326_v12 = vld [vmem:[#allocation2] sm:$0xff] }
  0xf2   : > { %v334_v13 = vadd.f32 %v456_v11, %v326_v12 }
  0xf4   : > { %335 = vst.msk [vmem:[%s250_s28] sm:$0xff] %vm256_vm1, %v334_v13 }
  0xf5 PF: > { %s13_s14 = sadd.s32 1, %s520_s14   ;;  %s594_s12 = smov %s516_s13 }
  0xf6   : > { %p10_p5 = scmp.ge.s32.totalorder %s13_s14, 4   ;;  %s595_s13 = smov %s597_s15 }
  0xf8   :  { %12 = sbr.rel (!%p10_p5) target bundleno = 2 (0x2), region = 76 }

// kernel: transformer_decoder_forward.21
= control target key start
LH: loop header
LB: loop body
LE: loop exit
PB: predicated region body
PF: predicated region fallthrough
CT: control target
= control target key end

     0   :  { %9 = vsyncpa [#allocation3], 0  ;;  %s1368_s0 = inlined_call_operand.vmem [shape: f32[2,8,96], index: 0, kind: input, shape index: {}, may-alias: {0,1}]   ;;  %s1369_s1 = inlined_call_operand.vmem [shape: f32[2,8,96], index: 1, kind: input, shape index: {}, may-alias: {0,1}]   ;;  %s1370_s2 = inlined_call_operand.vmem [shape: f32[2,8,32], index: 2, kind: output, shape index: {0}]   ;;  %s1371_s3 = inlined_call_operand.hbm [shape: f32[2,4,8,8], index: 3, kind: output, shape index: {1}]  }
   0x1   :  { %11 = vsyncpa [#allocation3 + $0x1], 0  ;;  %s1160_s12 = smov 0   ;;  %s1162_s13 = smov 0  }
   0x2   :  { %s1164_s14 = smov 0   ;;  %s1166_s15 = smov 0  }
   0x3   :  { %s1168_s16 = smov 0   ;;  %s1170_s17 = smov 0  }
   0x4 LB: > { %s864_s18 = sadd.s32 4294967295, %s1120_s17   ;;  %s865_s19 = sadd.s32 4294967294, %s1120_s17   ;;  %s1120_s17 = sphi %s1170_s17, %s17_s17   ;;  %s1116_s16 = sphi %s1168_s16, %s1378_s16   ;;  %s1112_s15 = sphi %s1166_s15, %s1377_s15   ;;  %s1108_s14 = sphi %s1164_s14, %s1376_s14   ;;  %s1104_s13 = sphi %s1162_s13, %s1375_s13   ;;  %s1100_s12 = sphi %s1160_s12, %s1374_s12  }
   0x5   : > { %s29_s20 = sadd.s32 1, %s1116_s16  ;;  %s120_s21 = sadd.s32 1, %s1108_s14 }
   0x6   : > { %p31_p0 = scmp.ge.s32.totalorder %s29_s20, 2  ;;  %p130_p1 = scmp.ne.s32.totalorder %s1108_s14, %s1104_s13 }
   0x7   : > { %p131_p2 = scmp.eq.s32.totalorder %s864_s18, 1  ;;  %p136_p3 = scmp.ne.s32.totalorder %s1104_s13, %s1100_s12 }
   0x8   : > { %s1380_s20 = smov (%p31_p0, %s29_s20), 0  ;;  %p137_p5 = scmp.eq.s32.totalorder %s865_s19, 1 }
   0x9   : > { %p1200_p4 = por %p131_p2, %p130_p1  ;;  %s115_s23 = ssub.s32 %s1116_s16, %s1380_s20 }
   0xa   : > { %p868_p6 = scmp.ge.s32.totalorder %s1120_s17, 1  ;;  %p118_p7 = scmp.eq.s32.totalorder %s115_s23, 0 }
   0xb   : > { %p1207_p8 = por %p137_p5, %p136_p3  ;;  %p172_p9 = scmp.lt.s32.totalorder %s1120_s17, 3 }
   0xc   : > { %s1213_s25 = scalar_select %p118_p7, %s1108_s14, %s120_s21  }
   0xd   : > { %p173_p10 = pnand %p868_p6, %p172_p9 }
   0xe   : > { %p209_p11 = scmp.lt.s32.totalorder (!%p173_p10), %s1112_s15, 1  ;;  %v1122_v0 = vmov (!%p173_p10), 0.0   ;;  %vm1123_vm0 = vmmov (!%p173_p10), 0   ;;  %s1124_s4 = smov (!%p173_p10), 96   ;;  %vm235_vm1 = vcmask (!%p173_p10), 64512   ;;  %vm300_vm2 = vcmask (!%p173_p10), 1043456  }
   0xf   : > { %176 = sbr.rel (%p173_p10) target bundleno = 1609 (0x649), region = 28  ;;  %906 = vmatprep.subr.bf16.mxu0 (!%p173_p10), %v1122_v0  ;;  %908 = vmatprep.mubr.msk.bf16.mxu0 (!%p173_p10), %vm1123_vm0, %v1122_v0  ;;  %s1125_s8 = smov (!%p173_p10), 64  }
  0x10   : > { %912 = vmatprep.subr.bf16.mxu1 (!%p173_p10), %v1122_v0  ;;  %914 = vmatprep.mubr.msk.bf16.mxu1 (!%p173_p10), %vm1123_vm0, %v1122_v0  ;;  %s1126_s9 = smov (!%p173_p10), 88   ;;  %s1127_s10 = smov (!%p173_p10), 72  }
  0x11   : > { %s1128_s11 = smov (!%p173_p10), 120   ;;  %s1129_s18 = smov (!%p173_p10), 80  }
  0x12   : > { %s1130_s19 = smov (!%p173_p10), 112   ;;  %s1131_s21 = smov (!%p173_p10), 104  }
  0x13   : > { %s206_s23 = sand.u32 (!%p173_p10), 1, %s1104_s13   ;;  %s1133_s5 = smov (!%p173_p10), 48  }
  0x14   : > { %s1134_s6 = smov (!%p173_p10), 40  }
  0x16   : > { %s210_s26 = scalar_select %p209_p11, %s1112_s15, 1 }
  0x18   : > { %s1223_s27 = sshll.u32 %s210_s26, 3  ;;  %s869_s26 = sshll.u32 %s206_s23, 5 }
  0x19   : > { %s219_s30 = scalar_lea.vmem %s1369_s1, %s1223_s27  ;;  %s215_s7 = scalar_lea.vmem %s1368_s0, %s1223_s27 }
  0x1a   : > { %v230_v1 = vld [vmem:[%s219_s30] sm:$0xff]  ;;  %s1252_s28 = scalar_lea.vmem [#allocation2], %s869_s26 }
  0x1b   : > { %v1229_v2 = vpack.c.bf16 %v230_v1, %v230_v1  ;;  %v228_v5 = vld [vmem:[%s215_s7] sm:$0xff]  ;;  %s1135_s7 = smov 8  }
  0x1c   : > { %v229_v6 = vpack.c.bf16 %v228_v5, %v228_v5 }
  0x1d   : > { %233 = vrot.lane.b32.xlu0 %v1229_v2, %s1124_s4  ;;  %295 = vrot.lane.b32.xlu1 %v1229_v2, %s1125_s8  ;;  %s1275_s4 = scalar_lea.vmem %s1370_s2, %s1223_s27  ;;  %s1132_s27 = smov 56  }
  0x1e   : > { %s889_s8 = sshll.u32 %s1112_s15, 9  ;;  %s1136_s15 = smov [#allocation2]  }
  0x1f   : > { %s1046_s26 = sshll.u32 %s1136_s15, 4  ;;  %s1047_s26 = int_to_ptr.vmem [resolvable:$false] %s1046_s26 }
  0x21   : > { %354 = vrot.lane.b32.xlu1 %v1229_v2, %s1126_s9  ;;  %s746_s9 = sshll.u32 %s1252_s28, 4  ;;  %s1314_s9 = int_to_ptr.vmem [resolvable:$true] %s746_s9 }
  0x22   : > { %p1049_p1 = scmp.lt.s32.totalorder %s1314_s9, %s1047_s26 }
  0x8f   : > { %v234_v3 = vpop.permute.xlu0 %233  ;;  %v296_v13 = vpop.permute.xlu1 %295 }
  0x90   : > { %v240_v4 = vsel %vm235_vm1, %v234_v3, 0  ;;  %v302_v14 = vsel %vm300_vm2, %v296_v13, 0 }
  0x91   : > { %907 = vmatpush3.bf16.xpose.msra.mxu0 %v240_v4  ;;  %913 = vmatpush3.bf16.msra.mxu1 %v302_v14 }
  0x92   : > { %924 = vmatprep.subr.bf16.mxu0 %v1122_v0  ;;  %918 = vmatprep.subr.bf16.mxu1 %v1122_v0 }
  0x93   : > { %v355_v20 = vpop.permute.xlu1 %354 }
  0x94   : > { %v360_v26 = vsel %vm235_vm1, %v355_v20, 0 }
  0x98   : > { %909 = vmatmul.mubr.msk.bf16.vlgmr.msra.gmra.mrb[0].mxu0 %vm235_vm1, %v229_v6 }
  0x99   : > { %926 = vmatprep.mubr.msk.bf16.mxu0 %vm1123_vm0, %v1122_v0 }
 0x16b   : > { %v276_v7 = vpop.f32.mrb[0].mxu0 }
 0x16c   : > { %v282_v8 = vmul.f32 0.35355338, %v276_v7  ;;  %v910_v9 = vpop.f32.mrb[1].mxu0 }
 0x16d   : > { %v279_v10 = vpop.f32.mrb[2].mxu0 }
 0x16e   : > { %v911_v11 = vpop.f32.mrb[3].mxu0  ;;  %v283_v12 = vsel %vm235_vm1, %v282_v8, -inf }
 0x16f   : > { %284 = vmax.xlane.f32.xlu0 %v283_v12 }
 0x185   : > { %604 = vrot.lane.b32.xlu0 %v1229_v2, %s1127_s10 }
 0x1fc   : > { %v285_v15 = vpop.xlane.xlu0 %284 }
 0x1fd   : > { %v286_v16 = vsub.f32 %v282_v8, %v285_v15 }
 0x1ff   : > { %v287_v17 = vmul.f32 1.442695, %v286_v16 }
 0x200   : > { %v605_v29 = vpop.permute.xlu0 %604 }
 0x201   : > { %1026 = vpow2.f32 %v287_v17  ;;  %v610_v31 = vsel %vm235_vm1, %v605_v29, 0 }
 0x20b   : > { %v1027_v18 = vpop.eup %1026 }
 0x20c   : > { %v289_v19 = vsel %vm235_vm1, %v1027_v18, 0.0 }
 0x20d   : > { %290 = vadd.xlane.f32.xlu1 %v289_v19 }
 0x21e   : > { %351 = vrot.lane.b32.xlu1 %v229_v6, %s1128_s11 }
 0x222   : > { %479 = vrot.lane.b32.xlu1 %v1229_v2, %s1129_s18  ;;  %s1312_s18 = scalar_lea.hbm %s1371_s3, %s889_s8 }
 0x226   : > { %476 = vrot.lane.b32.xlu1 %v229_v6, %s1130_s19  ;;  %s1318_s19 = scalar_lea.sflag [#allocation3], %s206_s23 }
 0x22a   : > { %601 = vrot.lane.b32.xlu1 %v229_v6, %s1131_s21  ;;  %s1042_s21 = scalar_lea.vmem %s1314_s9, 512 }
 0x22b   : > { %p1043_p12 = scmp.ne.s32.totalorder %s1314_s9, %s1042_s21 }
 0x22d   : > { %p1044_p13 = pnand %p1043_p12, %p1200_p4 }
 0x22f   : > { %p1045_p0 = pneg %p1044_p13 }
 0x29a   : > { %v291_v21 = vpop.xlane.xlu1 %290 }
 0x29b   : > { %1028 = vrcp.f32 %v291_v21 }
 0x29e   : > { %v352_v24 = vpop.permute.xlu1 %351 }
 0x2a2   : > { %v480_v27 = vpop.permute.xlu1 %479 }
 0x2a3   : > { %v485_v28 = vsel %vm235_vm1, %v480_v27, 0 }
 0x2a5   : > { %v1029_v22 = vpop.eup %1028 }
 0x2a6   : > { %v293_v23 = vmul.f32 %v1029_v22, %v1027_v18  ;;  %v477_v30 = vpop.permute.xlu1 %476 }
 0x2a8   : > { %v294_v25 = vpack.c.bf16 %v293_v23, %v293_v23  ;;  %345 = vst.msk [vmem:[%s1252_s28] sm:$0xff] %vm235_vm1, %v293_v23 }
 0x2aa   : > { %915 = vmatmul.mubr.msk.bf16.vlgmr.msra.gmra.mrb[0].mxu1 %vm235_vm1, %v294_v25  ;;  %v602_v32 = vpop.permute.xlu1 %601 }
 0x2ab   : > { %919 = vmatpush3.bf16.xpose.msra.mxu1 %v360_v26  ;;  %920 = vmatprep.mubr.msk.bf16.mxu1 %vm1123_vm0, %v1122_v0 }
 0x2ac   : > { %930 = vmatprep.subr.bf16.mxu1 %v1122_v0 }
 0x2b2   : > { %921 = vmatmul.mubr.msk.bf16.vlgmr.msra.gmra.mrb[4].mxu1 %vm235_vm1, %v352_v24 }
 0x2b3   : > { %931 = vmatpush3.bf16.xpose.msra.mxu1 %v485_v28  ;;  %932 = vmatprep.mubr.msk.bf16.mxu1 %vm1123_vm0, %v1122_v0 }
 0x2b4   : > { %942 = vmatprep.subr.bf16.mxu1 %v1122_v0 }
 0x2ba   : > { %933 = vmatmul.mubr.msk.bf16.vlgmr.msra.gmra.mrb[8].mxu1 %vm235_vm1, %v477_v30 }
 0x2bb   : > { %943 = vmatpush3.bf16.xpose.msra.mxu1 %v610_v31  ;;  %944 = vmatprep.mubr.msk.bf16.mxu1 %vm1123_vm0, %v1122_v0 }
 0x2c2   : > { %945 = vmatmul.mubr.msk.bf16.vlgmr.msra.gmra.mrb[12].mxu1 %vm235_vm1, %v602_v32 }
 0x37d   : > { %v338_v33 = vpop.f32.mrb[0].mxu1 }
 0x37e   : > { %344 = vst.msk [vmem:[%s1275_s4] sm:$0xff] %vm235_vm1, %v338_v33  ;;  %v916_v34 = vpop.f32.mrb[1].mxu1 }
 0x37f   : > { %v341_v35 = vpop.f32.mrb[2].mxu1 }
 0x380   : > { %v917_v36 = vpop.f32.mrb[3].mxu1 }
 0x385   : > { %v396_v37 = vpop.f32.mrb[4].mxu1 }
 0x386   : > { %v402_v38 = vmul.f32 0.35355338, %v396_v37  ;;  %v922_v39 = vpop.f32.mrb[5].mxu1 }
 0x387   : > { %v399_v40 = vpop.f32.mrb[6].mxu1 }
 0x388   : > { %v923_v41 = vpop.f32.mrb[7].mxu1  ;;  %v403_v42 = vsel %vm235_vm1, %v402_v38, -inf }
 0x389   : > { %404 = vmax.xlane.f32.xlu1 %v403_v42 }
 0x38d   : > { %v521_v43 = vpop.f32.mrb[8].mxu1 }
 0x38e   : > { %v527_v44 = vmul.f32 0.35355338, %v521_v43  ;;  %v934_v45 = vpop.f32.mrb[9].mxu1 }
 0x38f   : > { %v524_v46 = vpop.f32.mrb[10].mxu1 }
 0x390   : > { %v528_v47 = vsel %vm235_vm1, %v527_v44, -inf  ;;  %v935_v48 = vpop.f32.mrb[11].mxu1 }
 0x391   : > { %529 = vmax.xlane.f32.xlu0 %v528_v47 }
 0x395   : > { %v646_v49 = vpop.f32.mrb[12].mxu1 }
 0x396   : > { %v652_v50 = vmul.f32 0.35355338, %v646_v49  ;;  %v946_v51 = vpop.f32.mrb[13].mxu1 }
 0x397   : > { %v649_v52 = vpop.f32.mrb[14].mxu1 }
 0x398   : > { %v653_v53 = vsel %vm235_vm1, %v652_v50, -inf  ;;  %v947_v54 = vpop.f32.mrb[15].mxu1 }
 0x399   : > { %654 = vmax.xlane.f32.xlu1 %v653_v53 }
 0x416   : > { %v405_v55 = vpop.xlane.xlu1 %404 }
 0x417   : > { %v406_v56 = vsub.f32 %v402_v38, %v405_v55 }
 0x419   : > { %v407_v57 = vmul.f32 1.442695, %v406_v56 }
 0x41b   : > { %1030 = vpow2.f32 %v407_v57 }
 0x41e   : > { %v530_v3 = vpop.xlane.xlu0 %529 }
 0x41f   : > { %v531_v4 = vsub.f32 %v527_v44, %v530_v3 }
 0x421   : > { %v532_v5 = vmul.f32 1.442695, %v531_v4 }
 0x425   : > { %v1031_v58 = vpop.eup %1030 }
 0x426   : > { %v655_v59 = vpop.xlane.xlu1 %654  ;;  %v409_v60 = vsel %vm235_vm1, %v1031_v58, 0.0 }
 0x427   : > { %v656_v61 = vsub.f32 %v652_v50, %v655_v59  ;;  %410 = vadd.xlane.f32.xlu1 %v409_v60 }
 0x429   : > { %v657_v62 = vmul.f32 1.442695, %v656_v61 }
 0x42b   : > { %1032 = vpow2.f32 %v657_v62 }
 0x42c   : > { %1034 = vpow2.f32 %v532_v5 }
 0x435   : > { %v1033_v63 = vpop.eup %1032 }
 0x436   : > { %v659_v1 = vsel %vm235_vm1, %v1033_v63, 0.0  ;;  %v1035_v6 = vpop.eup %1034 }
 0x437   : > { %660 = vadd.xlane.f32.xlu0 %v659_v1  ;;  %v534_v7 = vsel %vm235_vm1, %v1035_v6, 0.0 }
 0x438   : > { %415 = vrot.lane.b32.xlu1 %v1229_v2, %s1132_s27 }
 0x44d   : > { %540 = vrot.lane.b32.xlu0 %v1229_v2, %s1133_s5 }
 0x45c   : > { %535 = vadd.xlane.f32.xlu1 %v534_v7 }
 0x46d   : > { %665 = vrot.lane.b32.xlu1 %v1229_v2, %s1134_s6 }
 0x4b4   : > { %v411_v8 = vpop.xlane.xlu1 %410 }
 0x4b5   : > { %1036 = vrcp.f32 %v411_v8 }
 0x4b8   : > { %v416_v9 = vpop.permute.xlu1 %415 }
 0x4b9   : > { %v421_v10 = vsel %vm300_vm2, %v416_v9, 0 }
 0x4ba   : > { %925 = vmatpush3.bf16.msra.mxu0 %v421_v10 }
 0x4bb   : > { %936 = vmatprep.subr.bf16.mxu0 %v1122_v0 }
 0x4bf   : > { %v1037_v11 = vpop.eup %1036 }
 0x4c0   : > { %v413_v12 = vmul.f32 %v1037_v11, %v1031_v58 }
 0x4c2   : > { %877 = vst.msk [vmem:[%s1252_s28 + $0x8] sm:$0xff] %vm235_vm1, %v413_v12  ;;  %v414_v13 = vpack.c.bf16 %v413_v12, %v413_v12 }
 0x4c4   : > { %927 = vmatmul.mubr.msk.bf16.vlgmr.msra.gmra.mrb[4].mxu0 %vm235_vm1, %v414_v13  ;;  %v661_v14 = vpop.xlane.xlu0 %660 }
 0x4c5   : > { %1038 = vrcp.f32 %v661_v14  ;;  %938 = vmatprep.mubr.msk.bf16.mxu0 %vm1123_vm0, %v1122_v0 }
 0x4c8   : > { %v541_v2 = vpop.permute.xlu0 %540 }
 0x4c9   : > { %v546_v15 = vsel %vm300_vm2, %v541_v2, 0 }
 0x4ca   : > { %937 = vmatpush3.bf16.msra.mxu0 %v546_v15 }
 0x4cb   : > { %948 = vmatprep.subr.bf16.mxu0 %v1122_v0 }
 0x4cf   : > { %v1039_v16 = vpop.eup %1038 }
 0x4d0   : > { %v663_v17 = vmul.f32 %v1039_v16, %v1033_v63 }
 0x4d2   : > { %883 = vst.msk [vmem:[%s1252_s28 + $0x18] sm:$0xff] %vm235_vm1, %v663_v17  ;;  %v664_v24 = vpack.c.bf16 %v663_v17, %v663_v17 }
 0x4e9   : > { %v536_v18 = vpop.xlane.xlu1 %535 }
 0x4ea   : > { %1040 = vrcp.f32 %v536_v18 }
 0x4ed   : > { %v666_v20 = vpop.permute.xlu1 %665 }
 0x4ee   : > { %v671_v22 = vsel %vm300_vm2, %v666_v20, 0 }
 0x4f4   : > { %v1041_v19 = vpop.eup %1040 }
 0x4f5   : > { %v538_v21 = vmul.f32 %v1041_v19, %v1035_v6 }
 0x4f7   : > { %880 = vst.msk [vmem:[%s1252_s28 + $0x10] sm:$0xff] %vm235_vm1, %v538_v21  ;;  %v539_v23 = vpack.c.bf16 %v538_v21, %v538_v21  ;;  %s1048_s28 = scalar_lea.vmem %s1047_s26, 1024 }
 0x4f8   : > { %p1050_p2 = scmp.lt.s32.totalorder %s1048_s28, %s1042_s21 }
 0x4f9   : > { %939 = vmatmul.mubr.msk.bf16.vlgmr.msra.gmra.mrb[8].mxu0 %vm235_vm1, %v539_v23 }
 0x4fa   : > { %949 = vmatpush3.bf16.msra.mxu0 %v671_v22  ;;  %950 = vmatprep.mubr.msk.bf16.mxu0 %vm1123_vm0, %v1122_v0  ;;  %p1051_p3 = por %p1050_p2, %p1049_p1 }
 0x4fc   : > { %p1052_p5 = pnand %p1051_p3, %p1045_p0 }
 0x501   : > { %951 = vmatmul.mubr.msk.bf16.vlgmr.msra.gmra.mrb[12].mxu0 %vm235_vm1, %v664_v24 }
 0x597   : > { %v457_v25 = vpop.f32.mrb[4].mxu0 }
 0x598   : > { %464 = vrot.lane.b32.xlu1 %v457_v25, %s1135_s7  ;;  %v928_v26 = vpop.f32.mrb[5].mxu0 }
 0x599   : > { %v460_v27 = vpop.f32.mrb[6].mxu0 }
 0x59a   : > { %v929_v28 = vpop.f32.mrb[7].mxu0 }
 0x59b   : > { %1055 = shalt.err (!%p1052_p5)
}
 0x59c   : > { %s1056_s23 = scalar_lea.hbm %s1312_s18, 512  ;;  %s1060_s27 = scalar_lea.hbm %s1371_s3, 1024 }
 0x59d   : > { %p1057_p6 = scmp.ne.s32.totalorder %s1312_s18, %s1056_s23  ;;  %p1061_p10 = scmp.lt.u32.totalorder %s1312_s18, %s1371_s3 }
 0x59e   : > { %p1062_p11 = scmp.lt.u32.totalorder %s1060_s27, %s1056_s23  ;;  %p1064_p13 = scmp.lt.u32.totalorder %s1056_s23, %s1312_s18 }
 0x59f   : > { %p1058_p7 = pnand %p1057_p6, %p1200_p4 }
 0x5a0   : > { %p1063_p12 = por %p1062_p11, %p1061_p10 }
 0x5a1   : > { %p1059_p9 = pneg %p1058_p7 }
 0x5a2   : > { %p1065_p0 = por %p1064_p13, %p1063_p12 }
 0x5a4   : > { %p1066_p1 = pnand %p1065_p0, %p1059_p9 }
 0x5a6   : > { %1069 = shalt.err (!%p1066_p1)
}
 0x5a7   : > { %s1137_s8 = smov 128   ;;  %s1138_s10 = smov 16   ;;  %vm467_vm3 = vcmask 130112   ;;  %vm592_vm4 = vcmask 195712   ;;  %vm717_vm5 = vcmask 261312  }
 0x5a8   : > { %954 = dma.vmem_to_hbm [thread:$0]  (%p1200_p4), %s1314_s9, 512, %s1312_s18, %s1318_s19, %s1137_s8, %s1137_s8, %s1135_s7  }
 0x5a9   : > { %s1139_s11 = smov 24  }
 0x5cc   : > { %v582_v0 = vpop.f32.mrb[8].mxu0 }
 0x5cd   : > { %589 = vrot.lane.b32.xlu0 %v582_v0, %s1138_s10  ;;  %v940_v29 = vpop.f32.mrb[9].mxu0 }
 0x5ce   : > { %v585_v30 = vpop.f32.mrb[10].mxu0 }
 0x5cf   : > { %v941_v31 = vpop.f32.mrb[11].mxu0 }
 0x5d4   : > { %v707_v32 = vpop.f32.mrb[12].mxu0 }
 0x5d5   : > { %714 = vrot.lane.b32.xlu1 %v707_v32, %s1139_s11  ;;  %v952_v33 = vpop.f32.mrb[13].mxu0 }
 0x5d6   : > { %v710_v34 = vpop.f32.mrb[14].mxu0 }
 0x5d7   : > { %v953_v35 = vpop.f32.mrb[15].mxu0 }
 0x60a   : > { %v465_v36 = vpop.permute.xlu1 %464 }
 0x60b   : > { %468 = vst.msk [vmem:[%s1275_s4] sm:$0xff] %vm467_vm3, %v465_v36 }
 0x63f   : > { %v590_v37 = vpop.permute.xlu0 %589 }
 0x640   : > { %593 = vst.msk [vmem:[%s1275_s4] sm:$0xff] %vm592_vm4, %v590_v37 }
 0x647   : > { %v715_v38 = vpop.permute.xlu1 %714 }
 0x648   : > { %718 = vst.msk [vmem:[%s1275_s4] sm:$0xff] %vm717_vm5, %v715_v38 }
 0x649 PF: > { %p960_p4 = scmp.ge.s32.totalorder %s1120_s17, 2  ;;  %s771_s22 = sand.u32 1, %s1100_s12  }
 0x64a   : > { %s772_s7 = scalar_lea.sflag [#allocation3], %s771_s22 }
 0x64b   : > { %p957_p2 = pnand %p960_p4, %p1207_p8 }
 0x64d   : > { %1095 = dma.done.wait (!%p957_p2), %s772_s7, 512  }
 0x64e   : > { %1097 = vsyncadd (!%p957_p2), %s772_s7, 4294966784  ;;  %s17_s17 = sadd.s32 1, %s1120_s17   ;;  %s1374_s12 = smov %s1104_s13 }
 0x64f   : > { %p14_p3 = scmp.ge.s32.totalorder %s17_s17, 4   ;;  %s1375_s13 = smov %s1108_s14 }
 0x650   : > { %s1376_s14 = smov %s1213_s25  ;;  %s1377_s15 = smov %s1116_s16 }
 0x651   : > { %s1378_s16 = smov %s1380_s20  ;;  %16 = sbr.rel (!%p14_p3) target bundleno = 4 (0x4), region = 81 }
 0x658   :  { %777 = vsyncpa [#allocation3], 1 }
 0x659   :  { %779 = vsyncpa [#allocation3 + $0x1], 1 }

// kernel: transformer_decoder_forward.24
= control target key start
LH: loop header
LB: loop body
LE: loop exit
PB: predicated region body
PF: predicated region fallthrough
CT: control target
= control target key end

     0   :  { %vm22_vm0 = vcmask 519168   ;;  %v154_v1 = vmov 0.0   ;;  %vm48_vm1 = vcmask 261120   ;;  %vm19_vm2 = vcmask 523264   ;;  %s211_s1 = inlined_call_operand.vmem [shape: bf16[32,64], index: 1, kind: input, shape index: {}]   ;;  %s212_s0 = inlined_call_operand.vmem [shape: f32[20,32], index: 0, kind: input, shape index: {}]   ;;  %s213_s2 = inlined_call_operand.vmem [shape: f32[1,64], index: 2, kind: input, shape index: {}]   ;;  %s214_s3 = inlined_call_operand.vmem [shape: f32[20,64], index: 3, kind: output, shape index: {}]  }
   0x1   :  { %v152_v0 = vld [vmem:[%s211_s1] sm:$0xff]   ;;  %23 = vst.msk [vmem:[#allocation2 + $0x10] sm:$0xf] %vm22_vm0, %v154_v1  ;;  %v153_v2 = vld [vmem:[%s211_s1 + $0x8] sm:$0xff]   ;;  %v29_v5 = vld [vmem:[%s212_s0 + $0x10] sm:$0xf] }
   0x2   :  { %143 = vmatprep.subr.bf16.mxu0 %v152_v0  ;;  %v27_v3 = vld [vmem:[%s212_s0] sm:$0xff]  ;;  %v28_v4 = vld [vmem:[%s212_s0 + $0x8] sm:$0xff]  ;;  %v31_v7 = vpack.c.bf16 %v29_v5, %v29_v5  ;;  %20 = vst.msk [vmem:[#allocation2] sm:$0xff] %vm19_vm2, %v154_v1  ;;  %21 = vst.msk [vmem:[#allocation2 + $0x8] sm:$0xff] %vm19_vm2, %v154_v1 }
   0x3   :  { %144 = vmatpush3.bf16.msra.mxu0 %v152_v0  ;;  %v30_v6 = vpack.c.bf16 %v28_v4, %v27_v3  ;;  %v138_v18 = vld [vmem:[%s213_s2] ss:$0 sm:$0xff] }
   0x4   :  { %145 = vmatprep.subr.bf16.mxu0 %v153_v2 }
   0x5   :  { %147 = vmatprep.mubr.msk.bf16.mxu0 %vm48_vm1, %v30_v6 }
   0x7   :  { %146 = vmatpush3.bf16.msra.mxu0 %v153_v2 }
   0x8   :  { %v26_v8 = vld [vmem:[#allocation2 + $0x10] sm:$0xf] }
   0x9   :  { %v24_v9 = vld [vmem:[#allocation2] sm:$0xff]  ;;  %v25_v13 = vld [vmem:[#allocation2 + $0x8] sm:$0xff] }
   0xa   :  { %148 = vmatmul.mubr.msk.bf16.vlgmr.msra.gmra.mrb[0].mxu0 %vm48_vm1, %v31_v7 }
  0xdd   :  { %v149_v10 = vpop.f32.mrb[0].mxu0 }
  0xde   :  { %v105_v11 = vadd.f32 %v149_v10, %v26_v8  ;;  %v89_v12 = vpop.f32.mrb[1].mxu0 }
  0xdf   :  { %v103_v14 = vadd.f32 %v89_v12, %v24_v9  ;;  %v150_v15 = vpop.f32.mrb[2].mxu0 }
  0xe0   :  { %110 = vst.msk [vmem:[#allocation2 + $0x10] sm:$0xf] %vm22_vm0, %v105_v11  ;;  %v92_v16 = vpop.f32.mrb[3].mxu0 }
  0xe1   :  { %107 = vst.msk [vmem:[#allocation2] sm:$0xff] %vm19_vm2, %v103_v14  ;;  %v104_v17 = vadd.f32 %v92_v16, %v25_v13 }
  0xe3   :  { %108 = vst.msk [vmem:[#allocation2 + $0x8] sm:$0xff] %vm19_vm2, %v104_v17 }
  0xe7   :  { %v116_v19 = vld [vmem:[#allocation2 + $0x10] sm:$0xf] }
  0xe8   :  { %v126_v20 = vadd.f32 %v138_v18, %v116_v19  ;;  %v114_v21 = vld [vmem:[#allocation2] sm:$0xff] }
  0xe9   :  { %v124_v22 = vadd.f32 %v138_v18, %v114_v21 }
  0xea   :  { %129 = vst.msk [vmem:[%s214_s3 + $0x10] sm:$0xf] %vm22_vm0, %v126_v20  ;;  %v115_v23 = vld [vmem:[#allocation2 + $0x8] sm:$0xff] }
  0xeb   :  { %127 = vst.msk [vmem:[%s214_s3] sm:$0xff] %vm19_vm2, %v124_v22  ;;  %v125_v24 = vadd.f32 %v138_v18, %v115_v23 }
  0xed   :  { %128 = vst.msk [vmem:[%s214_s3 + $0x8] sm:$0xff] %vm19_vm2, %v125_v24 }

// kernel: transformer_decoder_forward.27
= control target key start
LH: loop header
LB: loop body
LE: loop exit
PB: predicated region body
PF: predicated region fallthrough
CT: control target
= control target key end

     0   :  { %s545_s12 = smov 0   ;;  %s547_s13 = smov 0   ;;  %s591_s0 = inlined_call_operand.vmem [shape: f32[16,32], index: 0, kind: input, shape index: {}]   ;;  %s592_s1 = inlined_call_operand.vmem [shape: bf16[32,32], index: 1, kind: input, shape index: {}]   ;;  %s593_s2 = inlined_call_operand.vmem [shape: f32[1,32], index: 2, kind: input, shape index: {}]   ;;  %s594_s3 = inlined_call_operand.vmem [shape: f32[16,32], index: 3, kind: output, shape index: {}]  }
   0x1   :  { %s549_s14 = smov 0  }
   0x2 LB: > { %s32_s15 = sadd.s32 1, %s517_s13  ;;  %p451_p0 = scmp.ge.s32.totalorder %s521_s14, 1  ;;  %s521_s14 = sphi %s549_s14, %s13_s14   ;;  %s517_s13 = sphi %s547_s13, %s596_s13   ;;  %s513_s12 = sphi %s545_s12, %s595_s12  }
   0x3   : > { %p34_p1 = scmp.ge.s32.totalorder %s32_s15, 2  ;;  %p186_p2 = scmp.lt.s32.totalorder %s521_s14, 3 }
   0x5   : > { %s598_s15 = smov (%p34_p1, %s32_s15), 0  ;;  %p187_p3 = pnand %p451_p0, %p186_p2 }
   0x6   : > { %v497_v0 = vld [vmem:[%s592_s1] sm:$0xff] (!%p187_p3)   ;;  %v523_v1 = vmov (!%p187_p3), 0.0   ;;  %v498_v2 = vld [vmem:[%s592_s1 + $0x8] sm:$0xff] (!%p187_p3)   ;;  %vm524_vm0 = vmmov (!%p187_p3), 0   ;;  %p225_p4 = scmp.lt.s32.totalorder (!%p187_p3), %s513_s12, 1  ;;  %vm256_vm1 = vcmask (!%p187_p3), 261120  }
   0x7   : > { %190 = sbr.rel (%p187_p3) target bundleno = 247 (0xf7), region = 32  ;;  %463 = vmatprep.subr.bf16.mxu0 (!%p187_p3), %v523_v1  ;;  %467 = vmatprep.mubr.msk.bf16.mxu0 (!%p187_p3), %vm524_vm0, %v523_v1  ;;  %257 = vst.msk [vmem:[#allocation2] sm:$0xff] (!%p187_p3), %vm256_vm1, %v523_v1  ;;  %v457_v11 = vld [vmem:[%s593_s2] ss:$0 sm:$0xff] (!%p187_p3) }
   0x8   : > { %464 = vmatpush3.bf16.msra.mxu0 (!%p187_p3), %v497_v0 }
   0x9   : > { %465 = vmatprep.subr.bf16.mxu0 (!%p187_p3), %v523_v1 }
   0xc   : > { %466 = vmatpush3.bf16.msra.mxu0 (!%p187_p3), %v498_v2 }
   0xe   : > { %s600_s12 = smov (!%p225_p4, %s513_s12), 1  ;;  %v258_v5 = vld [vmem:[#allocation2] sm:$0xff] }
   0xf   : > { %s452_s20 = sshll.u32 %s600_s12, 3 }
  0x10   : > { %s231_s23 = scalar_lea.vmem %s591_s0, %s452_s20  ;;  %s250_s28 = scalar_lea.vmem %s594_s3, %s452_s20 }
  0x11   : > { %v259_v3 = vld [vmem:[%s231_s23] sm:$0xff] }
  0x12   : > { %v260_v4 = vpack.c.bf16 %v259_v3, %v259_v3 }
  0x14   : > { %468 = vmatmul.mubr.msk.bf16.vlgmr.msra.gmra.mrb[0].mxu0 %vm256_vm1, %v260_v4 }
  0xe7   : > { %v315_v6 = vpop.f32.mrb[0].mxu0 }
  0xe8   : > { %v321_v7 = vadd.f32 %v315_v6, %v258_v5  ;;  %v469_v8 = vpop.f32.mrb[1].mxu0 }
  0xe9   : > { %v318_v9 = vpop.f32.mrb[2].mxu0 }
  0xea   : > { %322 = vst.msk [vmem:[#allocation2] sm:$0xff] %vm256_vm1, %v321_v7  ;;  %v470_v10 = vpop.f32.mrb[3].mxu0 }
  0xf1   : > { %v326_v12 = vld [vmem:[#allocation2] sm:$0xff] }
  0xf2   : > { %v334_v13 = vadd.f32 %v457_v11, %v326_v12 }
  0xf4   : > { %v335_v14 = vmax.f32 %v334_v13, 0.0 }
  0xf6   : > { %336 = vst.msk [vmem:[%s250_s28] sm:$0xff] %vm256_vm1, %v335_v14 }
  0xf7 PF: > { %s13_s14 = sadd.s32 1, %s521_s14   ;;  %s595_s12 = smov %s517_s13 }
  0xf8   : > { %p10_p5 = scmp.ge.s32.totalorder %s13_s14, 4   ;;  %s596_s13 = smov %s598_s15 }
  0xfa   :  { %12 = sbr.rel (!%p10_p5) target bundleno = 2 (0x2), region = 76 }

// kernel: transformer_decoder_forward.25
= control target key start
LH: loop header
LB: loop body
LE: loop exit
PB: predicated region body
PF: predicated region fallthrough
CT: control target
= control target key end

     0   :  { %s1022_s12 = smov 0   ;;  %s1024_s13 = smov 0   ;;  %s1155_s0 = inlined_call_operand.vmem [shape: f32[2,8,32], index: 0, kind: input, shape index: {}]   ;;  %s1156_s1 = inlined_call_operand.vmem [shape: f32[2,10,64], index: 1, kind: input, shape index: {}]   ;;  %s1157_s2 = inlined_call_operand.vmem [shape: f32[2,1,10], index: 2, kind: input, shape index: {}]   ;;  %s1158_s3 = inlined_call_operand.vmem [shape: f32[2,8,32], index: 3, kind: output, shape index: {}]  }
   0x1   :  { %s1026_s14 = smov 0  }
   0x2 LB: > { %s25_s15 = sadd.s32 1, %s983_s13  ;;  %p832_p0 = scmp.ge.s32.totalorder %s987_s14, 1  ;;  %s987_s14 = sphi %s1026_s14, %s13_s14   ;;  %s983_s13 = sphi %s1024_s13, %s1160_s13   ;;  %s979_s12 = sphi %s1022_s12, %s1159_s12  }
   0x3   : > { %p27_p1 = scmp.ge.s32.totalorder %s25_s15, 2  ;;  %p173_p2 = scmp.lt.s32.totalorder %s987_s14, 3 }
   0x5   : > { %s1162_s15 = smov (%p27_p1, %s25_s15), 0  ;;  %p174_p3 = pnand %p832_p0, %p173_p2 }
   0x6   : > { %p209_p4 = scmp.lt.s32.totalorder (!%p174_p3), %s979_s12, 1  ;;  %v989_v0 = vmov (!%p174_p3), 0.0   ;;  %vm990_vm0 = vmmov (!%p174_p3), 0   ;;  %vm239_vm1 = vcmask (!%p174_p3), 64512   ;;  %v288_v7 = vlaneseq (!%p174_p3)  ;;  %s992_s27 = smov (!%p174_p3), 96  }
   0x7   : > { %177 = sbr.rel (%p174_p3) target bundleno = 1443 (0x5a3), region = 32  ;;  %864 = vmatprep.subr.bf16.mxu0 (!%p174_p3), %v989_v0  ;;  %866 = vmatprep.mubr.msk.bf16.mxu0 (!%p174_p3), %vm990_vm0, %v989_v0  ;;  %v991_v11 = vmov (!%p174_p3), 0   ;;  %vm294_vm4 = vcmask (!%p174_p3), 80896   ;;  %s993_s28 = smov (!%p174_p3), 120   ;;  %vm313_vm5 = vcmask (!%p174_p3), 1044480   ;;  %vm481_vm6 = vcmask (!%p174_p3), 130112  }
   0x8   : > { %870 = vmatprep.subr.bf16.mxu1 (!%p174_p3), %v989_v0  ;;  %872 = vmatprep.mubr.msk.bf16.mxu1 (!%p174_p3), %vm990_vm0, %v989_v0  ;;  %v289_v9 = vshrl.u32 (!%p174_p3), %v288_v7, 7  ;;  %s994_s29 = smov (!%p174_p3), 112   ;;  %s995_s30 = smov (!%p174_p3), 104   ;;  %vm606_vm7 = vcmask (!%p174_p3), 195712   ;;  %vm731_vm8 = vcmask (!%p174_p3), 261312  }
   0x9   : > { %s996_s7 = smov (!%p174_p3), 88   ;;  %s997_s8 = smov (!%p174_p3), 72  }
   0xa   : > { %v290_v10 = vsub.s32 (!%p174_p3), 0, %v289_v9  ;;  %s998_s9 = smov (!%p174_p3), 80   ;;  %s999_s10 = smov (!%p174_p3), 8  }
   0xb   : > { %s1000_s11 = smov (!%p174_p3), 16  }
   0xe   : > { %s1164_s12 = smov (!%p209_p4, %s979_s12), 1 }
   0xf   : > { %s847_s16 = sshll.u32 %s1164_s12, 4  ;;  %s833_s17 = sshll.u32 %s1164_s12, 3 }
  0x10   : > { %s1053_s20 = scalar_lea.vmem %s1156_s1, %s847_s16  ;;  %s215_s23 = scalar_lea.vmem %s1155_s0, %s833_s17 }
  0x11   : > { %v236_v1 = vld [vmem:[%s1053_s20] sm:$0xff]  ;;  %v237_v2 = vld [vmem:[%s1053_s20 + $0x8] sm:$0x3]  ;;  %s223_s26 = scalar_lea.vmem %s1157_s2, %s1164_s12  ;;  %s1112_s6 = scalar_lea.vmem %s1158_s3, %s833_s17 }
  0x12   : > { %v238_v3 = vpack.c.bf16 %v237_v2, %v236_v1  ;;  %v234_v5 = vld [vmem:[%s215_s23] sm:$0xff]  ;;  %v361_v21 = vld [vmem:[%s1053_s20 + $0x8] sm:$0x3]  ;;  %s1001_s12 = smov 24  }
  0x13   : > { %v235_v6 = vpack.c.bf16 %v234_v5, %v234_v5  ;;  %v232_v8 = vld [vmem:[%s223_s26] sm:$0x1]  ;;  %v1078_v22 = vpack.c.bf16 %v361_v21, %v236_v1  ;;  %v486_v23 = vld [vmem:[%s1053_s20 + $0x8] sm:$0x3] }
  0x14   : > { %v244_v4 = vsel %vm239_vm1, %v238_v3, 0  ;;  %vm233_vm2 = vcmp.gt.f32.partialorder %v232_v8, 0.5  ;;  %308 = vrot.lane.b32.xlu1 %v238_v3, %s992_s27  ;;  %v1082_v24 = vpack.c.bf16 %v486_v23, %v236_v1  ;;  %v611_v25 = vld [vmem:[%s1053_s20 + $0x8] sm:$0x3] }
  0x15   : > { %865 = vmatpush3.bf16.xpose.msra.mxu0 %v244_v4  ;;  %v287_v12 = vsel %vm233_vm2, 1, %v991_v11  ;;  %v1086_v26 = vpack.c.bf16 %v611_v25, %v236_v1 }
  0x16   : > { %882 = vmatprep.subr.bf16.mxu0 %v989_v0  ;;  %v1071_v13 = vrot.slane %v287_v12, %v290_v10 }
  0x18   : > { %vm292_vm3 = vcmp.eq.s32.totalorder %v1071_v13, 1  ;;  %367 = vrot.lane.b32.xlu1 %v1078_v22, %s993_s28 }
  0x1c   : > { %867 = vmatmul.mubr.msk.bf16.vlgmr.msra.gmra.mrb[0].mxu0 %vm239_vm1, %v235_v6  ;;  %492 = vrot.lane.b32.xlu1 %v1082_v24, %s994_s29 }
  0x1d   : > { %884 = vmatprep.mubr.msk.bf16.mxu0 %vm990_vm0, %v989_v0 }
  0x20   : > { %489 = vrot.lane.b32.xlu1 %v235_v6, %s994_s29 }
  0x24   : > { %617 = vrot.lane.b32.xlu1 %v1086_v26, %s995_s30 }
  0x28   : > { %614 = vrot.lane.b32.xlu1 %v235_v6, %s995_s30 }
  0x86   : > { %v309_v32 = vpop.permute.xlu1 %308 }
  0x87   : > { %v315_v33 = vsel %vm313_vm5, %v309_v32, 0 }
  0x88   : > { %871 = vmatpush3.bf16.msra.mxu1 %v315_v33 }
  0x89   : > { %876 = vmatprep.subr.bf16.mxu1 %v989_v0 }
  0x8a   : > { %v368_v36 = vpop.permute.xlu1 %367 }
  0x8b   : > { %v373_v38 = vsel %vm239_vm1, %v368_v36, 0 }
  0x8e   : > { %v493_v40 = vpop.permute.xlu1 %492 }
  0x8f   : > { %v498_v43 = vsel %vm239_vm1, %v493_v40, 0 }
  0x92   : > { %v490_v42 = vpop.permute.xlu1 %489 }
  0x96   : > { %v618_v44 = vpop.permute.xlu1 %617 }
  0x97   : > { %v623_v45 = vsel %vm239_vm1, %v618_v44, 0 }
  0x9a   : > { %v615_v46 = vpop.permute.xlu1 %614 }
  0xef   : > { %v280_v14 = vpop.f32.mrb[0].mxu0 }
  0xf0   : > { %v286_v15 = vmul.f32 0.35355338, %v280_v14  ;;  %v868_v16 = vpop.f32.mrb[1].mxu0 }
  0xf1   : > { %v283_v17 = vpop.f32.mrb[2].mxu0 }
  0xf2   : > { %v869_v18 = vpop.f32.mrb[3].mxu0  ;;  %v293_v19 = vsel %vm292_vm3, -1e+30, %v286_v15 }
  0xf3   : > { %v295_v20 = vsel %vm294_vm4, %v293_v19, -inf }
  0xf4   : > { %296 = vmax.xlane.f32.xlu0 %v295_v20 }
 0x181   : > { %v297_v27 = vpop.xlane.xlu0 %296 }
 0x182   : > { %v298_v28 = vsub.f32 %v293_v19, %v297_v27 }
 0x184   : > { %v299_v29 = vmul.f32 1.442695, %v298_v28 }
 0x186   : > { %949 = vpow2.f32 %v299_v29 }
 0x190   : > { %v950_v30 = vpop.eup %949 }
 0x191   : > { %v301_v31 = vsel %vm294_vm4, %v950_v30, 0.0 }
 0x192   : > { %302 = vadd.xlane.f32.xlu0 %v301_v31 }
 0x1a8   : > { %364 = vrot.lane.b32.xlu0 %v235_v6, %s993_s28 }
 0x21f   : > { %v303_v34 = vpop.xlane.xlu0 %302 }
 0x220   : > { %951 = vrcp.f32 %v303_v34 }
 0x223   : > { %v365_v41 = vpop.permute.xlu0 %364 }
 0x22a   : > { %v952_v35 = vpop.eup %951 }
 0x22b   : > { %v305_v37 = vmul.f32 %v952_v35, %v950_v30 }
 0x22d   : > { %v306_v39 = vpack.c.bf16 %v305_v37, %v305_v37 }
 0x22f   : > { %873 = vmatmul.mubr.msk.bf16.vlgmr.msra.gmra.mrb[0].mxu1 %vm294_vm4, %v306_v39 }
 0x230   : > { %877 = vmatpush3.bf16.xpose.msra.mxu1 %v373_v38  ;;  %878 = vmatprep.mubr.msk.bf16.mxu1 %vm990_vm0, %v989_v0 }
 0x231   : > { %888 = vmatprep.subr.bf16.mxu1 %v989_v0 }
 0x237   : > { %879 = vmatmul.mubr.msk.bf16.vlgmr.msra.gmra.mrb[4].mxu1 %vm239_vm1, %v365_v41 }
 0x238   : > { %889 = vmatpush3.bf16.xpose.msra.mxu1 %v498_v43  ;;  %890 = vmatprep.mubr.msk.bf16.mxu1 %vm990_vm0, %v989_v0 }
 0x239   : > { %900 = vmatprep.subr.bf16.mxu1 %v989_v0 }
 0x23f   : > { %891 = vmatmul.mubr.msk.bf16.vlgmr.msra.gmra.mrb[8].mxu1 %vm239_vm1, %v490_v42 }
 0x240   : > { %901 = vmatpush3.bf16.xpose.msra.mxu1 %v623_v45  ;;  %902 = vmatprep.mubr.msk.bf16.mxu1 %vm990_vm0, %v989_v0 }
 0x247   : > { %903 = vmatmul.mubr.msk.bf16.vlgmr.msra.gmra.mrb[12].mxu1 %vm239_vm1, %v615_v46 }
 0x302   : > { %v351_v47 = vpop.f32.mrb[0].mxu1 }
 0x303   : > { %357 = vst.msk [vmem:[%s1112_s6] sm:$0xff] %vm239_vm1, %v351_v47  ;;  %v874_v48 = vpop.f32.mrb[1].mxu1 }
 0x304   : > { %v354_v49 = vpop.f32.mrb[2].mxu1 }
 0x305   : > { %v875_v50 = vpop.f32.mrb[3].mxu1 }
 0x30a   : > { %v409_v51 = vpop.f32.mrb[4].mxu1 }
 0x30b   : > { %v415_v52 = vmul.f32 0.35355338, %v409_v51  ;;  %v880_v53 = vpop.f32.mrb[5].mxu1 }
 0x30c   : > { %v412_v54 = vpop.f32.mrb[6].mxu1 }
 0x30d   : > { %v881_v55 = vpop.f32.mrb[7].mxu1  ;;  %v416_v56 = vsel %vm292_vm3, -1e+30, %v415_v52 }
 0x30e   : > { %v417_v57 = vsel %vm294_vm4, %v416_v56, -inf }
 0x30f   : > { %418 = vmax.xlane.f32.xlu1 %v417_v57 }
 0x312   : > { %v534_v58 = vpop.f32.mrb[8].mxu1 }
 0x313   : > { %v540_v59 = vmul.f32 0.35355338, %v534_v58  ;;  %v892_v60 = vpop.f32.mrb[9].mxu1 }
 0x314   : > { %v537_v61 = vpop.f32.mrb[10].mxu1 }
 0x315   : > { %v893_v62 = vpop.f32.mrb[11].mxu1  ;;  %v541_v63 = vsel %vm292_vm3, -1e+30, %v540_v59 }
 0x316   : > { %v542_v1 = vsel %vm294_vm4, %v541_v63, -inf }
 0x317   : > { %543 = vmax.xlane.f32.xlu0 %v542_v1 }
 0x31a   : > { %v659_v2 = vpop.f32.mrb[12].mxu1 }
 0x31b   : > { %v665_v3 = vmul.f32 0.35355338, %v659_v2  ;;  %v904_v4 = vpop.f32.mrb[13].mxu1 }
 0x31c   : > { %v662_v5 = vpop.f32.mrb[14].mxu1 }
 0x31d   : > { %v905_v6 = vpop.f32.mrb[15].mxu1  ;;  %v666_v7 = vsel %vm292_vm3, -1e+30, %v665_v3 }
 0x31e   : > { %v667_v8 = vsel %vm294_vm4, %v666_v7, -inf }
 0x31f   : > { %668 = vmax.xlane.f32.xlu1 %v667_v8 }
 0x330   : > { %429 = vrot.lane.b32.xlu1 %v1078_v22, %s996_s7 }
 0x39c   : > { %v419_v9 = vpop.xlane.xlu1 %418 }
 0x39d   : > { %v420_v10 = vsub.f32 %v416_v56, %v419_v9 }
 0x39f   : > { %v421_v11 = vmul.f32 1.442695, %v420_v10 }
 0x3a1   : > { %953 = vpow2.f32 %v421_v11 }
 0x3a4   : > { %v544_v12 = vpop.xlane.xlu0 %543 }
 0x3a5   : > { %v545_v14 = vsub.f32 %v541_v63, %v544_v12 }
 0x3a7   : > { %v546_v15 = vmul.f32 1.442695, %v545_v14 }
 0x3a9   : > { %955 = vpow2.f32 %v546_v15 }
 0x3ab   : > { %v954_v16 = vpop.eup %953 }
 0x3ac   : > { %v669_v17 = vpop.xlane.xlu1 %668  ;;  %v423_v18 = vsel %vm294_vm4, %v954_v16, 0.0 }
 0x3ad   : > { %v670_v13 = vsub.f32 %v666_v7, %v669_v17  ;;  %424 = vadd.xlane.f32.xlu0 %v423_v18 }
 0x3af   : > { %v671_v19 = vmul.f32 1.442695, %v670_v13 }
 0x3b0   : > { %v430_v20 = vpop.permute.xlu1 %429 }
 0x3b1   : > { %957 = vpow2.f32 %v671_v19  ;;  %v435_v21 = vsel %vm313_vm5, %v430_v20, 0 }
 0x3b2   : > { %883 = vmatpush3.bf16.msra.mxu0 %v435_v21 }
 0x3b3   : > { %v956_v22 = vpop.eup %955  ;;  %894 = vmatprep.subr.bf16.mxu0 %v989_v0 }
 0x3b4   : > { %v548_v23 = vsel %vm294_vm4, %v956_v22, 0.0 }
 0x3b5   : > { %549 = vadd.xlane.f32.xlu1 %v548_v23 }
 0x3bb   : > { %v958_v25 = vpop.eup %957 }
 0x3bc   : > { %v673_v27 = vsel %vm294_vm4, %v958_v25, 0.0 }
 0x3bd   : > { %674 = vadd.xlane.f32.xlu0 %v673_v27 }
 0x3c6   : > { %679 = vrot.lane.b32.xlu1 %v1086_v26, %s997_s8 }
 0x3d3   : > { %554 = vrot.lane.b32.xlu0 %v1082_v24, %s998_s9 }
 0x43a   : > { %v425_v28 = vpop.xlane.xlu0 %424 }
 0x43b   : > { %959 = vrcp.f32 %v425_v28 }
 0x442   : > { %v550_v29 = vpop.xlane.xlu1 %549 }
 0x443   : > { %961 = vrcp.f32 %v550_v29 }
 0x445   : > { %v960_v30 = vpop.eup %959 }
 0x446   : > { %v427_v31 = vmul.f32 %v960_v30, %v954_v16  ;;  %v680_v36 = vpop.permute.xlu1 %679 }
 0x447   : > { %v685_v38 = vsel %vm313_vm5, %v680_v36, 0 }
 0x448   : > { %v428_v32 = vpack.c.bf16 %v427_v31, %v427_v31 }
 0x44a   : > { %v675_v33 = vpop.xlane.xlu0 %674  ;;  %885 = vmatmul.mubr.msk.bf16.vlgmr.msra.gmra.mrb[4].mxu0 %vm294_vm4, %v428_v32 }
 0x44b   : > { %963 = vrcp.f32 %v675_v33  ;;  %896 = vmatprep.mubr.msk.bf16.mxu0 %vm990_vm0, %v989_v0 }
 0x44d   : > { %v962_v34 = vpop.eup %961 }
 0x44e   : > { %v552_v35 = vmul.f32 %v962_v34, %v956_v22  ;;  %v555_v26 = vpop.permute.xlu0 %554 }
 0x44f   : > { %v560_v24 = vsel %vm313_vm5, %v555_v26, 0 }
 0x450   : > { %895 = vmatpush3.bf16.msra.mxu0 %v560_v24  ;;  %v553_v37 = vpack.c.bf16 %v552_v35, %v552_v35 }
 0x451   : > { %906 = vmatprep.subr.bf16.mxu0 %v989_v0 }
 0x453   : > { %897 = vmatmul.mubr.msk.bf16.vlgmr.msra.gmra.mrb[8].mxu0 %vm294_vm4, %v553_v37 }
 0x454   : > { %907 = vmatpush3.bf16.msra.mxu0 %v685_v38  ;;  %908 = vmatprep.mubr.msk.bf16.mxu0 %vm990_vm0, %v989_v0 }
 0x455   : > { %v964_v39 = vpop.eup %963 }
 0x456   : > { %v677_v40 = vmul.f32 %v964_v39, %v958_v25 }
 0x458   : > { %v678_v41 = vpack.c.bf16 %v677_v40, %v677_v40 }
 0x45b   : > { %909 = vmatmul.mubr.msk.bf16.vlgmr.msra.gmra.mrb[12].mxu0 %vm294_vm4, %v678_v41 }
 0x51d   : > { %v471_v42 = vpop.f32.mrb[4].mxu0 }
 0x51e   : > { %478 = vrot.lane.b32.xlu1 %v471_v42, %s999_s10  ;;  %v886_v43 = vpop.f32.mrb[5].mxu0 }
 0x51f   : > { %v474_v44 = vpop.f32.mrb[6].mxu0 }
 0x520   : > { %v887_v45 = vpop.f32.mrb[7].mxu0 }
 0x526   : > { %v596_v46 = vpop.f32.mrb[8].mxu0 }
 0x527   : > { %603 = vrot.lane.b32.xlu0 %v596_v46, %s1000_s11  ;;  %v898_v47 = vpop.f32.mrb[9].mxu0 }
 0x528   : > { %v599_v48 = vpop.f32.mrb[10].mxu0 }
 0x529   : > { %v899_v0 = vpop.f32.mrb[11].mxu0 }
 0x52e   : > { %v721_v49 = vpop.f32.mrb[12].mxu0 }
 0x52f   : > { %728 = vrot.lane.b32.xlu1 %v721_v49, %s1001_s12  ;;  %v910_v50 = vpop.f32.mrb[13].mxu0 }
 0x530   : > { %v724_v51 = vpop.f32.mrb[14].mxu0 }
 0x531   : > { %v911_v52 = vpop.f32.mrb[15].mxu0 }
 0x590   : > { %v479_v53 = vpop.permute.xlu1 %478 }
 0x591   : > { %482 = vst.msk [vmem:[%s1112_s6] sm:$0xff] %vm481_vm6, %v479_v53 }
 0x599   : > { %v604_v54 = vpop.permute.xlu0 %603 }
 0x59a   : > { %607 = vst.msk [vmem:[%s1112_s6] sm:$0xff] %vm606_vm7, %v604_v54 }
 0x5a1   : > { %v729_v55 = vpop.permute.xlu1 %728 }
 0x5a2   : > { %732 = vst.msk [vmem:[%s1112_s6] sm:$0xff] %vm731_vm8, %v729_v55 }
 0x5a3 PF: > { %s13_s14 = sadd.s32 1, %s987_s14   ;;  %s1159_s12 = smov %s983_s13 }
 0x5a4   : > { %p10_p5 = scmp.ge.s32.totalorder %s13_s14, 4   ;;  %s1160_s13 = smov %s1162_s15 }
 0x5a6   :  { %12 = sbr.rel (!%p10_p5) target bundleno = 2 (0x2), region = 68 }

// kernel: transformer_decoder_forward.39
= control target key start
LH: loop header
LB: loop body
LE: loop exit
PB: predicated region body
PF: predicated region fallthrough
CT: control target
= control target key end

     0   :  { %s359_s9 = smov 0   ;;  %s361_s10 = smov 0   ;;  %s383_s0 = inlined_call_operand.vmem [shape: f32[16,16], index: 0, kind: input, shape index: {}, may-alias: {0,2}]   ;;  %s384_s1 = inlined_call_operand.vmem [shape: f32[16,1], index: 1, kind: input, shape index: {}]   ;;  %s385_s2 = inlined_call_operand.vmem [shape: f32[16,16], index: 2, kind: output, shape index: {}, may-alias: {0,2}]  }
   0x1   :  { %s363_s11 = smov 0  }
   0x2 LB: > { %s24_s12 = sadd.s32 1, %s337_s10  ;;  %p287_p0 = scmp.ge.s32.totalorder %s341_s11, 1  ;;  %s341_s11 = sphi %s363_s11, %s12_s11   ;;  %s337_s10 = sphi %s361_s10, %s387_s10   ;;  %s333_s9 = sphi %s359_s9, %s386_s9  }
   0x3   : > { %p26_p1 = scmp.ge.s32.totalorder %s24_s12, 2  ;;  %p139_p2 = scmp.lt.s32.totalorder %s341_s11, 3 }
   0x5   : > { %s389_s12 = smov (%p26_p1, %s24_s12), 0  ;;  %p140_p3 = pnand %p287_p0, %p139_p2 }
   0x6   : > { %p169_p4 = scmp.lt.s32.totalorder (!%p140_p3), %s333_s9, 1  ;;  %v343_v0 = vmov (!%p140_p3), 0   ;;  %vm195_vm0 = vcmask (!%p140_p3), 130048  }
   0x7   : > { %143 = sbr.rel (%p140_p3) target bundleno = 149 (0x95), region = 28  ;;  %318 = vset.pattern.permute.xlu0 (!%p140_p3), %v343_v0 }
   0xe   : > { %s391_s9 = smov (!%p169_p4, %s333_s9), 1 }
   0xf   : > { %s288_s13 = sshll.u32 %s391_s9, 3 }
  0x10   : > { %s179_s16 = scalar_lea.vmem %s384_s1, %s288_s13  ;;  %s175_s19 = scalar_lea.vmem %s383_s0, %s288_s13 }
  0x11   : > { %v188_v1 = vld [vmem:[%s179_s16] sm:$0xff]  ;;  %s186_s22 = scalar_lea.vmem %s385_s2, %s288_s13 }
  0x12   : > { %191 = vperm.xlu0 %318, %v188_v1   ;;  %v187_v2 = vld [vmem:[%s175_s19] sm:$0xff] }
  0x91   : > { %v192_v3 = vpop.permute.xlu0 %191 }
  0x92   : > { %v194_v4 = vsub.f32 %v187_v2, %v192_v3 }
  0x94   : > { %196 = vst.msk [vmem:[%s186_s22] sm:$0xff] %vm195_vm0, %v194_v4 }
  0x95 PF: > { %s12_s11 = sadd.s32 1, %s341_s11   ;;  %s386_s9 = smov %s337_s10 }
  0x96   : > { %p9_p5 = scmp.ge.s32.totalorder %s12_s11, 4   ;;  %s387_s10 = smov %s389_s12 }
  0x98   :  { %11 = sbr.rel (!%p9_p5) target bundleno = 2 (0x2), region = 61 }

// kernel: transformer_decoder_forward.34
= control target key start
LH: loop header
LB: loop body
LE: loop exit
PB: predicated region body
PF: predicated region fallthrough
CT: control target
= control target key end

     0   :  { %10 = vsyncpa [#allocation3], 0  ;;  %s1431_s0 = inlined_call_operand.vmem [shape: f32[2,8,32], index: 0, kind: input, shape index: {}]   ;;  %s1432_s1 = inlined_call_operand.vmem [shape: f32[2,10,64], index: 1, kind: input, shape index: {}]   ;;  %s1433_s2 = inlined_call_operand.vmem [shape: f32[2,1,10], index: 2, kind: input, shape index: {}]   ;;  %s1434_s3 = inlined_call_operand.vmem [shape: f32[2,8,32], index: 3, kind: output, shape index: {0}]   ;;  %s1435_s4 = inlined_call_operand.hbm [shape: f32[2,8,10], index: 4, kind: output, shape index: {1}]  }
   0x1   :  { %12 = vsyncpa [#allocation3 + $0x1], 0  ;;  %s1216_s15 = smov 0   ;;  %s1218_s16 = smov 0  }
   0x2   :  { %s1220_s17 = smov 0   ;;  %s1222_s18 = smov 0  }
   0x3   :  { %s1224_s19 = smov 0   ;;  %s1226_s20 = smov 0  }
   0x4 LB: > { %s926_s21 = sadd.s32 4294967295, %s1175_s20   ;;  %s927_s22 = sadd.s32 4294967294, %s1175_s20   ;;  %s1175_s20 = sphi %s1226_s20, %s18_s20   ;;  %s1171_s19 = sphi %s1224_s19, %s1442_s19   ;;  %s1167_s18 = sphi %s1222_s18, %s1441_s18   ;;  %s1163_s17 = sphi %s1220_s17, %s1440_s17   ;;  %s1159_s16 = sphi %s1218_s16, %s1439_s16   ;;  %s1155_s15 = sphi %s1216_s15, %s1438_s15  }
   0x5   : > { %s30_s23 = sadd.s32 1, %s1171_s19  ;;  %s147_s24 = sadd.s32 1, %s1163_s17 }
   0x6   : > { %p32_p0 = scmp.ge.s32.totalorder %s30_s23, 2  ;;  %p157_p1 = scmp.ne.s32.totalorder %s1163_s17, %s1159_s16 }
   0x7   : > { %p158_p2 = scmp.eq.s32.totalorder %s926_s21, 1  ;;  %p163_p3 = scmp.ne.s32.totalorder %s1159_s16, %s1155_s15 }
   0x8   : > { %s1444_s23 = smov (%p32_p0, %s30_s23), 0  ;;  %p164_p5 = scmp.eq.s32.totalorder %s927_s22, 1 }
   0x9   : > { %p1256_p4 = por %p158_p2, %p157_p1  ;;  %s142_s26 = ssub.s32 %s1171_s19, %s1444_s23 }
   0xa   : > { %p930_p6 = scmp.ge.s32.totalorder %s1175_s20, 1  ;;  %p145_p7 = scmp.eq.s32.totalorder %s142_s26, 0 }
   0xb   : > { %p1263_p8 = por %p164_p5, %p163_p3  ;;  %p206_p9 = scmp.lt.s32.totalorder %s1175_s20, 3 }
   0xc   : > { %s1269_s28 = scalar_select %p145_p7, %s1163_s17, %s147_s24  }
   0xd   : > { %p207_p10 = pnand %p930_p6, %p206_p9 }
   0xe   : > { %p249_p11 = scmp.lt.s32.totalorder (!%p207_p10), %s1167_s18, 1  ;;  %v1177_v0 = vmov (!%p207_p10), 0.0   ;;  %vm1178_vm0 = vmmov (!%p207_p10), 0   ;;  %vm279_vm1 = vcmask (!%p207_p10), 64512   ;;  %v328_v7 = vlaneseq (!%p207_p10)  ;;  %s1180_s21 = smov (!%p207_p10), 96  }
   0xf   : > { %210 = sbr.rel (%p207_p10) target bundleno = 1455 (0x5af), region = 32  ;;  %965 = vmatprep.subr.bf16.mxu0 (!%p207_p10), %v1177_v0  ;;  %967 = vmatprep.mubr.msk.bf16.mxu0 (!%p207_p10), %vm1178_vm0, %v1177_v0  ;;  %v1179_v11 = vmov (!%p207_p10), 0   ;;  %vm334_vm4 = vcmask (!%p207_p10), 80896   ;;  %s1181_s22 = smov (!%p207_p10), 120   ;;  %vm353_vm5 = vcmask (!%p207_p10), 1044480  }
  0x10   : > { %971 = vmatprep.subr.bf16.mxu1 (!%p207_p10), %v1177_v0  ;;  %973 = vmatprep.mubr.msk.bf16.mxu1 (!%p207_p10), %vm1178_vm0, %v1177_v0  ;;  %v329_v9 = vshrl.u32 (!%p207_p10), %v328_v7, 7  ;;  %s1182_s24 = smov (!%p207_p10), 112   ;;  %s1183_s26 = smov (!%p207_p10), 104  }
  0x11   : > { %s246_s9 = sand.u32 (!%p207_p10), 1, %s1159_s16   ;;  %s1187_s12 = smov (!%p207_p10), 8  }
  0x12   : > { %v330_v10 = vsub.s32 (!%p207_p10), 0, %v329_v9  ;;  %s931_s10 = sshll.u32 (!%p207_p10), %s246_s9, 3  ;;  %s945_s13 = sshll.u32 (!%p207_p10), %s1167_s18, 7 }
  0x13   : > { %s1188_s6 = smov (!%p207_p10), [#allocation2]  }
  0x16   : > { %s1276_s29 = scalar_select %p249_p11, %s1167_s18, 1 }
  0x18   : > { %s948_s30 = sshll.u32 %s1276_s29, 4  ;;  %s932_s5 = sshll.u32 %s1276_s29, 3 }
  0x19   : > { %s1286_s8 = scalar_lea.vmem %s1432_s1, %s948_s30  ;;  %s255_s11 = scalar_lea.vmem %s1431_s0, %s932_s5 }
  0x1a   : > { %v276_v1 = vld [vmem:[%s1286_s8] sm:$0xff]  ;;  %v277_v2 = vld [vmem:[%s1286_s8 + $0x8] sm:$0x3]  ;;  %s263_s14 = scalar_lea.vmem %s1433_s2, %s1276_s29  ;;  %s1349_s7 = scalar_lea.vmem %s1434_s3, %s932_s5 }
  0x1b   : > { %v278_v3 = vpack.c.bf16 %v277_v2, %v276_v1  ;;  %v274_v5 = vld [vmem:[%s255_s11] sm:$0xff]  ;;  %v401_v21 = vld [vmem:[%s1286_s8 + $0x8] sm:$0x3]  ;;  %s1184_s29 = smov 88   ;;  %s1185_s5 = smov 72  }
  0x1c   : > { %v275_v6 = vpack.c.bf16 %v274_v5, %v274_v5  ;;  %v272_v8 = vld [vmem:[%s263_s14] sm:$0x1]  ;;  %v1311_v22 = vpack.c.bf16 %v401_v21, %v276_v1  ;;  %v527_v23 = vld [vmem:[%s1286_s8 + $0x8] sm:$0x3]  ;;  %s248_s11 = scalar_lea.vmem [#allocation2], %s931_s10 }
  0x1d   : > { %v284_v4 = vsel %vm279_vm1, %v278_v3, 0  ;;  %vm273_vm2 = vcmp.gt.f32.partialorder %v272_v8, 0.5  ;;  %348 = vrot.lane.b32.xlu1 %v278_v3, %s1180_s21  ;;  %v1315_v24 = vpack.c.bf16 %v527_v23, %v276_v1  ;;  %v653_v25 = vld [vmem:[%s1286_s8 + $0x8] sm:$0x3]  ;;  %s1186_s8 = smov 80   ;;  %s803_s14 = sshll.u32 %s248_s11, 4  ;;  %s804_s14 = int_to_ptr.vmem [resolvable:$true] %s803_s14 }
  0x1e   : > { %966 = vmatpush3.bf16.xpose.msra.mxu0 %v284_v4  ;;  %v327_v12 = vsel %vm273_vm2, 1, %v1179_v11  ;;  %v1319_v26 = vpack.c.bf16 %v653_v25, %v276_v1  ;;  %s1097_s30 = scalar_lea.vmem %s804_s14, 128 }
  0x1f   : > { %983 = vmatprep.subr.bf16.mxu0 %v1177_v0  ;;  %v1304_v13 = vrot.slane %v327_v12, %v330_v10  ;;  %p1098_p12 = scmp.ne.s32.totalorder %s804_s14, %s1097_s30 }
  0x21   : > { %vm332_vm3 = vcmp.eq.s32.totalorder %v1304_v13, 1  ;;  %407 = vrot.lane.b32.xlu1 %v1311_v22, %s1181_s22  ;;  %p1099_p13 = pnand %p1098_p12, %p1256_p4 }
  0x23   : > { %p1100_p0 = pneg %p1099_p13 }
  0x25   : > { %968 = vmatmul.mubr.msk.bf16.vlgmr.msra.gmra.mrb[0].mxu0 %vm279_vm1, %v275_v6  ;;  %533 = vrot.lane.b32.xlu1 %v1315_v24, %s1182_s24 }
  0x26   : > { %985 = vmatprep.mubr.msk.bf16.mxu0 %vm1178_vm0, %v1177_v0 }
  0x29   : > { %530 = vrot.lane.b32.xlu1 %v275_v6, %s1182_s24  ;;  %s1387_s24 = scalar_lea.hbm %s1435_s4, %s945_s13 }
  0x2d   : > { %659 = vrot.lane.b32.xlu1 %v1319_v26, %s1183_s26 }
  0x31   : > { %656 = vrot.lane.b32.xlu1 %v275_v6, %s1183_s26  ;;  %s786_s26 = scalar_lea.sflag [#allocation3], %s246_s9 }
  0x8f   : > { %v349_v32 = vpop.permute.xlu1 %348 }
  0x90   : > { %v355_v33 = vsel %vm353_vm5, %v349_v32, 0 }
  0x91   : > { %972 = vmatpush3.bf16.msra.mxu1 %v355_v33 }
  0x92   : > { %977 = vmatprep.subr.bf16.mxu1 %v1177_v0 }
  0x93   : > { %v408_v36 = vpop.permute.xlu1 %407 }
  0x94   : > { %v413_v38 = vsel %vm279_vm1, %v408_v36, 0 }
  0x97   : > { %v534_v40 = vpop.permute.xlu1 %533 }
  0x98   : > { %v539_v43 = vsel %vm279_vm1, %v534_v40, 0 }
  0x9b   : > { %v531_v42 = vpop.permute.xlu1 %530 }
  0x9f   : > { %v660_v44 = vpop.permute.xlu1 %659 }
  0xa0   : > { %v665_v45 = vsel %vm279_vm1, %v660_v44, 0 }
  0xa3   : > { %v657_v46 = vpop.permute.xlu1 %656 }
  0xf8   : > { %v320_v14 = vpop.f32.mrb[0].mxu0 }
  0xf9   : > { %v326_v15 = vmul.f32 0.35355338, %v320_v14  ;;  %v969_v16 = vpop.f32.mrb[1].mxu0 }
  0xfa   : > { %v323_v17 = vpop.f32.mrb[2].mxu0 }
  0xfb   : > { %v970_v18 = vpop.f32.mrb[3].mxu0  ;;  %v333_v19 = vsel %vm332_vm3, -1e+30, %v326_v15 }
  0xfc   : > { %v335_v20 = vsel %vm334_vm4, %v333_v19, -inf }
  0xfd   : > { %336 = vmax.xlane.f32.xlu0 %v335_v20 }
 0x18a   : > { %v337_v27 = vpop.xlane.xlu0 %336 }
 0x18b   : > { %v338_v28 = vsub.f32 %v333_v19, %v337_v27 }
 0x18d   : > { %v339_v29 = vmul.f32 1.442695, %v338_v28 }
 0x18f   : > { %1081 = vpow2.f32 %v339_v29 }
 0x199   : > { %v1082_v30 = vpop.eup %1081 }
 0x19a   : > { %v341_v31 = vsel %vm334_vm4, %v1082_v30, 0.0 }
 0x19b   : > { %342 = vadd.xlane.f32.xlu0 %v341_v31 }
 0x1b1   : > { %404 = vrot.lane.b32.xlu0 %v275_v6, %s1181_s22 }
 0x228   : > { %v343_v34 = vpop.xlane.xlu0 %342 }
 0x229   : > { %1083 = vrcp.f32 %v343_v34 }
 0x22c   : > { %v405_v41 = vpop.permute.xlu0 %404 }
 0x233   : > { %v1084_v35 = vpop.eup %1083 }
 0x234   : > { %v1325_v37 = vmul.f32 %v1084_v35, %v1082_v30 }
 0x236   : > { %v346_v39 = vpack.c.bf16 %v1325_v37, %v1325_v37 }
 0x238   : > { %974 = vmatmul.mubr.msk.bf16.vlgmr.msra.gmra.mrb[0].mxu1 %vm334_vm4, %v346_v39 }
 0x239   : > { %978 = vmatpush3.bf16.xpose.msra.mxu1 %v413_v38  ;;  %979 = vmatprep.mubr.msk.bf16.mxu1 %vm1178_vm0, %v1177_v0 }
 0x23a   : > { %989 = vmatprep.subr.bf16.mxu1 %v1177_v0 }
 0x240   : > { %980 = vmatmul.mubr.msk.bf16.vlgmr.msra.gmra.mrb[4].mxu1 %vm279_vm1, %v405_v41 }
 0x241   : > { %990 = vmatpush3.bf16.xpose.msra.mxu1 %v539_v43  ;;  %991 = vmatprep.mubr.msk.bf16.mxu1 %vm1178_vm0, %v1177_v0 }
 0x242   : > { %1001 = vmatprep.subr.bf16.mxu1 %v1177_v0 }
 0x248   : > { %992 = vmatmul.mubr.msk.bf16.vlgmr.msra.gmra.mrb[8].mxu1 %vm279_vm1, %v531_v42 }
 0x249   : > { %1002 = vmatpush3.bf16.xpose.msra.mxu1 %v665_v45  ;;  %1003 = vmatprep.mubr.msk.bf16.mxu1 %vm1178_vm0, %v1177_v0 }
 0x250   : > { %1004 = vmatmul.mubr.msk.bf16.vlgmr.msra.gmra.mrb[12].mxu1 %vm279_vm1, %v657_v46 }
 0x30b   : > { %v391_v47 = vpop.f32.mrb[0].mxu1 }
 0x30c   : > { %397 = vst.msk [vmem:[%s1349_s7] sm:$0xff] %vm279_vm1, %v391_v47  ;;  %v975_v48 = vpop.f32.mrb[1].mxu1 }
 0x30d   : > { %v394_v49 = vpop.f32.mrb[2].mxu1 }
 0x30e   : > { %v976_v50 = vpop.f32.mrb[3].mxu1 }
 0x313   : > { %v449_v51 = vpop.f32.mrb[4].mxu1 }
 0x314   : > { %v455_v52 = vmul.f32 0.35355338, %v449_v51  ;;  %v981_v53 = vpop.f32.mrb[5].mxu1 }
 0x315   : > { %v452_v54 = vpop.f32.mrb[6].mxu1 }
 0x316   : > { %v982_v55 = vpop.f32.mrb[7].mxu1  ;;  %v456_v56 = vsel %vm332_vm3, -1e+30, %v455_v52 }
 0x317   : > { %v457_v57 = vsel %vm334_vm4, %v456_v56, -inf }
 0x318   : > { %458 = vmax.xlane.f32.xlu1 %v457_v57 }
 0x31b   : > { %v575_v58 = vpop.f32.mrb[8].mxu1 }
 0x31c   : > { %v581_v59 = vmul.f32 0.35355338, %v575_v58  ;;  %v993_v60 = vpop.f32.mrb[9].mxu1 }
 0x31d   : > { %v578_v61 = vpop.f32.mrb[10].mxu1 }
 0x31e   : > { %v994_v62 = vpop.f32.mrb[11].mxu1  ;;  %v582_v63 = vsel %vm332_vm3, -1e+30, %v581_v59 }
 0x31f   : > { %v583_v1 = vsel %vm334_vm4, %v582_v63, -inf }
 0x320   : > { %584 = vmax.xlane.f32.xlu0 %v583_v1 }
 0x323   : > { %v701_v2 = vpop.f32.mrb[12].mxu1 }
 0x324   : > { %v707_v3 = vmul.f32 0.35355338, %v701_v2  ;;  %v1005_v4 = vpop.f32.mrb[13].mxu1 }
 0x325   : > { %v704_v5 = vpop.f32.mrb[14].mxu1 }
 0x326   : > { %v1006_v6 = vpop.f32.mrb[15].mxu1  ;;  %v708_v7 = vsel %vm332_vm3, -1e+30, %v707_v3 }
 0x327   : > { %v709_v8 = vsel %vm334_vm4, %v708_v7, -inf }
 0x328   : > { %710 = vmax.xlane.f32.xlu1 %v709_v8 }
 0x339   : > { %469 = vrot.lane.b32.xlu1 %v1311_v22, %s1184_s29  ;;  %s1101_s29 = sshll.u32 %s1188_s6, 4  ;;  %s1102_s29 = int_to_ptr.vmem [resolvable:$false] %s1101_s29 }
 0x33a   : > { %p1104_p1 = scmp.lt.s32.totalorder %s804_s14, %s1102_s29 }
 0x3a5   : > { %v459_v9 = vpop.xlane.xlu1 %458 }
 0x3a6   : > { %v460_v10 = vsub.f32 %v456_v56, %v459_v9 }
 0x3a8   : > { %v461_v11 = vmul.f32 1.442695, %v460_v10 }
 0x3aa   : > { %1085 = vpow2.f32 %v461_v11 }
 0x3ad   : > { %v585_v12 = vpop.xlane.xlu0 %584 }
 0x3ae   : > { %v586_v14 = vsub.f32 %v582_v63, %v585_v12 }
 0x3b0   : > { %v587_v15 = vmul.f32 1.442695, %v586_v14 }
 0x3b2   : > { %1087 = vpow2.f32 %v587_v15 }
 0x3b4   : > { %v1086_v16 = vpop.eup %1085 }
 0x3b5   : > { %v711_v17 = vpop.xlane.xlu1 %710  ;;  %v463_v18 = vsel %vm334_vm4, %v1086_v16, 0.0 }
 0x3b6   : > { %v712_v13 = vsub.f32 %v708_v7, %v711_v17  ;;  %464 = vadd.xlane.f32.xlu0 %v463_v18 }
 0x3b8   : > { %v713_v19 = vmul.f32 1.442695, %v712_v13 }
 0x3b9   : > { %v470_v20 = vpop.permute.xlu1 %469 }
 0x3ba   : > { %1089 = vpow2.f32 %v713_v19  ;;  %v475_v21 = vsel %vm353_vm5, %v470_v20, 0 }
 0x3bb   : > { %984 = vmatpush3.bf16.msra.mxu0 %v475_v21 }
 0x3bc   : > { %v1088_v22 = vpop.eup %1087  ;;  %995 = vmatprep.subr.bf16.mxu0 %v1177_v0 }
 0x3bd   : > { %v589_v23 = vsel %vm334_vm4, %v1088_v22, 0.0 }
 0x3be   : > { %590 = vadd.xlane.f32.xlu1 %v589_v23 }
 0x3c4   : > { %v1090_v25 = vpop.eup %1089 }
 0x3c5   : > { %v715_v27 = vsel %vm334_vm4, %v1090_v25, 0.0 }
 0x3c6   : > { %716 = vadd.xlane.f32.xlu0 %v715_v27 }
 0x3cf   : > { %721 = vrot.lane.b32.xlu1 %v1319_v26, %s1185_s5  ;;  %s1103_s5 = scalar_lea.vmem %s1102_s29, 256 }
 0x3d0   : > { %p1105_p2 = scmp.lt.s32.totalorder %s1103_s5, %s1097_s30 }
 0x3d2   : > { %p1106_p3 = por %p1105_p2, %p1104_p1 }
 0x3d4   : > { %p1107_p5 = pnand %p1106_p3, %p1100_p0 }
 0x3dc   : > { %595 = vrot.lane.b32.xlu0 %v1315_v24, %s1186_s8 }
 0x443   : > { %v465_v28 = vpop.xlane.xlu0 %464 }
 0x444   : > { %1091 = vrcp.f32 %v465_v28 }
 0x44b   : > { %v591_v29 = vpop.xlane.xlu1 %590 }
 0x44c   : > { %1093 = vrcp.f32 %v591_v29 }
 0x44e   : > { %v1092_v30 = vpop.eup %1091 }
 0x44f   : > { %v467_v31 = vmul.f32 %v1092_v30, %v1086_v16  ;;  %v722_v36 = vpop.permute.xlu1 %721 }
 0x450   : > { %v727_v39 = vsel %vm353_vm5, %v722_v36, 0 }
 0x451   : > { %v468_v32 = vpack.c.bf16 %v467_v31, %v467_v31  ;;  %v523_v40 = vadd.f32 %v467_v31, %v1325_v37 }
 0x453   : > { %v717_v33 = vpop.xlane.xlu0 %716  ;;  %986 = vmatmul.mubr.msk.bf16.vlgmr.msra.gmra.mrb[4].mxu0 %vm334_vm4, %v468_v32 }
 0x454   : > { %1095 = vrcp.f32 %v717_v33  ;;  %997 = vmatprep.mubr.msk.bf16.mxu0 %vm1178_vm0, %v1177_v0 }
 0x456   : > { %v1094_v34 = vpop.eup %1093 }
 0x457   : > { %v593_v26 = vmul.f32 %v1094_v34, %v1088_v22  ;;  %v596_v35 = vpop.permute.xlu0 %595 }
 0x458   : > { %v601_v24 = vsel %vm353_vm5, %v596_v35, 0 }
 0x459   : > { %996 = vmatpush3.bf16.msra.mxu0 %v601_v24  ;;  %v594_v38 = vpack.c.bf16 %v593_v26, %v593_v26  ;;  %v649_v43 = vadd.f32 %v593_v26, %v523_v40 }
 0x45a   : > { %1007 = vmatprep.subr.bf16.mxu0 %v1177_v0 }
 0x45c   : > { %998 = vmatmul.mubr.msk.bf16.vlgmr.msra.gmra.mrb[8].mxu0 %vm334_vm4, %v594_v38 }
 0x45d   : > { %1008 = vmatpush3.bf16.msra.mxu0 %v727_v39  ;;  %1009 = vmatprep.mubr.msk.bf16.mxu0 %vm1178_vm0, %v1177_v0 }
 0x45e   : > { %v1096_v41 = vpop.eup %1095 }
 0x45f   : > { %v719_v42 = vmul.f32 %v1096_v41, %v1090_v25 }
 0x461   : > { %v720_v44 = vpack.c.bf16 %v719_v42, %v719_v42  ;;  %v775_v45 = vadd.f32 %v719_v42, %v649_v43 }
 0x463   : > { %v776_v46 = vmul.f32 0.25, %v775_v45 }
 0x464   : > { %1010 = vmatmul.mubr.msk.bf16.vlgmr.msra.gmra.mrb[12].mxu0 %vm334_vm4, %v720_v44 }
 0x465   : > { %777 = vst.msk [vmem:[%s248_s11] sm:$0xff] %vm334_vm4, %v776_v46 }
 0x526   : > { %v511_v47 = vpop.f32.mrb[4].mxu0 }
 0x527   : > { %518 = vrot.lane.b32.xlu1 %v511_v47, %s1187_s12  ;;  %v987_v0 = vpop.f32.mrb[5].mxu0 }
 0x528   : > { %v514_v48 = vpop.f32.mrb[6].mxu0 }
 0x529   : > { %v988_v37 = vpop.f32.mrb[7].mxu0 }
 0x52a   : > { %1110 = shalt.err (!%p1107_p5)
}
 0x52b   : > { %s1111_s18 = scalar_lea.hbm %s1387_s24, 128  ;;  %s1115_s10 = scalar_lea.hbm %s1435_s4, 256 }
 0x52c   : > { %p1112_p6 = scmp.ne.s32.totalorder %s1387_s24, %s1111_s18  ;;  %p1116_p10 = scmp.lt.u32.totalorder %s1387_s24, %s1435_s4 }
 0x52d   : > { %p1117_p11 = scmp.lt.u32.totalorder %s1115_s10, %s1111_s18  ;;  %p1119_p13 = scmp.lt.u32.totalorder %s1111_s18, %s1387_s24 }
 0x52e   : > { %p1113_p7 = pnand %p1112_p6, %p1256_p4 }
 0x52f   : > { %p1118_p12 = por %p1117_p11, %p1116_p10 }
 0x530   : > { %p1114_p9 = pneg %p1113_p7 }
 0x531   : > { %p1120_p0 = por %p1119_p13, %p1118_p12 }
 0x533   : > { %p1121_p1 = pnand %p1120_p0, %p1114_p9 }
 0x535   : > { %1124 = shalt.err (!%p1121_p1)
}
 0x536   : > { %1013 = dma.vmem_to_hbm [thread:$0]  (%p1256_p4), %s804_s14, 128, %s1387_s24, %s786_s26   ;;  %v637_v49 = vpop.f32.mrb[8].mxu0  ;;  %vm521_vm6 = vcmask 130112   ;;  %vm647_vm7 = vcmask 195712   ;;  %vm773_vm8 = vcmask 261312  }
 0x537   : > { %s1189_s13 = smov 16   ;;  %v999_v50 = vpop.f32.mrb[9].mxu0  ;;  %s1190_s21 = smov 24  }
 0x538   : > { %644 = vrot.lane.b32.xlu0 %v637_v49, %s1189_s13  ;;  %v640_v51 = vpop.f32.mrb[10].mxu0 }
 0x539   : > { %v1000_v52 = vpop.f32.mrb[11].mxu0 }
 0x53a   : > { %v763_v53 = vpop.f32.mrb[12].mxu0 }
 0x53b   : > { %770 = vrot.lane.b32.xlu1 %v763_v53, %s1190_s21  ;;  %v1011_v54 = vpop.f32.mrb[13].mxu0 }
 0x53c   : > { %v766_v55 = vpop.f32.mrb[14].mxu0 }
 0x53d   : > { %v1012_v56 = vpop.f32.mrb[15].mxu0 }
 0x599   : > { %v519_v57 = vpop.permute.xlu1 %518 }
 0x59a   : > { %522 = vst.msk [vmem:[%s1349_s7] sm:$0xff] %vm521_vm6, %v519_v57 }
 0x5aa   : > { %v645_v58 = vpop.permute.xlu0 %644 }
 0x5ab   : > { %648 = vst.msk [vmem:[%s1349_s7] sm:$0xff] %vm647_vm7, %v645_v58 }
 0x5ad   : > { %v771_v59 = vpop.permute.xlu1 %770 }
 0x5ae   : > { %774 = vst.msk [vmem:[%s1349_s7] sm:$0xff] %vm773_vm8, %v771_v59 }
 0x5af PF: > { %p1019_p4 = scmp.ge.s32.totalorder %s1175_s20, 2  ;;  %s825_s25 = sand.u32 1, %s1155_s15  }
 0x5b0   : > { %s826_s14 = scalar_lea.sflag [#allocation3], %s825_s25 }
 0x5b1   : > { %p1016_p2 = pnand %p1019_p4, %p1263_p8 }
 0x5b3   : > { %1150 = dma.done.wait (!%p1016_p2), %s826_s14, 128  }
 0x5b4   : > { %1152 = vsyncadd (!%p1016_p2), %s826_s14, 4294967168  ;;  %s18_s20 = sadd.s32 1, %s1175_s20   ;;  %s1438_s15 = smov %s1159_s16 }
 0x5b5   : > { %p15_p3 = scmp.ge.s32.totalorder %s18_s20, 4   ;;  %s1439_s16 = smov %s1163_s17 }
 0x5b6   : > { %s1440_s17 = smov %s1269_s28  ;;  %s1441_s18 = smov %s1171_s19 }
 0x5b7   : > { %s1442_s19 = smov %s1444_s23  ;;  %17 = sbr.rel (!%p15_p3) target bundleno = 4 (0x4), region = 85 }
 0x5be   :  { %831 = vsyncpa [#allocation3], 1 }
 0x5bf   :  { %833 = vsyncpa [#allocation3 + $0x1], 1 }

// kernel: transformer_decoder_forward.38
= control target key start
LH: loop header
LB: loop body
LE: loop exit
PB: predicated region body
PF: predicated region fallthrough
CT: control target
= control target key end

     0   :  { %s673_s15 = smov 0   ;;  %s675_s16 = smov 0   ;;  %s733_s0 = inlined_call_operand.vmem [shape: f32[16,32], index: 0, kind: input, shape index: {}]   ;;  %s734_s1 = inlined_call_operand.vmem [shape: bf16[32,16], index: 1, kind: input, shape index: {}]   ;;  %s735_s2 = inlined_call_operand.vmem [shape: f32[1,16], index: 2, kind: input, shape index: {}]   ;;  %s736_s3 = inlined_call_operand.vmem [shape: f32[16,16], index: 3, kind: output, shape index: {0}]   ;;  %s737_s4 = inlined_call_operand.vmem [shape: f32[16,1], index: 4, kind: output, shape index: {1}]  }
   0x1   :  { %s677_s17 = smov 0  }
   0x2 LB: > { %s34_s18 = sadd.s32 1, %s638_s16  ;;  %p562_p0 = scmp.ge.s32.totalorder %s642_s17, 1  ;;  %s642_s17 = sphi %s677_s17, %s15_s17   ;;  %s638_s16 = sphi %s675_s16, %s739_s16   ;;  %s634_s15 = sphi %s673_s15, %s738_s15  }
   0x3   : > { %p36_p1 = scmp.ge.s32.totalorder %s34_s18, 2  ;;  %p214_p2 = scmp.lt.s32.totalorder %s642_s17, 3 }
   0x5   : > { %s741_s18 = smov (%p36_p1, %s34_s18), 0  ;;  %p215_p3 = pnand %p562_p0, %p214_p2 }
   0x6   : > { %v612_v0 = vld [vmem:[%s734_s1] sm:$0xff] (!%p215_p3)   ;;  %v644_v1 = vmov (!%p215_p3), 0.0   ;;  %v613_v2 = vld [vmem:[%s734_s1 + $0x8] sm:$0xff] (!%p215_p3)   ;;  %vm645_vm0 = vmmov (!%p215_p3), 0   ;;  %p259_p4 = scmp.lt.s32.totalorder (!%p215_p3), %s634_s15, 1  ;;  %vm302_vm1 = vcmask (!%p215_p3), 130048  }
   0x7   : > { %218 = sbr.rel (%p215_p3) target bundleno = 701 (0x2bd), region = 32  ;;  %575 = vmatprep.subr.bf16.mxu0 (!%p215_p3), %v644_v1  ;;  %579 = vmatprep.mubr.msk.bf16.mxu0 (!%p215_p3), %vm645_vm0, %v644_v1  ;;  %303 = vst.msk [vmem:[#allocation2] sm:$0xff] (!%p215_p3), %vm302_vm1, %v644_v1  ;;  %vm323_vm2 = vcmask (!%p215_p3), 261120   ;;  %vm296_vm3 = vcmask (!%p215_p3), 7168   ;;  %v646_v5 = vmov (!%p215_p3), -inf   ;;  %v647_v16 = vmov (!%p215_p3), 0  }
   0x8   : > { %576 = vmatpush3.bf16.msra.mxu0 (!%p215_p3), %v612_v0  ;;  %297 = vst.msk [vmem:[#allocation3] sm:$0xff] (!%p215_p3), %vm296_vm3, %v646_v5  ;;  %298 = vst.msk [vmem:[#allocation4] sm:$0xff] (!%p215_p3), %vm296_vm3, %v644_v1  ;;  %v569_v12 = vld [vmem:[%s735_s2] ss:$0 sm:$0xff] (!%p215_p3)  ;;  %611 = vset.pattern.permute.xlu0 (!%p215_p3), %v647_v16 }
   0x9   : > { %577 = vmatprep.subr.bf16.mxu0 (!%p215_p3), %v644_v1 }
   0xc   : > { %578 = vmatpush3.bf16.msra.mxu0 (!%p215_p3), %v613_v2 }
   0xe   : > { %s743_s15 = smov (!%p259_p4, %s634_s15), 1  ;;  %v304_v6 = vld [vmem:[#allocation2] sm:$0xff] }
   0xf   : > { %s698_s23 = sshll.u32 %s743_s15, 3  ;;  %v383_v17 = vld [vmem:[#allocation3] sm:$0xff]  ;;  %v388_v28 = vld [vmem:[#allocation4] sm:$0xff] }
  0x10   : > { %s265_s26 = scalar_lea.vmem %s733_s0, %s698_s23  ;;  %s284_s5 = scalar_lea.vmem %s736_s3, %s698_s23 }
  0x11   : > { %v305_v3 = vld [vmem:[%s265_s26] sm:$0xff]  ;;  %s288_s8 = scalar_lea.vmem %s737_s4, %s698_s23 }
  0x12   : > { %v306_v4 = vpack.c.bf16 %v305_v3, %v305_v3 }
  0x14   : > { %580 = vmatmul.mubr.msk.bf16.vlgmr.msra.gmra.mrb[0].mxu0 %vm323_vm2, %v306_v4 }
  0xe7   : > { %v361_v7 = vpop.f32.mrb[0].mxu0 }
  0xe8   : > { %v367_v8 = vadd.f32 %v361_v7, %v304_v6  ;;  %v581_v9 = vpop.f32.mrb[1].mxu0 }
  0xe9   : > { %v364_v10 = vpop.f32.mrb[2].mxu0 }
  0xea   : > { %369 = vst.msk [vmem:[#allocation2] sm:$0xff] %vm302_vm1, %v367_v8  ;;  %v582_v11 = vpop.f32.mrb[3].mxu0 }
  0xf1   : > { %v373_v13 = vld [vmem:[#allocation2] sm:$0xff] }
  0xf2   : > { %v381_v14 = vadd.f32 %v569_v12, %v373_v13 }
  0xf4   : > { %v384_v15 = vsel %vm302_vm1, %v381_v14, -inf  ;;  %382 = vst.msk [vmem:[%s284_s5] sm:$0xff] %vm302_vm1, %v381_v14 }
  0xf5   : > { %385 = vmax.xlane.f32.xlu0 %v384_v15 }
 0x182   : > { %v386_v18 = vpop.xlane.xlu0 %385 }
 0x183   : > { %v387_v19 = vmax.f32 %v383_v17, %v386_v18 }
 0x185   : > { %v389_v20 = vsub.f32 %v383_v17, %v387_v19  ;;  %407 = vst.msk [vmem:[#allocation3] sm:$0xff] %vm296_vm3, %v387_v19  ;;  %395 = vperm.xlu0 %611, %v387_v19  }
 0x187   : > { %v390_v26 = vmul.f32 1.442695, %v389_v20 }
 0x18c   : > { %v410_v35 = vld [vmem:[#allocation3] sm:$0xff] }
 0x204   : > { %v396_v21 = vpop.permute.xlu0 %395 }
 0x205   : > { %v398_v22 = vsub.f32 %v381_v14, %v396_v21 }
 0x207   : > { %v399_v23 = vmul.f32 1.442695, %v398_v22 }
 0x209   : > { %614 = vpow2.f32 %v399_v23 }
 0x20a   : > { %616 = vpow2.f32 %v390_v26 }
 0x213   : > { %v615_v24 = vpop.eup %614 }
 0x214   : > { %v401_v25 = vsel %vm302_vm1, %v615_v24, 0.0  ;;  %v617_v27 = vpop.eup %616 }
 0x215   : > { %402 = vadd.xlane.f32.xlu1 %v401_v25  ;;  %v392_v29 = vmul.f32 %v617_v27, %v388_v28 }
 0x2a2   : > { %v403_v30 = vpop.xlane.xlu1 %402 }
 0x2a3   : > { %v404_v31 = vadd.f32 %v403_v30, %v392_v29 }
 0x2a5   : > { %406 = vst.msk [vmem:[#allocation4] sm:$0xff] %vm296_vm3, %v404_v31 }
 0x2ac   : > { %v411_v32 = vld [vmem:[#allocation4] sm:$0xff] }
 0x2ad   : > { %618 = vlog2.f32 %v411_v32 }
 0x2b7   : > { %v619_v33 = vpop.eup %618 }
 0x2b8   : > { %v413_v34 = vmul.f32 0.6931472, %v619_v33 }
 0x2ba   : > { %v414_v36 = vadd.f32 %v413_v34, %v410_v35 }
 0x2bc   : > { %416 = vst.msk [vmem:[%s288_s8] sm:$0xff] %vm296_vm3, %v414_v36 }
 0x2bd PF: > { %s15_s17 = sadd.s32 1, %s642_s17   ;;  %s738_s15 = smov %s638_s16 }
 0x2be   : > { %p12_p5 = scmp.ge.s32.totalorder %s15_s17, 4   ;;  %s739_s16 = smov %s741_s18 }
 0x2c0   :  { %14 = sbr.rel (!%p12_p5) target bundleno = 2 (0x2), region = 96 }

</bundles_post_ra>
